<compile_context>
chip_gen: v5e
topology: v5e:2x2
jax: 0.10.0
libtpu: 0.0.40
codegen_flags: <defaults>
</compile_context>

<pallas_src>
import jax
import jax.numpy as jnp
from jax.experimental import pallas as pl
from jax.experimental.pallas import tpu as pltpu

IN_F = 6            # 3 (gender embedding) + 3 (remaining body params)
HID = 1024
OUT_F = 19 * 3      # 57
IN_PAD = 8          # sublane-aligned padded input features (K of layer 1)
OUT_PAD = 128       # lane-aligned padded output features
MAX_TB = 256        # MXU-native M on v6e/v7x; fine on v5e (two 128-row passes)
NEG_SLOPE = 0.01    # nn.LeakyReLU default


def mlp_kernel(x_ref, w1_ref, b1_ref, w2_ref, b2_ref, w3_ref, b3_ref, o_ref):
    x = x_ref[...]                                                     # (TB, IN_PAD) bf16
    h = jnp.dot(x, w1_ref[...], preferred_element_type=jnp.float32) + b1_ref[...]
    # TODO(synk): Dropout(0.2) is the identity in eval mode; training-mode random
    # masking (pltpu.prng_seed / prng_random_bits) is not implemented here.
    h = jnp.where(h > 0, h, NEG_SLOPE * h)                             # LeakyReLU
    h = h.astype(w2_ref.dtype)                                         # bf16 for the MXU
    h = jnp.dot(h, w2_ref[...], preferred_element_type=jnp.float32) + b2_ref[...]
    h = jnp.where(h > 0, h, NEG_SLOPE * h)                             # LeakyReLU
    h = h.astype(w3_ref.dtype)
    o = jnp.dot(h, w3_ref[...], preferred_element_type=jnp.float32) + b3_ref[...]
    o_ref[...] = o.astype(o_ref.dtype)


def body_inference_pallas(x6, w1_p, b1_p, w2_p, b2_p, w3_p, b3_p):
    """x6: (B, 6) float32 -> (B, 57) float32 via the fused Pallas MLP.

    Weights arrive already padded/cast (see prepare_params); only the x tile
    is padded per call.
    """
    B = x6.shape[0]
    # Batch tile: MXU-native 256 rows when the batch is big enough, otherwise
    # the smallest sublane-aligned tile that covers B (B=2 -> TB=8, grid=1).
    TB = min(MAX_TB, ((B + 7) // 8) * 8)
    B_pad = pl.cdiv(B, TB) * TB

    # Pad batch + features; padded entries are zero so the real slice is exact.
    x_p = jnp.zeros((B_pad, IN_PAD), jnp.bfloat16).at[:B, :IN_F].set(
        x6.astype(jnp.bfloat16))

    resident = lambda i: (0, 0)   # constant index_map: weights stay put in VMEM

    out = pl.pallas_call(
        mlp_kernel,
        out_shape=jax.ShapeDtypeStruct((B_pad, OUT_PAD), jnp.float32),
        grid_spec=pltpu.PrefetchScalarGridSpec(
            num_scalar_prefetch=0,
            grid=(B_pad // TB,),
            in_specs=[
                pl.BlockSpec((TB, IN_PAD), lambda i: (i, 0)),             # x tile
                pl.BlockSpec((IN_PAD, HID), resident,
                             pipeline_mode=pl.Buffered(1)),               # W1
                pl.BlockSpec((1, HID), resident,
                             pipeline_mode=pl.Buffered(1)),               # b1
                pl.BlockSpec((HID, HID), resident,
                             pipeline_mode=pl.Buffered(1)),               # W2
                pl.BlockSpec((1, HID), resident,
                             pipeline_mode=pl.Buffered(1)),               # b2
                pl.BlockSpec((HID, OUT_PAD), resident,
                             pipeline_mode=pl.Buffered(1)),               # W3
                pl.BlockSpec((1, OUT_PAD), resident,
                             pipeline_mode=pl.Buffered(1)),               # b3
            ],
            out_specs=pl.BlockSpec((TB, OUT_PAD), lambda i: (i, 0)),
        ),
        compiler_params=pltpu.CompilerParams(
            dimension_semantics=("parallel",),        # batch grid shards across TCs (v7x)
            vmem_limit_bytes=32 * 1024 * 1024,        # safe on v5e/v6e/v7x
        ),
    )(x_p, w1_p, b1_p, w2_p, b2_p, w3_p, b3_p)
    return out[:B, :OUT_F]


def init_params(key):
    """Deterministic init matching the PyTorch layer shapes (stored as (in, out))."""
    ks = jax.random.split(key, 8)

    def linear(kw, kb, fan_in, fan_out):
        bound = 1.0 / jnp.sqrt(fan_in)
        w = jax.random.uniform(kw, (fan_in, fan_out), jnp.float32, -bound, bound)
        b = jax.random.uniform(kb, (fan_out,), jnp.float32, -bound, bound)
        return w, b

    embed = jax.random.normal(ks[0], (2, 3), jnp.float32)          # nn.Embedding(2, 3)
    w1, b1 = linear(ks[1], ks[2], IN_F, HID)                       # Linear(6, 1024)
    w2, b2 = linear(ks[3], ks[4], HID, HID)                        # Linear(1024, 1024)
    w3, b3 = linear(ks[5], ks[6], HID, OUT_F)                      # Linear(1024, 57)
    return dict(embed=embed, w1=w1, b1=b1, w2=w2, b2=b2, w3=w3, b3=b3)


def prepare_params(params):
    """One-time weight padding + bf16 cast, hoisted out of the forward path."""
    w1_p = jnp.zeros((IN_PAD, HID), jnp.bfloat16).at[:IN_F, :].set(
        params["w1"].astype(jnp.bfloat16))
    b1_p = params["b1"].astype(jnp.float32).reshape(1, HID)
    w2_p = params["w2"].astype(jnp.bfloat16)
    b2_p = params["b2"].astype(jnp.float32).reshape(1, HID)
    w3_p = jnp.zeros((HID, OUT_PAD), jnp.bfloat16).at[:, :OUT_F].set(
        params["w3"].astype(jnp.bfloat16))
    b3_p = jnp.zeros((1, OUT_PAD), jnp.float32).at[:, :OUT_F].set(
        params["b3"].astype(jnp.float32).reshape(1, OUT_F))
    return dict(embed=params["embed"],
                w1=w1_p, b1=b1_p, w2=w2_p, b2=b2_p, w3=w3_p, b3=b3_p)


@jax.jit
def bm_forward(params, body_parms):
    """body_parms: (B, 4) float32; column 0 is the gender index (0 or 1)."""
    gender_idx = body_parms[:, 0].astype(jnp.int32)
    gender = params["embed"][gender_idx]                           # (B, 3) embedding lookup
    body = jnp.concatenate([gender, body_parms[:, 1:]], axis=1)    # (B, 6)
    return body_inference_pallas(
        body,
        params["w1"], params["b1"],
        params["w2"], params["b2"],
        params["w3"], params["b3"],
    )


if __name__ == "__main__":
    key = jax.random.PRNGKey(0)
    kp, kg, kx = jax.random.split(key, 3)

    params = prepare_params(init_params(kp))   # pad/cast weights once, not per call

    B = 2
    gender_col = jax.random.bernoulli(kg, 0.5, (B, 1)).astype(jnp.float32)
    rest = jax.random.normal(kx, (B, 3), jnp.float32)
    body_parms = jnp.concatenate([gender_col, rest], axis=1)       # (2, 4)

    out = jax.block_until_ready(bm_forward(params, body_parms))
    assert out.shape == (B, OUT_F) and out.dtype == jnp.float32
    print("KERNEL_OK")
</pallas_src>

<mosaic_0001>
module attributes {stable_mosaic.version = 11 : i64} {
  func.func @mlp_kernel(%arg0: i32, %arg1: memref<8x8xbf16, #tpu.memory_space<vmem>>, %arg2: memref<8x1024xbf16, #tpu.memory_space<vmem>>, %arg3: memref<1x1024xf32, #tpu.memory_space<vmem>>, %arg4: memref<1024x1024xbf16, #tpu.memory_space<vmem>>, %arg5: memref<1x1024xf32, #tpu.memory_space<vmem>>, %arg6: memref<1024x128xbf16, #tpu.memory_space<vmem>>, %arg7: memref<1x128xf32, #tpu.memory_space<vmem>>, %arg8: memref<8x128xf32, #tpu.memory_space<vmem>>) attributes {dimension_semantics = [#tpu.dimension_semantics<parallel>], iteration_bounds = array<i64: 1>, scalar_prefetch = 0 : i64, scratch_operands = 0 : i64, tpu.core_type = #tpu.core_type<tc>, window_params = [{transform_indices = @transform_0, window_bounds = array<i64: 8, 8>}, {pipeline_mode = #tpu.pipeline_mode<synchronous>, transform_indices = @transform_1, window_bounds = array<i64: 8, 1024>}, {pipeline_mode = #tpu.pipeline_mode<synchronous>, transform_indices = @transform_2, window_bounds = array<i64: 1, 1024>}, {pipeline_mode = #tpu.pipeline_mode<synchronous>, transform_indices = @transform_3, window_bounds = array<i64: 1024, 1024>}, {pipeline_mode = #tpu.pipeline_mode<synchronous>, transform_indices = @transform_4, window_bounds = array<i64: 1, 1024>}, {pipeline_mode = #tpu.pipeline_mode<synchronous>, transform_indices = @transform_5, window_bounds = array<i64: 1024, 128>}, {pipeline_mode = #tpu.pipeline_mode<synchronous>, transform_indices = @transform_6, window_bounds = array<i64: 1, 128>}, {transform_indices = @transform_7, window_bounds = array<i64: 8, 128>}]} {
    %c0 = arith.constant 0 : index
    %c0_0 = arith.constant 0 : index
    %0 = vector.load %arg1[%c0, %c0_0] : memref<8x8xbf16, #tpu.memory_space<vmem>>, vector<8x8xbf16>
    %c0_1 = arith.constant 0 : index
    %c0_2 = arith.constant 0 : index
    %1 = vector.load %arg2[%c0_1, %c0_2] : memref<8x1024xbf16, #tpu.memory_space<vmem>>, vector<8x1024xbf16>
    %cst = arith.constant dense<0.000000e+00> : vector<8x1024xf32>
    %2 = tpu.matmul %0, %1, %cst {dimension_numbers = #tpu.dot_dimension_numbers<[1], [0], [0], [1], [0, 0, 1, 1], [], []>} : vector<8x8xbf16>, vector<8x1024xbf16>, vector<8x1024xf32> -> vector<8x1024xf32>
    %c0_3 = arith.constant 0 : index
    %c0_4 = arith.constant 0 : index
    %3 = vector.load %arg3[%c0_3, %c0_4] : memref<1x1024xf32, #tpu.memory_space<vmem>>, vector<1x1024xf32>
    %4 = vector.broadcast %3 : vector<1x1024xf32> to vector<8x1024xf32>
    %5 = arith.addf %2, %4 : vector<8x1024xf32>
    %cst_5 = arith.constant 0.000000e+00 : f32
    %6 = vector.broadcast %cst_5 : f32 to vector<8x1024xf32>
    %7 = arith.cmpf ogt, %5, %6 : vector<8x1024xf32>
    %cst_6 = arith.constant 0.00999999977 : f32
    %8 = vector.broadcast %cst_6 : f32 to vector<8x1024xf32>
    %9 = arith.mulf %8, %5 : vector<8x1024xf32>
    %10 = arith.select %7, %5, %9 : vector<8x1024xi1>, vector<8x1024xf32>
    %11 = arith.truncf %10 : vector<8x1024xf32> to vector<8x1024xbf16>
    %c0_7 = arith.constant 0 : index
    %c0_8 = arith.constant 0 : index
    %12 = vector.load %arg4[%c0_7, %c0_8] : memref<1024x1024xbf16, #tpu.memory_space<vmem>>, vector<1024x1024xbf16>
    %cst_9 = arith.constant dense<0.000000e+00> : vector<8x1024xf32>
    %13 = tpu.matmul %11, %12, %cst_9 {dimension_numbers = #tpu.dot_dimension_numbers<[1], [0], [0], [1], [0, 0, 1, 1], [], []>} : vector<8x1024xbf16>, vector<1024x1024xbf16>, vector<8x1024xf32> -> vector<8x1024xf32>
    %c0_10 = arith.constant 0 : index
    %c0_11 = arith.constant 0 : index
    %14 = vector.load %arg5[%c0_10, %c0_11] : memref<1x1024xf32, #tpu.memory_space<vmem>>, vector<1x1024xf32>
    %15 = vector.broadcast %14 : vector<1x1024xf32> to vector<8x1024xf32>
    %16 = arith.addf %13, %15 : vector<8x1024xf32>
    %cst_12 = arith.constant 0.000000e+00 : f32
    %17 = vector.broadcast %cst_12 : f32 to vector<8x1024xf32>
    %18 = arith.cmpf ogt, %16, %17 : vector<8x1024xf32>
    %cst_13 = arith.constant 0.00999999977 : f32
    %19 = vector.broadcast %cst_13 : f32 to vector<8x1024xf32>
    %20 = arith.mulf %19, %16 : vector<8x1024xf32>
    %21 = arith.select %18, %16, %20 : vector<8x1024xi1>, vector<8x1024xf32>
    %22 = arith.truncf %21 : vector<8x1024xf32> to vector<8x1024xbf16>
    %c0_14 = arith.constant 0 : index
    %c0_15 = arith.constant 0 : index
    %23 = vector.load %arg6[%c0_14, %c0_15] : memref<1024x128xbf16, #tpu.memory_space<vmem>>, vector<1024x128xbf16>
    %cst_16 = arith.constant dense<0.000000e+00> : vector<8x128xf32>
    %24 = tpu.matmul %22, %23, %cst_16 {dimension_numbers = #tpu.dot_dimension_numbers<[1], [0], [0], [1], [0, 0, 1, 1], [], []>} : vector<8x1024xbf16>, vector<1024x128xbf16>, vector<8x128xf32> -> vector<8x128xf32>
    %c0_17 = arith.constant 0 : index
    %c0_18 = arith.constant 0 : index
    %25 = vector.load %arg7[%c0_17, %c0_18] : memref<1x128xf32, #tpu.memory_space<vmem>>, vector<1x128xf32>
    %26 = vector.broadcast %25 : vector<1x128xf32> to vector<8x128xf32>
    %27 = arith.addf %24, %26 : vector<8x128xf32>
    %c0_19 = arith.constant 0 : index
    %c0_20 = arith.constant 0 : index
    %28 = vector.load %arg8[%c0_19, %c0_20] : memref<8x128xf32, #tpu.memory_space<vmem>>, vector<8x128xf32>
    tpu.vector_store %arg8[%c0_19, %c0_20], %27 {strides = array<i32>} : memref<8x128xf32, #tpu.memory_space<vmem>>, vector<8x128xf32>,
    return
  }
  func.func @transform_0(%arg0: i32) -> (i32, i32) {
    %c0_i32 = arith.constant 0 : i32
    %c0_i32_0 = arith.constant 0 : i32
    return %arg0, %c0_i32 : i32, i32
  }
  func.func @transform_1(%arg0: i32) -> (i32, i32) {
    %c0_i32 = arith.constant 0 : i32
    %c0_i32_0 = arith.constant 0 : i32
    %c0_i32_1 = arith.constant 0 : i32
    return %c0_i32, %c0_i32_0 : i32, i32
  }
  func.func @transform_2(%arg0: i32) -> (i32, i32) {
    %c0_i32 = arith.constant 0 : i32
    %c0_i32_0 = arith.constant 0 : i32
    %c0_i32_1 = arith.constant 0 : i32
    return %c0_i32, %c0_i32_0 : i32, i32
  }
  func.func @transform_3(%arg0: i32) -> (i32, i32) {
    %c0_i32 = arith.constant 0 : i32
    %c0_i32_0 = arith.constant 0 : i32
    %c0_i32_1 = arith.constant 0 : i32
    return %c0_i32, %c0_i32_0 : i32, i32
  }
  func.func @transform_4(%arg0: i32) -> (i32, i32) {
    %c0_i32 = arith.constant 0 : i32
    %c0_i32_0 = arith.constant 0 : i32
    %c0_i32_1 = arith.constant 0 : i32
    return %c0_i32, %c0_i32_0 : i32, i32
  }
  func.func @transform_5(%arg0: i32) -> (i32, i32) {
    %c0_i32 = arith.constant 0 : i32
    %c0_i32_0 = arith.constant 0 : i32
    %c0_i32_1 = arith.constant 0 : i32
    return %c0_i32, %c0_i32_0 : i32, i32
  }
  func.func @transform_6(%arg0: i32) -> (i32, i32) {
    %c0_i32 = arith.constant 0 : i32
    %c0_i32_0 = arith.constant 0 : i32
    %c0_i32_1 = arith.constant 0 : i32
    return %c0_i32, %c0_i32_0 : i32, i32
  }
  func.func @transform_7(%arg0: i32) -> (i32, i32) {
    %c0_i32 = arith.constant 0 : i32
    %c0_i32_0 = arith.constant 0 : i32
    return %arg0, %c0_i32 : i32, i32
  }
}

</mosaic_0001>

<bundles_post_ra>
// kernel: bm_forward.1
= control target key start
LH: loop header
LB: loop body
LE: loop exit
PB: predicated region body
PF: predicated region fallthrough
CT: control target
= control target key end

     0   :  { %12 = vsyncpa [#allocation3], 0  ;;  %s8222_s0 = inlined_call_operand.vmem [shape: bf16[8,8], index: 0, kind: input, shape index: {}]   ;;  %s8223_s1 = inlined_call_operand.hbm [shape: bf16[8,1024], index: 1, kind: input, shape index: {}]   ;;  %s8224_s2 = inlined_call_operand.hbm [shape: f32[1,1024], index: 2, kind: input, shape index: {}]   ;;  %s8225_s3 = inlined_call_operand.hbm [shape: bf16[1024,1024], index: 3, kind: input, shape index: {}]   ;;  %s8226_s4 = inlined_call_operand.hbm [shape: f32[1,1024], index: 4, kind: input, shape index: {}]   ;;  %s8227_s5 = inlined_call_operand.hbm [shape: bf16[1024,128], index: 5, kind: input, shape index: {}]   ;;  %s8228_s6 = inlined_call_operand.hbm [shape: f32[1,128], index: 6, kind: input, shape index: {}]   ;;  %s8229_s7 = inlined_call_operand.vmem [shape: f32[8,128], index: 7, kind: output, shape index: {}]  }
   0x1   :  { %13 = vsyncpa [#allocation5], 0 }
   0x2   :  { %14 = vsyncpa [#allocation8], 0  ;;  %s34_s26 = sshll.u32 %s8224_s2, 4  ;;  %s35_s26 = int_to_ptr.hbm [resolvable:$true] %s34_s26 }
   0x3   :  { %15 = vsyncpa [#allocation11], 0  ;;  %s7957_s27 = smov [#allocation4]   ;;  %s58_s8 = sshll.u32 %s8226_s4, 4  ;;  %s59_s8 = int_to_ptr.hbm [resolvable:$true] %s58_s8 }
   0x4   :  { %s36_s28 = sshll.u32 %s7957_s27, 4  ;;  %s7958_s9 = smov [#allocation7]   ;;  %s37_s28 = int_to_ptr.vmem [resolvable:$true] %s36_s28 }
   0x5   :  { %39 = dma.hbm_to_vmem [thread:$0]  %s35_s26, 128, %s37_s28, [#allocation5]  }
   0x6   :  { %s60_s10 = sshll.u32 %s7958_s9, 4  ;;  %s23_s13 = sshll.u32 %s8223_s1, 4  ;;  %s61_s10 = int_to_ptr.vmem [resolvable:$true] %s60_s10  ;;  %s24_s13 = int_to_ptr.hbm [resolvable:$true] %s23_s13 }
   0x7   :  { %63 = dma.hbm_to_vmem [thread:$0]  %s59_s8, 128, %s61_s10, [#allocation8]  }
   0x8   :  { %s44_s15 = sshll.u32 %s8225_s3, 4  ;;  %s7959_s16 = smov [#allocation2]   ;;  %s45_s15 = int_to_ptr.hbm [resolvable:$true] %s44_s15 }
   0x9   :  { %s25_s17 = sshll.u32 %s7959_s16, 4  ;;  %s7960_s4 = smov [#allocation6]   ;;  %s26_s17 = int_to_ptr.vmem [resolvable:$true] %s25_s17 }
   0xa   :  { %28 = dma.hbm_to_vmem [thread:$0]  %s24_s13, 512, %s26_s17, [#allocation3]  }
   0xb   :  { %s46_s18 = sshll.u32 %s7960_s4, 4  ;;  %s7961_s19 = smov 512   ;;  %s47_s18 = int_to_ptr.vmem [resolvable:$true] %s46_s18 }
   0xc   :  { %s7962_s20 = smov 32   ;;  %s68_s22 = sshll.u32 %s8227_s5, 4  ;;  %s69_s22 = int_to_ptr.hbm [resolvable:$true] %s68_s22 }
   0xd   :  { %52 = dma.hbm_to_vmem [thread:$0]  %s45_s15, 65536, %s47_s18, [#allocation5], %s7961_s19, %s7961_s19, %s7962_s20  }
   0xe   :  { %s7963_s23 = smov [#allocation9]   ;;  %s82_s26 = sshll.u32 %s8228_s6, 4  ;;  %s83_s26 = int_to_ptr.hbm [resolvable:$true] %s82_s26 }
   0xf   :  { %s70_s24 = sshll.u32 %s7963_s23, 4  ;;  %s7964_s27 = smov 64   ;;  %s71_s24 = int_to_ptr.vmem [resolvable:$true] %s70_s24 }
  0x10   :  { %s7965_s28 = smov 4   ;;  %s7966_s29 = smov [#allocation10]  }
  0x11   :  { %76 = dma.hbm_to_vmem [thread:$0]  %s69_s22, 8192, %s71_s24, [#allocation8], %s7964_s27, %s7964_s27, %s7965_s28  }
  0x12   :  { %s84_s30 = sshll.u32 %s7966_s29, 4  ;;  %s85_s30 = int_to_ptr.vmem [resolvable:$true] %s84_s30 }
  0x13   :  { %87 = dma.hbm_to_vmem [thread:$0]  %s83_s26, 16, %s85_s30, [#allocation11]  }
  0x14   :  { %7949 = dma.done.wait [#allocation3], 512  }
  0x15   :  { %7950 = vsyncadd [#allocation3], 4294966784 }
  0x16   :  { %7951 = dma.done.wait [#allocation5], 65664  }
  0x17   :  { %7952 = vsyncadd [#allocation5], 4294901632 }
  0x18   :  { %7953 = dma.done.wait [#allocation8], 8320  }
  0x19   :  { %7954 = vsyncadd [#allocation8], 4294958976 }
  0x1a   :  { %7955 = dma.done.wait [#allocation11], 16  }
  0x1b   :  { %7956 = vsyncadd [#allocation11], 4294967280  ;;  %v114_v0 = vld [vmem:[#allocation2] sm:$0xff]  ;;  %vm160_vm0 = vcmask 1043456   ;;  %v115_v1 = vld [vmem:[#allocation2 + $0x8] sm:$0xff]  ;;  %vm156_vm1 = vcmask 64512  }
  0x1c   :  { %v140_v2 = vunpack.c.l.b16 %v114_v0  ;;  %v141_v3 = vunpack.c.h.b16 %v114_v0  ;;  %v142_v4 = vunpack.c.l.b16 %v115_v1  ;;  %v143_v5 = vunpack.c.h.b16 %v115_v1  ;;  %v116_v6 = vld [vmem:[#allocation2 + $0x10] sm:$0xff]  ;;  %v117_v7 = vld [vmem:[#allocation2 + $0x18] sm:$0xff]  ;;  %v5138_v16 = vld [vmem:[#allocation6 + $0x1c0] sm:$0xf] }
  0x1d   :  { %v144_v8 = vunpack.c.l.b16 %v116_v6  ;;  %v145_v9 = vunpack.c.h.b16 %v116_v6  ;;  %v146_v10 = vunpack.c.l.b16 %v117_v7  ;;  %v147_v11 = vunpack.c.h.b16 %v117_v7  ;;  %v7276_v17 = vld [vmem:[#allocation6 + $0x1dc] sm:$0xf0]  ;;  %v8028_v18 = vld [vmem:[%s8222_s0] sm:$0xf] }
  0x1e   :  { %v148_v12 = vpack.c.b16 %v140_v2, %v140_v2  ;;  %v149_v13 = vpack.c.b16 %v141_v3, %v141_v3  ;;  %v150_v14 = vpack.c.b16 %v142_v4, %v142_v4  ;;  %v151_v15 = vpack.c.b16 %v143_v5, %v143_v5  ;;  %v5394_v23 = vld [vmem:[#allocation6 + $0x3c0] sm:$0xf] }
  0x1f   :  { %v152_v19 = vpack.c.b16 %v144_v8, %v144_v8  ;;  %v153_v20 = vpack.c.b16 %v145_v9, %v145_v9  ;;  %v154_v21 = vpack.c.b16 %v146_v10, %v146_v10  ;;  %v155_v22 = vpack.c.b16 %v147_v11, %v147_v11  ;;  %v7340_v24 = vld [vmem:[#allocation6 + $0x3dc] sm:$0xf0] }
  0x20   :  { %v5650_v25 = vld [vmem:[#allocation6 + $0x5c0] sm:$0xf]  ;;  %v162_v26 = vsel %vm160_vm0, %v148_v12, 0  ;;  %v165_v27 = vsel %vm160_vm0, %v149_v13, 0  ;;  %v168_v28 = vsel %vm160_vm0, %v150_v14, 0  ;;  %v171_v29 = vsel %vm160_vm0, %v151_v15, 0 }
  0x21   :  { %v7404_v30 = vld [vmem:[#allocation6 + $0x5dc] sm:$0xf0]  ;;  %192 = vmatpush.bf16.msra.mxu0 %v162_v26  ;;  %205 = vmatpush.bf16.msra.mxu1 %v165_v27  ;;  %v174_v31 = vsel %vm160_vm0, %v152_v19, 0  ;;  %v177_v32 = vsel %vm160_vm0, %v153_v20, 0  ;;  %v180_v35 = vsel %vm160_vm0, %v154_v21, 0  ;;  %v183_v36 = vsel %vm160_vm0, %v155_v22, 0 }
  0x22   :  { %v5906_v33 = vld [vmem:[#allocation6 + $0x7c0] sm:$0xf]  ;;  %218 = vmatpush.bf16.msra.mxu2 %v168_v28  ;;  %231 = vmatpush.bf16.msra.mxu3 %v171_v29  ;;  %v5139_v37 = vor.u32 %v7276_v17, %v5138_v16  ;;  %v5395_v38 = vor.u32 %v7340_v24, %v5394_v23  ;;  %v5651_v43 = vor.u32 %v7404_v30, %v5650_v25 }
  0x23   :  { %v7468_v34 = vld [vmem:[#allocation6 + $0x7dc] sm:$0xf0] }
  0x24   :  { %v5106_v39 = vld [vmem:[#allocation6 + $0x180] sm:$0xf]  ;;  %4904 = vmatmul.msk.bf16.vlgmr.msra.gmra.mxu0 %vm156_vm1, %v8028_v18  ;;  %4905 = vmatmul.msk.bf16.vlgmr.msra.gmra.mxu1 %vm156_vm1, %v8028_v18  ;;  %v5907_v44 = vor.u32 %v7468_v34, %v5906_v33 }
  0x25   :  { %244 = vmatpush.bf16.msrb.mxu0 %v174_v31  ;;  %257 = vmatpush.bf16.msrb.mxu1 %v177_v32  ;;  %v7268_v40 = vld [vmem:[#allocation6 + $0x19c] sm:$0xf0] }
  0x26   :  { %v5362_v41 = vld [vmem:[#allocation6 + $0x380] sm:$0xf]  ;;  %4906 = vmatmul.msk.bf16.vlgmr.msra.gmra.mxu2 %vm156_vm1, %v8028_v18  ;;  %4907 = vmatmul.msk.bf16.vlgmr.msra.gmra.mxu3 %vm156_vm1, %v8028_v18  ;;  %v5107_v49 = vor.u32 %v7268_v40, %v5106_v39 }
  0x27   :  { %v7332_v42 = vld [vmem:[#allocation6 + $0x39c] sm:$0xf0]  ;;  %270 = vmatpush.bf16.msrb.mxu2 %v180_v35  ;;  %283 = vmatpush.bf16.msrb.mxu3 %v183_v36 }
  0x28   :  { %v5618_v45 = vld [vmem:[#allocation6 + $0x580] sm:$0xf]  ;;  %v5363_v50 = vor.u32 %v7332_v42, %v5362_v41 }
  0x29   :  { %v7396_v46 = vld [vmem:[#allocation6 + $0x59c] sm:$0xf0]  ;;  %3411 = vmatpush.bf16.msra.mxu0 %v5139_v37  ;;  %3424 = vmatpush.bf16.msra.mxu1 %v5395_v38 }
  0x2a   :  { %v5874_v47 = vld [vmem:[#allocation6 + $0x780] sm:$0xf]  ;;  %v5619_v55 = vor.u32 %v7396_v46, %v5618_v45 }
  0x2b   :  { %v7460_v48 = vld [vmem:[#allocation6 + $0x79c] sm:$0xf0]  ;;  %3437 = vmatpush.bf16.msra.mxu2 %v5651_v43  ;;  %3450 = vmatpush.bf16.msra.mxu3 %v5907_v44 }
  0x2c   :  { %v5074_v51 = vld [vmem:[#allocation6 + $0x140] sm:$0xf]  ;;  %v5875_v56 = vor.u32 %v7460_v48, %v5874_v47 }
  0x2d   :  { %v7260_v52 = vld [vmem:[#allocation6 + $0x15c] sm:$0xf0]  ;;  %3412 = vmatpush.bf16.msra.mxu0 %v5107_v49  ;;  %3425 = vmatpush.bf16.msra.mxu1 %v5363_v50 }
  0x2e   :  { %v5330_v53 = vld [vmem:[#allocation6 + $0x340] sm:$0xf]  ;;  %v5075_v61 = vor.u32 %v7260_v52, %v5074_v51 }
  0x2f   :  { %v7324_v54 = vld [vmem:[#allocation6 + $0x35c] sm:$0xf0]  ;;  %3438 = vmatpush.bf16.msra.mxu2 %v5619_v55  ;;  %3451 = vmatpush.bf16.msra.mxu3 %v5875_v56 }
  0x30   :  { %v5586_v57 = vld [vmem:[#allocation6 + $0x540] sm:$0xf]  ;;  %v5331_v62 = vor.u32 %v7324_v54, %v5330_v53 }
  0x31   :  { %v7388_v58 = vld [vmem:[#allocation6 + $0x55c] sm:$0xf0]  ;;  %3413 = vmatpush.bf16.msra.mxu0 %v5075_v61 }
  0x32   :  { %v5842_v59 = vld [vmem:[#allocation6 + $0x740] sm:$0xf]  ;;  %v5587_v3 = vor.u32 %v7388_v58, %v5586_v57  ;;  %3426 = vmatpush.bf16.msra.mxu1 %v5331_v62 }
  0x33   :  { %v7452_v60 = vld [vmem:[#allocation6 + $0x75c] sm:$0xf0] }
  0x34   :  { %v5042_v63 = vld [vmem:[#allocation6 + $0x100] sm:$0xf]  ;;  %v5843_v4 = vor.u32 %v7452_v60, %v5842_v59  ;;  %3439 = vmatpush.bf16.msra.mxu2 %v5587_v3  ;;  %4908 = vmatmul.msk.bf16.vlgmr.msrb.gmra.mxu0 %vm156_vm1, %v8028_v18 }
  0x35   :  { %v7252_v0 = vld [vmem:[#allocation6 + $0x11c] sm:$0xf0]  ;;  %4909 = vmatmul.msk.bf16.vlgmr.msrb.gmra.mxu1 %vm156_vm1, %v8028_v18 }
  0x36   :  { %v5298_v1 = vld [vmem:[#allocation6 + $0x300] sm:$0xf]  ;;  %v5043_v7 = vor.u32 %v7252_v0, %v5042_v63  ;;  %3452 = vmatpush.bf16.msra.mxu3 %v5843_v4  ;;  %4910 = vmatmul.msk.bf16.vlgmr.msrb.gmra.mxu2 %vm156_vm1, %v8028_v18 }
  0x37   :  { %v7316_v2 = vld [vmem:[#allocation6 + $0x31c] sm:$0xf0]  ;;  %4911 = vmatmul.msk.bf16.vlgmr.msrb.gmra.mxu3 %vm156_vm1, %v8028_v18 }
  0x38   :  { %v5010_v5 = vld [vmem:[#allocation6 + $0xc0] sm:$0xf]  ;;  %v5299_v8 = vor.u32 %v7316_v2, %v5298_v1  ;;  %3414 = vmatpush.bf16.msra.mxu0 %v5043_v7 }
  0x39   :  { %v5554_v6 = vld [vmem:[#allocation6 + $0x500] sm:$0xf] }
  0x3a   :  { %v7380_v9 = vld [vmem:[#allocation6 + $0x51c] sm:$0xf0]  ;;  %3427 = vmatpush.bf16.msra.mxu1 %v5299_v8 }
  0x3b   :  { %v5810_v10 = vld [vmem:[#allocation6 + $0x700] sm:$0xf]  ;;  %v5555_v15 = vor.u32 %v7380_v9, %v5554_v6 }
  0x3c   :  { %v7444_v11 = vld [vmem:[#allocation6 + $0x71c] sm:$0xf0] }
  0x3d   :  { %v7244_v12 = vld [vmem:[#allocation6 + $0xdc] sm:$0xf0]  ;;  %v5811_v16 = vor.u32 %v7444_v11, %v5810_v10  ;;  %3440 = vmatpush.bf16.msra.mxu2 %v5555_v15 }
  0x3e   :  { %v5266_v13 = vld [vmem:[#allocation6 + $0x2c0] sm:$0xf]  ;;  %v5011_v20 = vor.u32 %v7244_v12, %v5010_v5 }
  0x3f   :  { %v7308_v14 = vld [vmem:[#allocation6 + $0x2dc] sm:$0xf0]  ;;  %3453 = vmatpush.bf16.msra.mxu3 %v5811_v16 }
  0x40   :  { %v4978_v17 = vld [vmem:[#allocation6 + $0x80] sm:$0xf]  ;;  %v5267_v21 = vor.u32 %v7308_v14, %v5266_v13  ;;  %3415 = vmatpush.bf16.msra.mxu0 %v5011_v20 }
  0x41   :  { %v5522_v19 = vld [vmem:[#allocation6 + $0x4c0] sm:$0xf] }
  0x42   :  { %v7372_v22 = vld [vmem:[#allocation6 + $0x4dc] sm:$0xf0]  ;;  %3428 = vmatpush.bf16.msra.mxu1 %v5267_v21 }
  0x43   :  { %v5778_v23 = vld [vmem:[#allocation6 + $0x6c0] sm:$0xf]  ;;  %v5523_v28 = vor.u32 %v7372_v22, %v5522_v19 }
  0x44   :  { %v7436_v24 = vld [vmem:[#allocation6 + $0x6dc] sm:$0xf0] }
  0x45   :  { %v7236_v25 = vld [vmem:[#allocation6 + $0x9c] sm:$0xf0]  ;;  %v5779_v29 = vor.u32 %v7436_v24, %v5778_v23  ;;  %3441 = vmatpush.bf16.msra.mxu2 %v5523_v28 }
  0x46   :  { %v5234_v26 = vld [vmem:[#allocation6 + $0x280] sm:$0xf]  ;;  %v4979_v32 = vor.u32 %v7236_v25, %v4978_v17 }
  0x47   :  { %v7300_v27 = vld [vmem:[#allocation6 + $0x29c] sm:$0xf0]  ;;  %3454 = vmatpush.bf16.msra.mxu3 %v5779_v29 }
  0x48   :  { %v4946_v30 = vld [vmem:[#allocation6 + $0x40] sm:$0xf]  ;;  %v5235_v33 = vor.u32 %v7300_v27, %v5234_v26  ;;  %3416 = vmatpush.bf16.msra.mxu0 %v4979_v32 }
  0x49   :  { %v5490_v31 = vld [vmem:[#allocation6 + $0x480] sm:$0xf] }
  0x4a   :  { %v7364_v34 = vld [vmem:[#allocation6 + $0x49c] sm:$0xf0]  ;;  %3429 = vmatpush.bf16.msra.mxu1 %v5235_v33 }
  0x4b   :  { %v5746_v35 = vld [vmem:[#allocation6 + $0x680] sm:$0xf]  ;;  %v5491_v40 = vor.u32 %v7364_v34, %v5490_v31 }
  0x4c   :  { %v7428_v36 = vld [vmem:[#allocation6 + $0x69c] sm:$0xf0] }
  0x4d   :  { %v7228_v37 = vld [vmem:[#allocation6 + $0x5c] sm:$0xf0]  ;;  %v5747_v18 = vor.u32 %v7428_v36, %v5746_v35  ;;  %3442 = vmatpush.bf16.msra.mxu2 %v5491_v40 }
  0x4e   :  { %v5202_v38 = vld [vmem:[#allocation6 + $0x240] sm:$0xf]  ;;  %v4947_v44 = vor.u32 %v7228_v37, %v4946_v30 }
  0x4f   :  { %v7292_v39 = vld [vmem:[#allocation6 + $0x25c] sm:$0xf0]  ;;  %3455 = vmatpush.bf16.msra.mxu3 %v5747_v18 }
  0x50   :  { %v4914_v41 = vld [vmem:[#allocation6] sm:$0xf]  ;;  %v5203_v45 = vor.u32 %v7292_v39, %v5202_v38  ;;  %3417 = vmatpush.bf16.msra.mxu0 %v4947_v44 }
  0x51   :  { %v7220_v42 = vld [vmem:[#allocation6 + $0x1c] sm:$0xf0] }
  0x52   :  { %v5458_v43 = vld [vmem:[#allocation6 + $0x440] sm:$0xf]  ;;  %3430 = vmatpush.bf16.msra.mxu1 %v5203_v45  ;;  %v4915_v59 = vor.u32 %v7220_v42, %v4914_v41 }
  0x53   :  { %v7356_v46 = vld [vmem:[#allocation6 + $0x45c] sm:$0xf0] }
  0x54   :  { %v5714_v47 = vld [vmem:[#allocation6 + $0x640] sm:$0xf]  ;;  %v5459_v55 = vor.u32 %v7356_v46, %v5458_v43  ;;  %3418 = vmatpush.bf16.msra.mxu0 %v4915_v59 }
  0x55   :  { %v7420_v48 = vld [vmem:[#allocation6 + $0x65c] sm:$0xf0] }
  0x56   :  { %v5170_v49 = vld [vmem:[#allocation6 + $0x200] sm:$0xf]  ;;  %v5715_v56 = vor.u32 %v7420_v48, %v5714_v47  ;;  %3443 = vmatpush.bf16.msra.mxu2 %v5459_v55 }
  0x57   :  { %v7284_v50 = vld [vmem:[#allocation6 + $0x21c] sm:$0xf0] }
  0x58   :  { %v6162_v51 = vld [vmem:[#allocation6 + $0x9c0] sm:$0xf]  ;;  %v5171_v60 = vor.u32 %v7284_v50, %v5170_v49  ;;  %3456 = vmatpush.bf16.msra.mxu3 %v5715_v56 }
  0x59   :  { %v7532_v52 = vld [vmem:[#allocation6 + $0x9dc] sm:$0xf0] }
  0x5a   :  { %v6418_v53 = vld [vmem:[#allocation6 + $0xbc0] sm:$0xf]  ;;  %v6163_v2 = vor.u32 %v7532_v52, %v6162_v51  ;;  %3431 = vmatpush.bf16.msra.mxu1 %v5171_v60 }
  0x5b   :  { %v7596_v54 = vld [vmem:[#allocation6 + $0xbdc] sm:$0xf0] }
  0x5c   :  { %v5426_v57 = vld [vmem:[#allocation6 + $0x400] sm:$0xf]  ;;  %v6419_v3 = vor.u32 %v7596_v54, %v6418_v53  ;;  %3463 = vmatpush.bf16.msrb.mxu0 %v6163_v2 }
  0x5d   :  { %v7348_v58 = vld [vmem:[#allocation6 + $0x41c] sm:$0xf0] }
  0x5e   :  { %v6130_v61 = vld [vmem:[#allocation6 + $0x980] sm:$0xf]  ;;  %v5427_v9 = vor.u32 %v7348_v58, %v5426_v57  ;;  %3476 = vmatpush.bf16.msrb.mxu1 %v6419_v3 }
  0x5f   :  { %v7524_v62 = vld [vmem:[#allocation6 + $0x99c] sm:$0xf0] }
  0x60   :  { %v5682_v63 = vld [vmem:[#allocation6 + $0x600] sm:$0xf]  ;;  %v6131_v15 = vor.u32 %v7524_v62, %v6130_v61  ;;  %3444 = vmatpush.bf16.msra.mxu2 %v5427_v9 }
  0x61   :  { %v7412_v0 = vld [vmem:[#allocation6 + $0x61c] sm:$0xf0] }
  0x62   :  { %v6674_v1 = vld [vmem:[#allocation6 + $0xdc0] sm:$0xf]  ;;  %v5683_v10 = vor.u32 %v7412_v0, %v5682_v63  ;;  %3464 = vmatpush.bf16.msrb.mxu0 %v6131_v15 }
  0x63   :  { %v7660_v4 = vld [vmem:[#allocation6 + $0xddc] sm:$0xf0] }
  0x64   :  { %v6930_v5 = vld [vmem:[#allocation6 + $0xfc0] sm:$0xf]  ;;  %v6675_v11 = vor.u32 %v7660_v4, %v6674_v1  ;;  %3457 = vmatpush.bf16.msra.mxu3 %v5683_v10 }
  0x65   :  { %v7724_v6 = vld [vmem:[#allocation6 + $0xfdc] sm:$0xf0] }
  0x66   :  { %v6386_v7 = vld [vmem:[#allocation6 + $0xb80] sm:$0xf]  ;;  %v6931_v12 = vor.u32 %v7724_v6, %v6930_v5  ;;  %3489 = vmatpush.bf16.msrb.mxu2 %v6675_v11 }
  0x67   :  { %v7588_v8 = vld [vmem:[#allocation6 + $0xb9c] sm:$0xf0] }
  0x68   :  { %v6098_v13 = vld [vmem:[#allocation6 + $0x940] sm:$0xf]  ;;  %v6387_v16 = vor.u32 %v7588_v8, %v6386_v7  ;;  %3502 = vmatpush.bf16.msrb.mxu3 %v6931_v12 }
  0x69   :  { %v6642_v14 = vld [vmem:[#allocation6 + $0xd80] sm:$0xf] }
  0x6a   :  { %v7652_v17 = vld [vmem:[#allocation6 + $0xd9c] sm:$0xf0]  ;;  %3477 = vmatpush.bf16.msrb.mxu1 %v6387_v16 }
  0x6b   :  { %v6898_v19 = vld [vmem:[#allocation6 + $0xf80] sm:$0xf]  ;;  %v6643_v24 = vor.u32 %v7652_v17, %v6642_v14 }
  0x6c   :  { %v7716_v20 = vld [vmem:[#allocation6 + $0xf9c] sm:$0xf0] }
  0x6d   :  { %v7516_v21 = vld [vmem:[#allocation6 + $0x95c] sm:$0xf0]  ;;  %v6899_v25 = vor.u32 %v7716_v20, %v6898_v19  ;;  %3490 = vmatpush.bf16.msrb.mxu2 %v6643_v24 }
  0x6e   :  { %v6354_v22 = vld [vmem:[#allocation6 + $0xb40] sm:$0xf]  ;;  %v6099_v28 = vor.u32 %v7516_v21, %v6098_v13 }
  0x6f   :  { %v7580_v23 = vld [vmem:[#allocation6 + $0xb5c] sm:$0xf0]  ;;  %3503 = vmatpush.bf16.msrb.mxu3 %v6899_v25 }
  0x70   :  { %v6066_v26 = vld [vmem:[#allocation6 + $0x900] sm:$0xf]  ;;  %v6355_v29 = vor.u32 %v7580_v23, %v6354_v22  ;;  %3465 = vmatpush.bf16.msrb.mxu0 %v6099_v28 }
  0x71   :  { %v6610_v27 = vld [vmem:[#allocation6 + $0xd40] sm:$0xf] }
  0x72   :  { %v7644_v30 = vld [vmem:[#allocation6 + $0xd5c] sm:$0xf0]  ;;  %3478 = vmatpush.bf16.msrb.mxu1 %v6355_v29 }
  0x73   :  { %v6866_v31 = vld [vmem:[#allocation6 + $0xf40] sm:$0xf]  ;;  %v6611_v36 = vor.u32 %v7644_v30, %v6610_v27  ;;  %v8054_v30 = vld [vmem:[#allocation4] sm:$0xff] }
  0x74   :  { %v7708_v32 = vld [vmem:[#allocation6 + $0xf5c] sm:$0xf0] }
  0x75   :  { %v7508_v33 = vld [vmem:[#allocation6 + $0x91c] sm:$0xf0]  ;;  %v6867_v37 = vor.u32 %v7708_v32, %v6866_v31  ;;  %3491 = vmatpush.bf16.msrb.mxu2 %v6611_v36  ;;  %v120_v31 = vperm.slane %v8054_v30, 0  ;;  %v121_v32 = vperm.slane %v8054_v30, 1 }
  0x76   :  { %v6322_v34 = vld [vmem:[#allocation6 + $0xb00] sm:$0xf]  ;;  %v6067_v40 = vor.u32 %v7508_v33, %v6066_v26 }
  0x77   :  { %v7572_v35 = vld [vmem:[#allocation6 + $0xb1c] sm:$0xf0]  ;;  %3504 = vmatpush.bf16.msrb.mxu3 %v6867_v37  ;;  %v7272_v37 = vld [vmem:[#allocation6 + $0x1c4] sm:$0xf] }
  0x78   :  { %v6034_v38 = vld [vmem:[#allocation6 + $0x8c0] sm:$0xf]  ;;  %v6323_v18 = vor.u32 %v7572_v35, %v6322_v34  ;;  %3466 = vmatpush.bf16.msrb.mxu0 %v6067_v40  ;;  %v5396_v40 = vld [vmem:[#allocation6 + $0x3e0] sm:$0xf0] }
  0x79   :  { %v6578_v39 = vld [vmem:[#allocation6 + $0xd00] sm:$0xf] }
  0x7a   :  { %v7636_v41 = vld [vmem:[#allocation6 + $0xd1c] sm:$0xf0]  ;;  %3479 = vmatpush.bf16.msrb.mxu1 %v6323_v18 }
  0x7b   :  { %v6834_v42 = vld [vmem:[#allocation6 + $0xf00] sm:$0xf]  ;;  %v6579_v47 = vor.u32 %v7636_v41, %v6578_v39  ;;  %v7336_v39 = vld [vmem:[#allocation6 + $0x3c4] sm:$0xf] }
  0x7c   :  { %v7700_v43 = vld [vmem:[#allocation6 + $0xf1c] sm:$0xf0] }
  0x7d   :  { %v7500_v44 = vld [vmem:[#allocation6 + $0x8dc] sm:$0xf0]  ;;  %v6835_v48 = vor.u32 %v7700_v43, %v6834_v42  ;;  %3492 = vmatpush.bf16.msrb.mxu2 %v6579_v47  ;;  %v122_v42 = vperm.slane %v8054_v30, 2  ;;  %v123_v43 = vperm.slane %v8054_v30, 3  ;;  %v5399_v47 = vor.u32 %v7336_v39, %v5396_v40  ;;  %v7448_v40 = vld [vmem:[#allocation6 + $0x744] sm:$0xf] }
  0x7e   :  { %v6290_v45 = vld [vmem:[#allocation6 + $0xac0] sm:$0xf]  ;;  %v6035_v49 = vor.u32 %v7500_v44, %v6034_v38  ;;  %v5140_v38 = vld [vmem:[#allocation6 + $0x1e0] sm:$0xf0] }
  0x7f   :  { %v7564_v46 = vld [vmem:[#allocation6 + $0xadc] sm:$0xf0]  ;;  %3505 = vmatpush.bf16.msrb.mxu3 %v6835_v48  ;;  %v7264_v48 = vld [vmem:[#allocation6 + $0x184] sm:$0xf] }
  0x80   :  { %v6291_v50 = vor.u32 %v7564_v46, %v6290_v45  ;;  %v6002_v51 = vld [vmem:[#allocation6 + $0x880] sm:$0xf]  ;;  %3467 = vmatpush.bf16.msrb.mxu0 %v6035_v49  ;;  %v5143_v46 = vor.u32 %v7272_v37, %v5140_v38 }
  0x81   :  { %v7492_v52 = vld [vmem:[#allocation6 + $0x89c] sm:$0xf0] }
  0x82   :  { %v6258_v53 = vld [vmem:[#allocation6 + $0xa80] sm:$0xf]  ;;  %3480 = vmatpush.bf16.msrb.mxu1 %v6291_v50  ;;  %v6003_v55 = vor.u32 %v7492_v52, %v6002_v51  ;;  %v5108_v51 = vld [vmem:[#allocation6 + $0x1a0] sm:$0xf0] }
  0x83   :  { %v7556_v54 = vld [vmem:[#allocation6 + $0xa9c] sm:$0xf0]  ;;  %v7328_v52 = vld [vmem:[#allocation6 + $0x384] sm:$0xf] }
  0x84   :  { %v6259_v56 = vor.u32 %v7556_v54, %v6258_v53  ;;  %3468 = vmatpush.bf16.msrb.mxu0 %v6003_v55  ;;  %v6546_v57 = vld [vmem:[#allocation6 + $0xcc0] sm:$0xf]  ;;  %v5364_v53 = vld [vmem:[#allocation6 + $0x3a0] sm:$0xf0] }
  0x85   :  { %v7628_v58 = vld [vmem:[#allocation6 + $0xcdc] sm:$0xf0] }
  0x86   :  { %3481 = vmatpush.bf16.msrb.mxu1 %v6259_v56  ;;  %v6802_v59 = vld [vmem:[#allocation6 + $0xec0] sm:$0xf]  ;;  %v6547_v60 = vor.u32 %v7628_v58, %v6546_v57  ;;  %v7400_v56 = vld [vmem:[#allocation6 + $0x5c4] sm:$0xf] }
  0x87   :  { %v7692_v61 = vld [vmem:[#allocation6 + $0xedc] sm:$0xf0]  ;;  %v5652_v57 = vld [vmem:[#allocation6 + $0x5e0] sm:$0xf0] }
  0x88   :  { %v6803_v62 = vor.u32 %v7692_v61, %v6802_v59  ;;  %v5970_v63 = vld [vmem:[#allocation6 + $0x840] sm:$0xf]  ;;  %3493 = vmatpush.bf16.msrb.mxu2 %v6547_v60 }
  0x89   :  { %v7484_v0 = vld [vmem:[#allocation6 + $0x85c] sm:$0xf0] }
  0x8a   :  { %v6226_v1 = vld [vmem:[#allocation6 + $0xa40] sm:$0xf]  ;;  %v5971_v2 = vor.u32 %v7484_v0, %v5970_v63  ;;  %3506 = vmatpush.bf16.msrb.mxu3 %v6803_v62  ;;  %v7464_v62 = vld [vmem:[#allocation6 + $0x7c4] sm:$0xf] }
  0x8b   :  { %v7548_v3 = vld [vmem:[#allocation6 + $0xa5c] sm:$0xf0]  ;;  %v5908_v63 = vld [vmem:[#allocation6 + $0x7e0] sm:$0xf0] }
  0x8c   :  { %v6227_v4 = vor.u32 %v7548_v3, %v6226_v1  ;;  %v6514_v5 = vld [vmem:[#allocation6 + $0xc80] sm:$0xf]  ;;  %3469 = vmatpush.bf16.msrb.mxu0 %v5971_v2  ;;  %v7256_v0 = vld [vmem:[#allocation6 + $0x144] sm:$0xf]  ;;  %v5111_v1 = vor.u32 %v7264_v48, %v5108_v51  ;;  %v5367_v2 = vor.u32 %v7328_v52, %v5364_v53  ;;  %v127_v48 = vperm.slane %v8054_v30, 7 }
  0x8d   :  { %v7620_v6 = vld [vmem:[#allocation6 + $0xc9c] sm:$0xf0]  ;;  %v5076_v3 = vld [vmem:[#allocation6 + $0x160] sm:$0xf0] }
  0x8e   :  { %v6770_v7 = vld [vmem:[#allocation6 + $0xe80] sm:$0xf]  ;;  %v6515_v8 = vor.u32 %v7620_v6, %v6514_v5  ;;  %3482 = vmatpush.bf16.msrb.mxu1 %v6227_v4  ;;  %v7320_v4 = vld [vmem:[#allocation6 + $0x344] sm:$0xf] }
  0x8f   :  { %v7684_v9 = vld [vmem:[#allocation6 + $0xe9c] sm:$0xf0]  ;;  %v5332_v5 = vld [vmem:[#allocation6 + $0x360] sm:$0xf0] }
  0x90   :  { %v6771_v10 = vor.u32 %v7684_v9, %v6770_v7  ;;  %v5938_v11 = vld [vmem:[#allocation6 + $0x800] sm:$0xf]  ;;  %3494 = vmatpush.bf16.msrb.mxu2 %v6515_v8  ;;  %v5655_v8 = vor.u32 %v7400_v56, %v5652_v57  ;;  %v124_v9 = vperm.slane %v8054_v30, 4  ;;  %v7376_v53 = vld [vmem:[#allocation6 + $0x504] sm:$0xf] }
  0x91   :  { %v7476_v12 = vld [vmem:[#allocation6 + $0x81c] sm:$0xf0]  ;;  %v7440_v57 = vld [vmem:[#allocation6 + $0x704] sm:$0xf] }
  0x92   :  { %v6194_v13 = vld [vmem:[#allocation6 + $0xa00] sm:$0xf]  ;;  %v5939_v14 = vor.u32 %v7476_v12, %v5938_v11  ;;  %3507 = vmatpush.bf16.msrb.mxu3 %v6771_v10  ;;  %v125_v10 = vperm.slane %v8054_v30, 5 }
  0x93   :  { %v7540_v15 = vld [vmem:[#allocation6 + $0xa1c] sm:$0xf0] }
  0x94   :  { %v6195_v16 = vor.u32 %v7540_v15, %v6194_v13  ;;  %3470 = vmatpush.bf16.msrb.mxu0 %v5939_v14  ;;  %v6482_v17 = vld [vmem:[#allocation6 + $0xc40] sm:$0xf]  ;;  %v5911_v13 = vor.u32 %v7464_v62, %v5908_v63  ;;  %v5079_v14 = vor.u32 %v7256_v0, %v5076_v3  ;;  %v7392_v15 = vld [vmem:[#allocation6 + $0x584] sm:$0xf] }
  0x95   :  { %v7612_v19 = vld [vmem:[#allocation6 + $0xc5c] sm:$0xf0]  ;;  %v4980_v0 = vld [vmem:[#allocation6 + $0xa0] sm:$0xf0] }
  0x96   :  { %v6738_v20 = vld [vmem:[#allocation6 + $0xe40] sm:$0xf]  ;;  %3483 = vmatpush.bf16.msrb.mxu1 %v6195_v16  ;;  %v6483_v21 = vor.u32 %v7612_v19, %v6482_v17  ;;  %v5620_v16 = vld [vmem:[#allocation6 + $0x5a0] sm:$0xf0] }
  0x97   :  { %v7676_v22 = vld [vmem:[#allocation6 + $0xe5c] sm:$0xf0]  ;;  %v7456_v17 = vld [vmem:[#allocation6 + $0x784] sm:$0xf] }
  0x98   :  { %v6739_v23 = vor.u32 %v7676_v22, %v6738_v20  ;;  %3495 = vmatpush.bf16.msrb.mxu2 %v6483_v21  ;;  %v6450_v24 = vld [vmem:[#allocation6 + $0xc00] sm:$0xf]  ;;  %v5335_v21 = vor.u32 %v7320_v4, %v5332_v5  ;;  %v5876_v22 = vld [vmem:[#allocation6 + $0x7a0] sm:$0xf0] }
  0x99   :  { %v7604_v25 = vld [vmem:[#allocation6 + $0xc1c] sm:$0xf0] }
  0x9a   :  { %3508 = vmatpush.bf16.msrb.mxu3 %v6739_v23  ;;  %v6451_v26 = vor.u32 %v7604_v25, %v6450_v24  ;;  %v6706_v27 = vld [vmem:[#allocation6 + $0xe00] sm:$0xf]  ;;  %v7248_v23 = vld [vmem:[#allocation6 + $0x104] sm:$0xf] }
  0x9b   :  { %v7668_v28 = vld [vmem:[#allocation6 + $0xe1c] sm:$0xf0]  ;;  %v5044_v24 = vld [vmem:[#allocation6 + $0x120] sm:$0xf0] }
  0x9c   :  { %v6707_v29 = vor.u32 %v7668_v28, %v6706_v27  ;;  %3496 = vmatpush.bf16.msrb.mxu2 %v6451_v26  ;;  %v7312_v25 = vld [vmem:[#allocation6 + $0x304] sm:$0xf] }
  0x9d   :  { %v5300_v26 = vld [vmem:[#allocation6 + $0x320] sm:$0xf0] }
  0x9e   :  { %3509 = vmatpush.bf16.msrb.mxu3 %v6707_v29  ;;  %v5303_v39 = vor.u32 %v7312_v25, %v5300_v26  ;;  %v5204_v25 = vld [vmem:[#allocation6 + $0x260] sm:$0xf0] }
  0xa1   :  { %v194_v33 = vpop.f32.mrf.mxu0  ;;  %v207_v34 = vpop.f32.mrf.mxu1 }
  0xa2   :  { %v195_v35 = vadd.f32 %v194_v33, %v120_v31  ;;  %v208_v36 = vadd.f32 %v207_v34, %v121_v32  ;;  %v5623_v32 = vor.u32 %v7392_v15, %v5620_v16  ;;  %v5879_v33 = vor.u32 %v7456_v17, %v5876_v22  ;;  %v5780_v15 = vld [vmem:[#allocation6 + $0x6e0] sm:$0xf0] }
  0xa3   :  { %v5047_v34 = vor.u32 %v7248_v23, %v5044_v24  ;;  %v7224_v16 = vld [vmem:[#allocation6 + $0x44] sm:$0xf] }
  0xa4   :  { %vm289_vm2 = vcmp.gt.f32.partialorder %v195_v35, 0.0  ;;  %v297_v18 = vmul.f32 0.01, %v195_v35  ;;  %vm290_vm3 = vcmp.gt.f32.partialorder %v208_v36, 0.0  ;;  %v298_v41 = vmul.f32 0.01, %v208_v36 }
  0xa5   :  { %v4948_v23 = vld [vmem:[#allocation6 + $0x60] sm:$0xf0] }
  0xa6   :  { %v305_v44 = vsel %vm289_vm2, %v195_v35, %v297_v18  ;;  %v306_v45 = vsel %vm290_vm3, %v208_v36, %v298_v41  ;;  %v7384_v35 = vld [vmem:[#allocation6 + $0x544] sm:$0xf] }
  0xa7   :  { %v8060_v49 = vpack.c.bf16 %v305_v44, %v305_v44  ;;  %v8062_v50 = vpack.c.bf16 %v306_v45, %v306_v45  ;;  %v5588_v36 = vld [vmem:[#allocation6 + $0x560] sm:$0xf0] }
  0xa8   :  { %v5844_v18 = vld [vmem:[#allocation6 + $0x760] sm:$0xf0]  ;;  %v5591_v51 = vor.u32 %v7384_v35, %v5588_v36  ;;  %v4951_v36 = vor.u32 %v7224_v16, %v4948_v23 }
  0xa9   :  { %v220_v54 = vpop.f32.mrf.mxu2  ;;  %v233_v55 = vpop.f32.mrf.mxu3  ;;  %3419 = vmatmul.bf16.vlgmr.msra.gmra.mxu0 %v8060_v49  ;;  %3432 = vmatmul.bf16.vlgmr.msra.gmra.mxu1 %v8062_v50  ;;  %v7240_v41 = vld [vmem:[#allocation6 + $0xc4] sm:$0xf]  ;;  %v5847_v52 = vor.u32 %v7448_v40, %v5844_v18 }
  0xaa   :  { %v221_v58 = vadd.f32 %v220_v54, %v122_v42  ;;  %v234_v59 = vadd.f32 %v233_v55, %v123_v43  ;;  %v196_v60 = vpop.f32.mrf.mxu0  ;;  %v209_v61 = vpop.f32.mrf.mxu1  ;;  %3515 = vmatpush.bf16.msra.mxu0 %v5143_v46  ;;  %3528 = vmatpush.bf16.msra.mxu1 %v5399_v47  ;;  %v5012_v42 = vld [vmem:[#allocation6 + $0xe0] sm:$0xf0]  ;;  %v126_v47 = vperm.slane %v8054_v30, 6 }
  0xab   :  { %v7304_v43 = vld [vmem:[#allocation6 + $0x2c4] sm:$0xf]  ;;  %v5015_v62 = vor.u32 %v7240_v41, %v5012_v42 }
  0xac   :  { %vm291_vm4 = vcmp.gt.f32.partialorder %v221_v58, 0.0  ;;  %v299_v6 = vmul.f32 0.01, %v221_v58  ;;  %vm292_vm5 = vcmp.gt.f32.partialorder %v234_v59, 0.0  ;;  %v300_v7 = vmul.f32 0.01, %v234_v59 }
  0xad   :  { %v5268_v44 = vld [vmem:[#allocation6 + $0x2e0] sm:$0xf0] }
  0xae   :  { %v307_v11 = vsel %vm291_vm4, %v221_v58, %v299_v6  ;;  %v308_v12 = vsel %vm292_vm5, %v234_v59, %v300_v7  ;;  %3516 = vmatpush.bf16.msra.mxu0 %v5111_v1  ;;  %3529 = vmatpush.bf16.msra.mxu1 %v5367_v2  ;;  %v5556_v54 = vld [vmem:[#allocation6 + $0x520] sm:$0xf0]  ;;  %v5271_v63 = vor.u32 %v7304_v43, %v5268_v44 }
  0xaf   :  { %v8068_v19 = vpack.c.bf16 %v307_v11, %v307_v11  ;;  %v8070_v20 = vpack.c.bf16 %v308_v12, %v308_v12  ;;  %v5812_v58 = vld [vmem:[#allocation6 + $0x720] sm:$0xf0]  ;;  %v5559_v4 = vor.u32 %v7376_v53, %v5556_v54 }
  0xb0   :  { %v7232_v59 = vld [vmem:[#allocation6 + $0x84] sm:$0xf]  ;;  %v5815_v7 = vor.u32 %v7440_v57, %v5812_v58 }
  0xb1   :  { %v222_v27 = vpop.f32.mrf.mxu2  ;;  %v235_v28 = vpop.f32.mrf.mxu3  ;;  %3445 = vmatmul.bf16.vlgmr.msra.gmra.mxu2 %v8068_v19  ;;  %3458 = vmatmul.bf16.vlgmr.msra.gmra.mxu3 %v8070_v20  ;;  %v7296_v1 = vld [vmem:[#allocation6 + $0x284] sm:$0xf]  ;;  %v4983_v12 = vor.u32 %v7232_v59, %v4980_v0 }
  0xb2   :  { %3541 = vmatpush.bf16.msra.mxu2 %v5655_v8  ;;  %3554 = vmatpush.bf16.msra.mxu3 %v5911_v13  ;;  %v246_v29 = vpop.f32.mrf.mxu0  ;;  %v259_v31 = vpop.f32.mrf.mxu1  ;;  %v5236_v30 = vld [vmem:[#allocation6 + $0x2a0] sm:$0xf0] }
  0xb3   :  { %v247_v37 = vadd.f32 %v246_v29, %v124_v9  ;;  %v260_v38 = vadd.f32 %v259_v31, %v125_v10  ;;  %3517 = vmatpush.bf16.msra.mxu0 %v5079_v14  ;;  %3530 = vmatpush.bf16.msra.mxu1 %v5335_v21  ;;  %v7368_v8 = vld [vmem:[#allocation6 + $0x4c4] sm:$0xf]  ;;  %v5239_v13 = vor.u32 %v7296_v1, %v5236_v30 }
  0xb4   :  { %v5524_v9 = vld [vmem:[#allocation6 + $0x4e0] sm:$0xf0] }
  0xb5   :  { %vm293_vm6 = vcmp.gt.f32.partialorder %v247_v37, 0.0  ;;  %v301_v45 = vmul.f32 0.01, %v247_v37  ;;  %vm294_vm7 = vcmp.gt.f32.partialorder %v260_v38, 0.0  ;;  %v302_v46 = vmul.f32 0.01, %v260_v38 }
  0xb6   :  { %3542 = vmatpush.bf16.msra.mxu2 %v5623_v32  ;;  %3555 = vmatpush.bf16.msra.mxu3 %v5879_v33  ;;  %v7432_v14 = vld [vmem:[#allocation6 + $0x6c4] sm:$0xf]  ;;  %v5527_v22 = vor.u32 %v7368_v8, %v5524_v9 }
  0xb7   :  { %v309_v55 = vsel %vm293_vm6, %v247_v37, %v301_v45  ;;  %v310_v56 = vsel %vm294_vm7, %v260_v38, %v302_v46  ;;  %3518 = vmatpush.bf16.msra.mxu0 %v5047_v34  ;;  %3531 = vmatpush.bf16.msra.mxu1 %v5303_v39  ;;  %v7288_v24 = vld [vmem:[#allocation6 + $0x244] sm:$0xf]  ;;  %v5783_v28 = vor.u32 %v7432_v14, %v5780_v15 }
  0xb8   :  { %v8076_v60 = vpack.c.bf16 %v309_v55, %v309_v55  ;;  %v8078_v61 = vpack.c.bf16 %v310_v56, %v310_v56  ;;  %v7360_v29 = vld [vmem:[#allocation6 + $0x484] sm:$0xf]  ;;  %v5207_v37 = vor.u32 %v7288_v24, %v5204_v25 }
  0xb9   :  { %v272_v2 = vpop.f32.mrf.mxu2  ;;  %v5492_v33 = vld [vmem:[#allocation6 + $0x4a0] sm:$0xf0] }
  0xba   :  { %v285_v3 = vpop.f32.mrf.mxu3  ;;  %v273_v5 = vadd.f32 %v272_v2, %v126_v47  ;;  %3543 = vmatpush.bf16.msra.mxu2 %v5591_v51  ;;  %3556 = vmatpush.bf16.msra.mxu3 %v5847_v52  ;;  %v248_v10 = vpop.f32.mrf.mxu0  ;;  %v7424_v34 = vld [vmem:[#allocation6 + $0x684] sm:$0xf]  ;;  %v5495_v45 = vor.u32 %v7360_v29, %v5492_v33 }
  0xbb   :  { %v286_v6 = vadd.f32 %v285_v3, %v127_v48  ;;  %v261_v11 = vpop.f32.mrf.mxu1  ;;  %3471 = vmatmul.bf16.vlgmr.msrb.gmra.mxu0 %v8076_v60  ;;  %3484 = vmatmul.bf16.vlgmr.msrb.gmra.mxu1 %v8078_v61  ;;  %v5748_v35 = vld [vmem:[#allocation6 + $0x6a0] sm:$0xf0] }
  0xbc   :  { %vm295_vm8 = vcmp.gt.f32.partialorder %v273_v5, 0.0  ;;  %v303_v17 = vmul.f32 0.01, %v273_v5  ;;  %3519 = vmatpush.bf16.msra.mxu0 %v5015_v62  ;;  %3532 = vmatpush.bf16.msra.mxu1 %v5271_v63  ;;  %v7216_v38 = vld [vmem:[#allocation6 + $0x4] sm:$0xf]  ;;  %v5751_v46 = vor.u32 %v7424_v34, %v5748_v35 }
  0xbd   :  { %vm296_vm9 = vcmp.gt.f32.partialorder %v286_v6, 0.0  ;;  %v304_v21 = vmul.f32 0.01, %v286_v6  ;;  %v4916_v39 = vld [vmem:[#allocation6 + $0x20] sm:$0xf0] }
  0xbe   :  { %v311_v26 = vsel %vm295_vm8, %v273_v5, %v303_v17  ;;  %3544 = vmatpush.bf16.msra.mxu2 %v5559_v4  ;;  %3557 = vmatpush.bf16.msra.mxu3 %v5815_v7  ;;  %v7280_v40 = vld [vmem:[#allocation6 + $0x204] sm:$0xf]  ;;  %v4919_v55 = vor.u32 %v7216_v38, %v4916_v39 }
  0xbf   :  { %v312_v27 = vsel %vm296_vm9, %v286_v6, %v304_v21  ;;  %v8082_v31 = vpack.c.bf16 %v311_v26, %v311_v26  ;;  %v5172_v41 = vld [vmem:[#allocation6 + $0x220] sm:$0xf0] }
  0xc0   :  { %v8084_v32 = vpack.c.bf16 %v312_v27, %v312_v27  ;;  %3520 = vmatpush.bf16.msra.mxu0 %v4983_v12  ;;  %3533 = vmatpush.bf16.msra.mxu1 %v5239_v13  ;;  %v7528_v43 = vld [vmem:[#allocation6 + $0x9c4] sm:$0xf]  ;;  %v5175_v56 = vor.u32 %v7280_v40, %v5172_v41 }
  0xc1   :  { %3497 = vmatmul.bf16.vlgmr.msrb.gmra.mxu2 %v8082_v31  ;;  %v274_v18 = vpop.f32.mrf.mxu2  ;;  %v6164_v44 = vld [vmem:[#allocation6 + $0x9e0] sm:$0xf0] }
  0xc2   :  { %3510 = vmatmul.bf16.vlgmr.msrb.gmra.mxu3 %v8084_v32  ;;  %v287_v42 = vpop.f32.mrf.mxu3  ;;  %3545 = vmatpush.bf16.msra.mxu2 %v5527_v22  ;;  %v7592_v47 = vld [vmem:[#allocation6 + $0xbc4] sm:$0xf]  ;;  %v6167_v57 = vor.u32 %v7528_v43, %v6164_v44 }
  0xc3   :  { %3558 = vmatpush.bf16.msra.mxu3 %v5783_v28  ;;  %v6420_v48 = vld [vmem:[#allocation6 + $0xbe0] sm:$0xf0] }
  0xc4   :  { %v7352_v51 = vld [vmem:[#allocation6 + $0x444] sm:$0xf]  ;;  %3521 = vmatpush.bf16.msra.mxu0 %v4951_v36  ;;  %3534 = vmatpush.bf16.msra.mxu1 %v5207_v37  ;;  %v6423_v58 = vor.u32 %v7592_v47, %v6420_v48 }
  0xc5   :  { %v5460_v52 = vld [vmem:[#allocation6 + $0x460] sm:$0xf0] }
  0xc6   :  { %v7416_v53 = vld [vmem:[#allocation6 + $0x644] sm:$0xf]  ;;  %3546 = vmatpush.bf16.msra.mxu2 %v5495_v45  ;;  %v5463_v0 = vor.u32 %v7352_v51, %v5460_v52 }
  0xc7   :  { %v5716_v54 = vld [vmem:[#allocation6 + $0x660] sm:$0xf0]  ;;  %3559 = vmatpush.bf16.msra.mxu3 %v5751_v46 }
  0xc8   :  { %v7520_v59 = vld [vmem:[#allocation6 + $0x984] sm:$0xf]  ;;  %v5719_v1 = vor.u32 %v7416_v53, %v5716_v54  ;;  %3522 = vmatpush.bf16.msra.mxu0 %v4919_v55  ;;  %3535 = vmatpush.bf16.msra.mxu1 %v5175_v56 }
  0xc9   :  { %v6132_v62 = vld [vmem:[#allocation6 + $0x9a0] sm:$0xf0] }
  0xca   :  { %v7584_v63 = vld [vmem:[#allocation6 + $0xb84] sm:$0xf]  ;;  %v6135_v10 = vor.u32 %v7520_v59, %v6132_v62  ;;  %3547 = vmatpush.bf16.msra.mxu2 %v5463_v0 }
  0xcb   :  { %v6388_v30 = vld [vmem:[#allocation6 + $0xba0] sm:$0xf0]  ;;  %3560 = vmatpush.bf16.msra.mxu3 %v5719_v1  ;;  %3523 = vmatmul.bf16.vlgmr.msra.gmra.mxu0 %v8060_v49 }
  0xcc   :  { %v7344_v2 = vld [vmem:[#allocation6 + $0x404] sm:$0xf]  ;;  %3567 = vmatpush.bf16.msrb.mxu0 %v6167_v57  ;;  %3580 = vmatpush.bf16.msrb.mxu1 %v6423_v58  ;;  %v6391_v11 = vor.u32 %v7584_v63, %v6388_v30 }
  0xcd   :  { %v5428_v3 = vld [vmem:[#allocation6 + $0x420] sm:$0xf0]  ;;  %3536 = vmatmul.bf16.vlgmr.msra.gmra.mxu1 %v8062_v50 }
  0xce   :  { %v7408_v4 = vld [vmem:[#allocation6 + $0x604] sm:$0xf]  ;;  %v5431_v13 = vor.u32 %v7344_v2, %v5428_v3 }
  0xcf   :  { %v5684_v5 = vld [vmem:[#allocation6 + $0x620] sm:$0xf0] }
  0xd0   :  { %v7656_v6 = vld [vmem:[#allocation6 + $0xdc4] sm:$0xf]  ;;  %v5687_v14 = vor.u32 %v7408_v4, %v5684_v5  ;;  %3568 = vmatpush.bf16.msrb.mxu0 %v6135_v10  ;;  %3581 = vmatpush.bf16.msrb.mxu1 %v6391_v11 }
  0xd1   :  { %v6676_v7 = vld [vmem:[#allocation6 + $0xde0] sm:$0xf0]  ;;  %3548 = vmatpush.bf16.msra.mxu2 %v5431_v13 }
  0xd2   :  { %v7720_v8 = vld [vmem:[#allocation6 + $0xfc4] sm:$0xf]  ;;  %v6679_v21 = vor.u32 %v7656_v6, %v6676_v7  ;;  %3561 = vmatpush.bf16.msra.mxu3 %v5687_v14 }
  0xd3   :  { %v6932_v9 = vld [vmem:[#allocation6 + $0xfe0] sm:$0xf0] }
  0xd4   :  { %v7512_v12 = vld [vmem:[#allocation6 + $0x944] sm:$0xf]  ;;  %v6935_v22 = vor.u32 %v7720_v8, %v6932_v9  ;;  %3549 = vmatmul.bf16.vlgmr.msra.gmra.mxu2 %v8068_v19 }
  0xd5   :  { %v6100_v15 = vld [vmem:[#allocation6 + $0x960] sm:$0xf0]  ;;  %3593 = vmatpush.bf16.msrb.mxu2 %v6679_v21  ;;  %3562 = vmatmul.bf16.vlgmr.msra.gmra.mxu3 %v8070_v20 }
  0xd6   :  { %v7576_v16 = vld [vmem:[#allocation6 + $0xb44] sm:$0xf]  ;;  %v6103_v27 = vor.u32 %v7512_v12, %v6100_v15  ;;  %3606 = vmatpush.bf16.msrb.mxu3 %v6935_v22 }
  0xd7   :  { %v6356_v17 = vld [vmem:[#allocation6 + $0xb60] sm:$0xf0] }
  0xd8   :  { %v7648_v23 = vld [vmem:[#allocation6 + $0xd84] sm:$0xf]  ;;  %v6359_v28 = vor.u32 %v7576_v16, %v6356_v17  ;;  %3569 = vmatpush.bf16.msrb.mxu0 %v6103_v27 }
  0xd9   :  { %v6644_v24 = vld [vmem:[#allocation6 + $0xda0] sm:$0xf0] }
  0xda   :  { %v7712_v25 = vld [vmem:[#allocation6 + $0xf84] sm:$0xf]  ;;  %v6647_v36 = vor.u32 %v7648_v23, %v6644_v24  ;;  %3582 = vmatpush.bf16.msrb.mxu1 %v6359_v28 }
  0xdb   :  { %v6900_v26 = vld [vmem:[#allocation6 + $0xfa0] sm:$0xf0] }
  0xdc   :  { %v7504_v29 = vld [vmem:[#allocation6 + $0x904] sm:$0xf]  ;;  %v6903_v37 = vor.u32 %v7712_v25, %v6900_v26  ;;  %3594 = vmatpush.bf16.msrb.mxu2 %v6647_v36  ;;  %v5146_v25 = vld [vmem:[#allocation6 + $0x1c8] sm:$0xf] }
  0xdd   :  { %v6068_v33 = vld [vmem:[#allocation6 + $0x920] sm:$0xf0]  ;;  %v7277_v26 = vld [vmem:[#allocation6 + $0x1e4] sm:$0xf0] }
  0xde   :  { %v7568_v34 = vld [vmem:[#allocation6 + $0xb04] sm:$0xf]  ;;  %v6071_v41 = vor.u32 %v7504_v29, %v6068_v33  ;;  %3607 = vmatpush.bf16.msrb.mxu3 %v6903_v37  ;;  %v5402_v29 = vld [vmem:[#allocation6 + $0x3c8] sm:$0xf] }
  0xdf   :  { %v6324_v35 = vld [vmem:[#allocation6 + $0xb20] sm:$0xf0]  ;;  %v7341_v33 = vld [vmem:[#allocation6 + $0x3e4] sm:$0xf0] }
  0xe0   :  { %v7640_v38 = vld [vmem:[#allocation6 + $0xd44] sm:$0xf]  ;;  %v6327_v42 = vor.u32 %v7568_v34, %v6324_v35  ;;  %3570 = vmatpush.bf16.msrb.mxu0 %v6071_v41  ;;  %v5114_v41 = vld [vmem:[#allocation6 + $0x188] sm:$0xf] }
  0xe1   :  { %v6612_v39 = vld [vmem:[#allocation6 + $0xd60] sm:$0xf0] }
  0xe2   :  { %v7704_v40 = vld [vmem:[#allocation6 + $0xf44] sm:$0xf]  ;;  %v6615_v47 = vor.u32 %v7640_v38, %v6612_v39  ;;  %3583 = vmatpush.bf16.msrb.mxu1 %v6327_v42  ;;  %v7269_v42 = vld [vmem:[#allocation6 + $0x1a4] sm:$0xf0] }
  0xe3   :  { %v6868_v18 = vld [vmem:[#allocation6 + $0xf60] sm:$0xf0] }
  0xe4   :  { %v7496_v43 = vld [vmem:[#allocation6 + $0x8c4] sm:$0xf]  ;;  %v6871_v48 = vor.u32 %v7704_v40, %v6868_v18  ;;  %3595 = vmatpush.bf16.msrb.mxu2 %v6615_v47  ;;  %v5147_v40 = vor.u32 %v7277_v26, %v5146_v25  ;;  %v5403_v18 = vor.u32 %v7341_v33, %v5402_v29  ;;  %v5018_v25 = vld [vmem:[#allocation6 + $0xc8] sm:$0xf] }
  0xe5   :  { %v6036_v44 = vld [vmem:[#allocation6 + $0x8e0] sm:$0xf0]  ;;  %v7245_v26 = vld [vmem:[#allocation6 + $0xe4] sm:$0xf0] }
  0xe6   :  { %v7560_v45 = vld [vmem:[#allocation6 + $0xac4] sm:$0xf]  ;;  %v6039_v55 = vor.u32 %v7496_v43, %v6036_v44  ;;  %3608 = vmatpush.bf16.msrb.mxu3 %v6871_v48  ;;  %v5370_v43 = vld [vmem:[#allocation6 + $0x388] sm:$0xf] }
  0xe7   :  { %v6292_v46 = vld [vmem:[#allocation6 + $0xae0] sm:$0xf0]  ;;  %v5274_v29 = vld [vmem:[#allocation6 + $0x2c8] sm:$0xf] }
  0xe8   :  { %v7632_v51 = vld [vmem:[#allocation6 + $0xd04] sm:$0xf]  ;;  %v6295_v56 = vor.u32 %v7560_v45, %v6292_v46  ;;  %3571 = vmatpush.bf16.msrb.mxu0 %v6039_v55  ;;  %v7333_v46 = vld [vmem:[#allocation6 + $0x3a4] sm:$0xf0] }
  0xe9   :  { %v6580_v52 = vld [vmem:[#allocation6 + $0xd20] sm:$0xf0]  ;;  %v5914_v55 = vld [vmem:[#allocation6 + $0x7c8] sm:$0xf] }
  0xea   :  { %v7696_v53 = vld [vmem:[#allocation6 + $0xf04] sm:$0xf]  ;;  %v6583_v63 = vor.u32 %v7632_v51, %v6580_v52  ;;  %3584 = vmatpush.bf16.msrb.mxu1 %v6295_v56  ;;  %v7469_v56 = vld [vmem:[#allocation6 + $0x7e4] sm:$0xf0] }
  0xeb   :  { %v6836_v54 = vld [vmem:[#allocation6 + $0xf20] sm:$0xf0]  ;;  %v7309_v33 = vld [vmem:[#allocation6 + $0x2e4] sm:$0xf0] }
  0xec   :  { %v7488_v57 = vld [vmem:[#allocation6 + $0x884] sm:$0xf]  ;;  %v6839_v0 = vor.u32 %v7696_v53, %v6836_v54  ;;  %3596 = vmatpush.bf16.msrb.mxu2 %v6583_v63  ;;  %v5658_v53 = vld [vmem:[#allocation6 + $0x5c8] sm:$0xf] }
  0xed   :  { %v6004_v58 = vld [vmem:[#allocation6 + $0x8a0] sm:$0xf0]  ;;  %v7405_v54 = vld [vmem:[#allocation6 + $0x5e4] sm:$0xf0] }
  0xee   :  { %v7552_v59 = vld [vmem:[#allocation6 + $0xa84] sm:$0xf]  ;;  %v6007_v4 = vor.u32 %v7488_v57, %v6004_v58  ;;  %3609 = vmatpush.bf16.msrb.mxu3 %v6839_v0  ;;  %v5115_v57 = vor.u32 %v7269_v42, %v5114_v41  ;;  %v5371_v58 = vor.u32 %v7333_v46, %v5370_v43  ;;  %v5082_v63 = vld [vmem:[#allocation6 + $0x148] sm:$0xf] }
  0xef   :  { %v6260_v62 = vld [vmem:[#allocation6 + $0xaa0] sm:$0xf0]  ;;  %v7261_v0 = vld [vmem:[#allocation6 + $0x164] sm:$0xf0] }
  0xf0   :  { %v7624_v1 = vld [vmem:[#allocation6 + $0xcc4] sm:$0xf]  ;;  %v6263_v5 = vor.u32 %v7552_v59, %v6260_v62  ;;  %3572 = vmatpush.bf16.msrb.mxu0 %v6007_v4  ;;  %v5626_v4 = vld [vmem:[#allocation6 + $0x588] sm:$0xf] }
  0xf1   :  { %v6548_v30 = vld [vmem:[#allocation6 + $0xce0] sm:$0xf0]  ;;  %v5242_v43 = vld [vmem:[#allocation6 + $0x288] sm:$0xf] }
  0xf2   :  { %v7688_v2 = vld [vmem:[#allocation6 + $0xec4] sm:$0xf]  ;;  %v6551_v10 = vor.u32 %v7624_v1, %v6548_v30  ;;  %3585 = vmatpush.bf16.msrb.mxu1 %v6263_v5  ;;  %v5659_v1 = vor.u32 %v7405_v54, %v5658_v53  ;;  %v5915_v30 = vor.u32 %v7469_v56, %v5914_v55  ;;  %v7397_v5 = vld [vmem:[#allocation6 + $0x5a4] sm:$0xf0] }
  0xf3   :  { %v6804_v3 = vld [vmem:[#allocation6 + $0xee0] sm:$0xf0]  ;;  %v7373_v46 = vld [vmem:[#allocation6 + $0x4e4] sm:$0xf0] }
  0xf4   :  { %v7480_v6 = vld [vmem:[#allocation6 + $0x844] sm:$0xf]  ;;  %v6807_v11 = vor.u32 %v7688_v2, %v6804_v3  ;;  %3597 = vmatpush.bf16.msrb.mxu2 %v6551_v10  ;;  %v5338_v2 = vld [vmem:[#allocation6 + $0x348] sm:$0xf] }
  0xf5   :  { %v5972_v7 = vld [vmem:[#allocation6 + $0x860] sm:$0xf0]  ;;  %v7325_v3 = vld [vmem:[#allocation6 + $0x364] sm:$0xf0] }
  0xf6   :  { %v7544_v8 = vld [vmem:[#allocation6 + $0xa44] sm:$0xf]  ;;  %v5975_v16 = vor.u32 %v7480_v6, %v5972_v7  ;;  %3610 = vmatpush.bf16.msrb.mxu3 %v6807_v11  ;;  %v5882_v6 = vld [vmem:[#allocation6 + $0x788] sm:$0xf] }
  0xf7   :  { %v6228_v9 = vld [vmem:[#allocation6 + $0xa60] sm:$0xf0]  ;;  %v7461_v7 = vld [vmem:[#allocation6 + $0x7a4] sm:$0xf0] }
  0xf8   :  { %v7616_v12 = vld [vmem:[#allocation6 + $0xc84] sm:$0xf]  ;;  %v6231_v17 = vor.u32 %v7544_v8, %v6228_v9  ;;  %3573 = vmatpush.bf16.msrb.mxu0 %v5975_v16  ;;  %v5083_v8 = vor.u32 %v7261_v0, %v5082_v63  ;;  %v5339_v9 = vor.u32 %v7325_v3, %v5338_v2  ;;  %v5050_v10 = vld [vmem:[#allocation6 + $0x108] sm:$0xf] }
  0xf9   :  { %v6516_v13 = vld [vmem:[#allocation6 + $0xca0] sm:$0xf0]  ;;  %v7253_v11 = vld [vmem:[#allocation6 + $0x124] sm:$0xf0] }
  0xfa   :  { %v7680_v14 = vld [vmem:[#allocation6 + $0xe84] sm:$0xf]  ;;  %v6519_v27 = vor.u32 %v7616_v12, %v6516_v13  ;;  %3586 = vmatpush.bf16.msrb.mxu1 %v6231_v17  ;;  %v5627_v12 = vor.u32 %v7397_v5, %v5626_v4  ;;  %v5883_v13 = vor.u32 %v7461_v7, %v5882_v6  ;;  %v5594_v16 = vld [vmem:[#allocation6 + $0x548] sm:$0xf] }
  0xfb   :  { %v6772_v15 = vld [vmem:[#allocation6 + $0xea0] sm:$0xf0]  ;;  %v7389_v17 = vld [vmem:[#allocation6 + $0x564] sm:$0xf0] }
  0xfc   :  { %v7472_v21 = vld [vmem:[#allocation6 + $0x804] sm:$0xf]  ;;  %v6775_v28 = vor.u32 %v7680_v14, %v6772_v15  ;;  %3598 = vmatpush.bf16.msrb.mxu2 %v6519_v27  ;;  %v5306_v14 = vld [vmem:[#allocation6 + $0x308] sm:$0xf]  ;;  %v5595_v27 = vor.u32 %v7389_v17, %v5594_v16 }
  0xfd   :  { %v5940_v22 = vld [vmem:[#allocation6 + $0x820] sm:$0xf0]  ;;  %v7317_v15 = vld [vmem:[#allocation6 + $0x324] sm:$0xf0] }
  0xfe   :  { %v7536_v23 = vld [vmem:[#allocation6 + $0xa04] sm:$0xf]  ;;  %v5943_v38 = vor.u32 %v7472_v21, %v5940_v22  ;;  %3611 = vmatpush.bf16.msrb.mxu3 %v6775_v28  ;;  %v5850_v21 = vld [vmem:[#allocation6 + $0x748] sm:$0xf] }
  0xff   :  { %v6196_v24 = vld [vmem:[#allocation6 + $0xa20] sm:$0xf0]  ;;  %v7453_v22 = vld [vmem:[#allocation6 + $0x764] sm:$0xf0] }
 0x100   :  { %v7608_v34 = vld [vmem:[#allocation6 + $0xc44] sm:$0xf]  ;;  %v6199_v39 = vor.u32 %v7536_v23, %v6196_v24  ;;  %3574 = vmatpush.bf16.msrb.mxu0 %v5943_v38  ;;  %v5051_v23 = vor.u32 %v7253_v11, %v5050_v10  ;;  %v5307_v24 = vor.u32 %v7317_v15, %v5306_v14  ;;  %v5851_v28 = vor.u32 %v7453_v22, %v5850_v21  ;;  %v4954_v53 = vld [vmem:[#allocation6 + $0x48] sm:$0xf] }
 0x101   :  { %v6484_v35 = vld [vmem:[#allocation6 + $0xc60] sm:$0xf0]  ;;  %v5019_v38 = vor.u32 %v7245_v26, %v5018_v25  ;;  %v7229_v54 = vld [vmem:[#allocation6 + $0x64] sm:$0xf0] }
 0x102   :  { %v7672_v36 = vld [vmem:[#allocation6 + $0xe44] sm:$0xf]  ;;  %v6487_v44 = vor.u32 %v7608_v34, %v6484_v35  ;;  %3587 = vmatpush.bf16.msrb.mxu1 %v6199_v39  ;;  %v5562_v34 = vld [vmem:[#allocation6 + $0x508] sm:$0xf]  ;;  %v5275_v39 = vor.u32 %v7309_v33, %v5274_v29 }
 0x103   :  { %v6740_v37 = vld [vmem:[#allocation6 + $0xe60] sm:$0xf0]  ;;  %3575 = vmatmul.bf16.vlgmr.msrb.gmra.mxu0 %v8076_v60  ;;  %v7381_v35 = vld [vmem:[#allocation6 + $0x524] sm:$0xf0] }
 0x104   :  { %v6743_v45 = vor.u32 %v7672_v36, %v6740_v37  ;;  %v7600_v47 = vld [vmem:[#allocation6 + $0xc04] sm:$0xf]  ;;  %3619 = vmatpush.bf16.msra.mxu0 %v5147_v40  ;;  %3599 = vmatpush.bf16.msrb.mxu2 %v6487_v44  ;;  %v5818_v36 = vld [vmem:[#allocation6 + $0x708] sm:$0xf]  ;;  %v5563_v41 = vor.u32 %v7381_v35, %v5562_v34 }
 0x105   :  { %v6452_v48 = vld [vmem:[#allocation6 + $0xc20] sm:$0xf0]  ;;  %3588 = vmatmul.bf16.vlgmr.msrb.gmra.mxu1 %v8078_v61  ;;  %v7445_v37 = vld [vmem:[#allocation6 + $0x724] sm:$0xf0] }
 0x106   :  { %v7664_v51 = vld [vmem:[#allocation6 + $0xe04] sm:$0xf]  ;;  %3632 = vmatpush.bf16.msra.mxu1 %v5403_v18  ;;  %3612 = vmatpush.bf16.msrb.mxu3 %v6743_v45  ;;  %v6455_v59 = vor.u32 %v7600_v47, %v6452_v48  ;;  %v4986_v40 = vld [vmem:[#allocation6 + $0x88] sm:$0xf]  ;;  %v5819_v42 = vor.u32 %v7445_v37, %v5818_v36 }
 0x107   :  { %v6708_v52 = vld [vmem:[#allocation6 + $0xe20] sm:$0xf0]  ;;  %v7237_v18 = vld [vmem:[#allocation6 + $0xa4] sm:$0xf0] }
 0x108   :  { %v6711_v62 = vor.u32 %v7664_v51, %v6708_v52  ;;  %3620 = vmatpush.bf16.msra.mxu0 %v5115_v57  ;;  %3600 = vmatpush.bf16.msrb.mxu2 %v6455_v59  ;;  %v7301_v44 = vld [vmem:[#allocation6 + $0x2a4] sm:$0xf0]  ;;  %v4987_v51 = vor.u32 %v7237_v18, %v4986_v40 }
 0x109   :  { %v5530_v45 = vld [vmem:[#allocation6 + $0x4c8] sm:$0xf]  ;;  %v5243_v52 = vor.u32 %v7301_v44, %v5242_v43 }
 0x10a   :  { %3633 = vmatpush.bf16.msra.mxu1 %v5371_v58  ;;  %3613 = vmatpush.bf16.msrb.mxu3 %v6711_v62  ;;  %v5786_v47 = vld [vmem:[#allocation6 + $0x6c8] sm:$0xf]  ;;  %v5531_v55 = vor.u32 %v7373_v46, %v5530_v45 }
 0x10b   :  { %3601 = vmatmul.bf16.vlgmr.msrb.gmra.mxu2 %v8082_v31  ;;  %v7437_v48 = vld [vmem:[#allocation6 + $0x6e4] sm:$0xf0] }
 0x10c   :  { %3645 = vmatpush.bf16.msra.mxu2 %v5659_v1  ;;  %3621 = vmatpush.bf16.msra.mxu0 %v5083_v8  ;;  %v5787_v56 = vor.u32 %v7437_v48, %v5786_v47  ;;  %v5210_v57 = vld [vmem:[#allocation6 + $0x248] sm:$0xf]  ;;  %v4955_v1 = vor.u32 %v7229_v54, %v4954_v53 }
 0x10d   :  { %3614 = vmatmul.bf16.vlgmr.msrb.gmra.mxu3 %v8084_v32  ;;  %v7293_v58 = vld [vmem:[#allocation6 + $0x264] sm:$0xf0] }
 0x10e   :  { %3658 = vmatpush.bf16.msra.mxu3 %v5915_v30  ;;  %3634 = vmatpush.bf16.msra.mxu1 %v5339_v9  ;;  %v5498_v59 = vld [vmem:[#allocation6 + $0x488] sm:$0xf]  ;;  %v5211_v30 = vor.u32 %v7293_v58, %v5210_v57 }
 0x10f   :  { %v7365_v62 = vld [vmem:[#allocation6 + $0x4a4] sm:$0xf0] }
 0x110   :  { %3646 = vmatpush.bf16.msra.mxu2 %v5627_v12  ;;  %3622 = vmatpush.bf16.msra.mxu0 %v5051_v23  ;;  %v5754_v63 = vld [vmem:[#allocation6 + $0x688] sm:$0xf]  ;;  %v5499_v5 = vor.u32 %v7365_v62, %v5498_v59 }
 0x111   :  { %v7429_v0 = vld [vmem:[#allocation6 + $0x6a4] sm:$0xf0] }
 0x112   :  { %3659 = vmatpush.bf16.msra.mxu3 %v5883_v13  ;;  %3635 = vmatpush.bf16.msra.mxu1 %v5307_v24  ;;  %v4922_v2 = vld [vmem:[#allocation6 + $0x8] sm:$0xf]  ;;  %v5755_v6 = vor.u32 %v7429_v0, %v5754_v63 }
 0x113   :  { %v7221_v3 = vld [vmem:[#allocation6 + $0x24] sm:$0xf0] }
 0x114   :  { %3647 = vmatpush.bf16.msra.mxu2 %v5595_v27  ;;  %3623 = vmatpush.bf16.msra.mxu0 %v5019_v38  ;;  %v5178_v4 = vld [vmem:[#allocation6 + $0x208] sm:$0xf]  ;;  %v4923_v16 = vor.u32 %v7221_v3, %v4922_v2 }
 0x115   :  { %v7285_v7 = vld [vmem:[#allocation6 + $0x224] sm:$0xf0] }
 0x116   :  { %3660 = vmatpush.bf16.msra.mxu3 %v5851_v28  ;;  %3636 = vmatpush.bf16.msra.mxu1 %v5275_v39  ;;  %v6170_v8 = vld [vmem:[#allocation6 + $0x9c8] sm:$0xf]  ;;  %v5179_v17 = vor.u32 %v7285_v7, %v5178_v4 }
 0x117   :  { %v7533_v9 = vld [vmem:[#allocation6 + $0x9e4] sm:$0xf0] }
 0x118   :  { %3648 = vmatpush.bf16.msra.mxu2 %v5563_v41  ;;  %3624 = vmatpush.bf16.msra.mxu0 %v4987_v51  ;;  %v6426_v10 = vld [vmem:[#allocation6 + $0xbc8] sm:$0xf]  ;;  %v6171_v21 = vor.u32 %v7533_v9, %v6170_v8 }
 0x119   :  { %v7597_v11 = vld [vmem:[#allocation6 + $0xbe4] sm:$0xf0] }
 0x11a   :  { %3661 = vmatpush.bf16.msra.mxu3 %v5819_v42  ;;  %3637 = vmatpush.bf16.msra.mxu1 %v5243_v52  ;;  %v5466_v12 = vld [vmem:[#allocation6 + $0x448] sm:$0xf]  ;;  %v6427_v22 = vor.u32 %v7597_v11, %v6426_v10 }
 0x11b   :  { %v7357_v13 = vld [vmem:[#allocation6 + $0x464] sm:$0xf0] }
 0x11c   :  { %3649 = vmatpush.bf16.msra.mxu2 %v5531_v55  ;;  %v5722_v14 = vld [vmem:[#allocation6 + $0x648] sm:$0xf]  ;;  %3625 = vmatpush.bf16.msra.mxu0 %v4955_v1  ;;  %v5467_v26 = vor.u32 %v7357_v13, %v5466_v12 }
 0x11d   :  { %v7421_v15 = vld [vmem:[#allocation6 + $0x664] sm:$0xf0] }
 0x11e   :  { %3662 = vmatpush.bf16.msra.mxu3 %v5787_v56  ;;  %3638 = vmatpush.bf16.msra.mxu1 %v5211_v30  ;;  %v6138_v23 = vld [vmem:[#allocation6 + $0x988] sm:$0xf]  ;;  %v5723_v27 = vor.u32 %v7421_v15, %v5722_v14 }
 0x11f   :  { %v7525_v24 = vld [vmem:[#allocation6 + $0x9a4] sm:$0xf0] }
 0x120   :  { %3650 = vmatpush.bf16.msra.mxu2 %v5499_v5  ;;  %v6394_v25 = vld [vmem:[#allocation6 + $0xb88] sm:$0xf]  ;;  %3626 = vmatpush.bf16.msra.mxu0 %v4923_v16  ;;  %v6139_v40 = vor.u32 %v7525_v24, %v6138_v23 }
 0x121   :  { %v7589_v28 = vld [vmem:[#allocation6 + $0xba4] sm:$0xf0] }
 0x122   :  { %3663 = vmatpush.bf16.msra.mxu3 %v5755_v6  ;;  %v5434_v29 = vld [vmem:[#allocation6 + $0x408] sm:$0xf]  ;;  %3639 = vmatpush.bf16.msra.mxu1 %v5179_v17  ;;  %v6395_v18 = vor.u32 %v7589_v28, %v6394_v25 }
 0x123   :  { %v7349_v33 = vld [vmem:[#allocation6 + $0x424] sm:$0xf0]  ;;  %3627 = vmatmul.bf16.vlgmr.msra.gmra.mxu0 %v8060_v49 }
 0x124   :  { %v5690_v34 = vld [vmem:[#allocation6 + $0x608] sm:$0xf]  ;;  %3671 = vmatpush.bf16.msrb.mxu0 %v6171_v21  ;;  %3651 = vmatpush.bf16.msra.mxu2 %v5467_v26  ;;  %v5435_v41 = vor.u32 %v7349_v33, %v5434_v29 }
 0x125   :  { %v7413_v35 = vld [vmem:[#allocation6 + $0x624] sm:$0xf0]  ;;  %3640 = vmatmul.bf16.vlgmr.msra.gmra.mxu1 %v8062_v50 }
 0x126   :  { %v6682_v36 = vld [vmem:[#allocation6 + $0xdc8] sm:$0xf]  ;;  %3684 = vmatpush.bf16.msrb.mxu1 %v6427_v22  ;;  %3664 = vmatpush.bf16.msra.mxu3 %v5723_v27  ;;  %v5691_v42 = vor.u32 %v7413_v35, %v5690_v34 }
 0x127   :  { %v7661_v37 = vld [vmem:[#allocation6 + $0xde4] sm:$0xf0] }
 0x128   :  { %v6938_v38 = vld [vmem:[#allocation6 + $0xfc8] sm:$0xf]  ;;  %v6683_v45 = vor.u32 %v7661_v37, %v6682_v36  ;;  %3672 = vmatpush.bf16.msrb.mxu0 %v6139_v40  ;;  %3652 = vmatpush.bf16.msra.mxu2 %v5435_v41 }
 0x129   :  { %v7725_v39 = vld [vmem:[#allocation6 + $0xfe4] sm:$0xf0] }
 0x12a   :  { %v6106_v43 = vld [vmem:[#allocation6 + $0x948] sm:$0xf]  ;;  %v6939_v46 = vor.u32 %v7725_v39, %v6938_v38  ;;  %3685 = vmatpush.bf16.msrb.mxu1 %v6395_v18  ;;  %3665 = vmatpush.bf16.msra.mxu3 %v5691_v42 }
 0x12b   :  { %v7517_v44 = vld [vmem:[#allocation6 + $0x964] sm:$0xf0]  ;;  %3653 = vmatmul.bf16.vlgmr.msra.gmra.mxu2 %v8068_v19 }
 0x12c   :  { %v6362_v47 = vld [vmem:[#allocation6 + $0xb48] sm:$0xf]  ;;  %v6107_v55 = vor.u32 %v7517_v44, %v6106_v43  ;;  %3697 = vmatpush.bf16.msrb.mxu2 %v6683_v45 }
 0x12d   :  { %v7581_v48 = vld [vmem:[#allocation6 + $0xb64] sm:$0xf0]  ;;  %3666 = vmatmul.bf16.vlgmr.msra.gmra.mxu3 %v8070_v20 }
 0x12e   :  { %v6650_v51 = vld [vmem:[#allocation6 + $0xd88] sm:$0xf]  ;;  %v6363_v56 = vor.u32 %v7581_v48, %v6362_v47  ;;  %3710 = vmatpush.bf16.msrb.mxu3 %v6939_v46  ;;  %3673 = vmatpush.bf16.msrb.mxu0 %v6107_v55  ;;  %v7273_v55 = vld [vmem:[#allocation6 + $0x1cc] sm:$0xf] }
 0x12f   :  { %v7653_v52 = vld [vmem:[#allocation6 + $0xda4] sm:$0xf0] }
 0x130   :  { %v6906_v53 = vld [vmem:[#allocation6 + $0xf88] sm:$0xf]  ;;  %v6651_v59 = vor.u32 %v7653_v52, %v6650_v51  ;;  %3686 = vmatpush.bf16.msrb.mxu1 %v6363_v56  ;;  %v5148_v56 = vld [vmem:[#allocation6 + $0x1e8] sm:$0xf0] }
 0x131   :  { %v7717_v54 = vld [vmem:[#allocation6 + $0xfa4] sm:$0xf0] }
 0x132   :  { %v6074_v57 = vld [vmem:[#allocation6 + $0x908] sm:$0xf]  ;;  %v6907_v62 = vor.u32 %v7717_v54, %v6906_v53  ;;  %3698 = vmatpush.bf16.msrb.mxu2 %v6651_v59 }
 0x133   :  { %v7509_v58 = vld [vmem:[#allocation6 + $0x924] sm:$0xf0] }
 0x134   :  { %v6330_v63 = vld [vmem:[#allocation6 + $0xb08] sm:$0xf]  ;;  %v6075_v4 = vor.u32 %v7509_v58, %v6074_v57  ;;  %3711 = vmatpush.bf16.msrb.mxu3 %v6907_v62  ;;  %v7337_v57 = vld [vmem:[#allocation6 + $0x3cc] sm:$0xf] }
 0x135   :  { %v7573_v0 = vld [vmem:[#allocation6 + $0xb24] sm:$0xf0]  ;;  %v5404_v58 = vld [vmem:[#allocation6 + $0x3e8] sm:$0xf0] }
 0x136   :  { %v6618_v1 = vld [vmem:[#allocation6 + $0xd48] sm:$0xf]  ;;  %v6331_v5 = vor.u32 %v7573_v0, %v6330_v63  ;;  %3674 = vmatpush.bf16.msrb.mxu0 %v6075_v4  ;;  %v5407_v4 = vor.u32 %v7337_v57, %v5404_v58 }
 0x137   :  { %v7645_v30 = vld [vmem:[#allocation6 + $0xd64] sm:$0xf0] }
 0x138   :  { %v6874_v2 = vld [vmem:[#allocation6 + $0xf48] sm:$0xf]  ;;  %v6619_v8 = vor.u32 %v7645_v30, %v6618_v1  ;;  %3687 = vmatpush.bf16.msrb.mxu1 %v6331_v5  ;;  %v5116_v5 = vld [vmem:[#allocation6 + $0x1a8] sm:$0xf0] }
 0x139   :  { %v7709_v3 = vld [vmem:[#allocation6 + $0xf64] sm:$0xf0] }
 0x13a   :  { %v6042_v6 = vld [vmem:[#allocation6 + $0x8c8] sm:$0xf]  ;;  %v6875_v9 = vor.u32 %v7709_v3, %v6874_v2  ;;  %3699 = vmatpush.bf16.msrb.mxu2 %v6619_v8  ;;  %v7265_v2 = vld [vmem:[#allocation6 + $0x18c] sm:$0xf]  ;;  %v5151_v3 = vor.u32 %v7273_v55, %v5148_v56 }
 0x13b   :  { %v7501_v7 = vld [vmem:[#allocation6 + $0x8e4] sm:$0xf0]  ;;  %v5852_v55 = vld [vmem:[#allocation6 + $0x768] sm:$0xf0] }
 0x13c   :  { %v6298_v10 = vld [vmem:[#allocation6 + $0xac8] sm:$0xf]  ;;  %v6043_v16 = vor.u32 %v7501_v7, %v6042_v6  ;;  %3712 = vmatpush.bf16.msrb.mxu3 %v6875_v9  ;;  %v7329_v6 = vld [vmem:[#allocation6 + $0x38c] sm:$0xf] }
 0x13d   :  { %v7565_v11 = vld [vmem:[#allocation6 + $0xae4] sm:$0xf0]  ;;  %v5372_v7 = vld [vmem:[#allocation6 + $0x3a8] sm:$0xf0] }
 0x13e   :  { %v6586_v12 = vld [vmem:[#allocation6 + $0xd08] sm:$0xf]  ;;  %v6299_v17 = vor.u32 %v7565_v11, %v6298_v10  ;;  %3675 = vmatpush.bf16.msrb.mxu0 %v6043_v16  ;;  %v7465_v16 = vld [vmem:[#allocation6 + $0x7cc] sm:$0xf] }
 0x13f   :  { %v7637_v13 = vld [vmem:[#allocation6 + $0xd24] sm:$0xf0] }
 0x140   :  { %v6842_v14 = vld [vmem:[#allocation6 + $0xf08] sm:$0xf]  ;;  %v6587_v23 = vor.u32 %v7637_v13, %v6586_v12  ;;  %3688 = vmatpush.bf16.msrb.mxu1 %v6299_v17  ;;  %v5916_v17 = vld [vmem:[#allocation6 + $0x7e8] sm:$0xf0] }
 0x141   :  { %v7701_v15 = vld [vmem:[#allocation6 + $0xf24] sm:$0xf0] }
 0x142   :  { %v6010_v21 = vld [vmem:[#allocation6 + $0x888] sm:$0xf]  ;;  %v6843_v24 = vor.u32 %v7701_v15, %v6842_v14  ;;  %3700 = vmatpush.bf16.msrb.mxu2 %v6587_v23  ;;  %v7401_v14 = vld [vmem:[#allocation6 + $0x5cc] sm:$0xf]  ;;  %v5375_v23 = vor.u32 %v7329_v6, %v5372_v7 }
 0x143   :  { %v7493_v22 = vld [vmem:[#allocation6 + $0x8a4] sm:$0xf0]  ;;  %v5660_v15 = vld [vmem:[#allocation6 + $0x5e8] sm:$0xf0] }
 0x144   :  { %v6266_v25 = vld [vmem:[#allocation6 + $0xa88] sm:$0xf]  ;;  %v6011_v34 = vor.u32 %v7493_v22, %v6010_v21  ;;  %3713 = vmatpush.bf16.msrb.mxu3 %v6843_v24  ;;  %v8100_v21 = vld [vmem:[#allocation7] sm:$0xff]  ;;  %v5119_v22 = vor.u32 %v7265_v2, %v5116_v5  ;;  %v7377_v2 = vld [vmem:[#allocation6 + $0x50c] sm:$0xf] }
 0x145   :  { %v7557_v26 = vld [vmem:[#allocation6 + $0xaa4] sm:$0xf0]  ;;  %v5820_v5 = vld [vmem:[#allocation6 + $0x728] sm:$0xf0] }
 0x146   :  { %v6554_v27 = vld [vmem:[#allocation6 + $0xcc8] sm:$0xf]  ;;  %v6267_v35 = vor.u32 %v7557_v26, %v6266_v25  ;;  %3676 = vmatpush.bf16.msrb.mxu0 %v6011_v34  ;;  %v7257_v26 = vld [vmem:[#allocation6 + $0x14c] sm:$0xf] }
 0x147   :  { %v7629_v28 = vld [vmem:[#allocation6 + $0xce4] sm:$0xf0]  ;;  %v5340_v34 = vld [vmem:[#allocation6 + $0x368] sm:$0xf0] }
 0x148   :  { %v6810_v29 = vld [vmem:[#allocation6 + $0xec8] sm:$0xf]  ;;  %v6555_v38 = vor.u32 %v7629_v28, %v6554_v27  ;;  %3689 = vmatpush.bf16.msrb.mxu1 %v6267_v35  ;;  %v5084_v27 = vld [vmem:[#allocation6 + $0x168] sm:$0xf0]  ;;  %v835_v35 = vperm.slane %v8100_v21, 0 }
 0x149   :  { %v7693_v33 = vld [vmem:[#allocation6 + $0xee4] sm:$0xf0]  ;;  %v7321_v28 = vld [vmem:[#allocation6 + $0x34c] sm:$0xf] }
 0x14a   :  { %v5978_v36 = vld [vmem:[#allocation6 + $0x848] sm:$0xf]  ;;  %v6811_v39 = vor.u32 %v7693_v33, %v6810_v29  ;;  %3701 = vmatpush.bf16.msrb.mxu2 %v6555_v38  ;;  %v5663_v29 = vor.u32 %v7401_v14, %v5660_v15  ;;  %v5919_v33 = vor.u32 %v7465_v16, %v5916_v17  ;;  %v7457_v38 = vld [vmem:[#allocation6 + $0x78c] sm:$0xf] }
 0x14b   :  { %v7485_v37 = vld [vmem:[#allocation6 + $0x864] sm:$0xf0]  ;;  %v7297_v14 = vld [vmem:[#allocation6 + $0x28c] sm:$0xf] }
 0x14c   :  { %v6234_v40 = vld [vmem:[#allocation6 + $0xa48] sm:$0xf]  ;;  %v5979_v45 = vor.u32 %v7485_v37, %v5978_v36  ;;  %3714 = vmatpush.bf16.msrb.mxu3 %v6811_v39  ;;  %v7393_v36 = vld [vmem:[#allocation6 + $0x58c] sm:$0xf] }
 0x14d   :  { %v7549_v18 = vld [vmem:[#allocation6 + $0xa64] sm:$0xf0]  ;;  %v5628_v37 = vld [vmem:[#allocation6 + $0x5a8] sm:$0xf0] }
 0x14e   :  { %v6522_v41 = vld [vmem:[#allocation6 + $0xc88] sm:$0xf]  ;;  %v6235_v46 = vor.u32 %v7549_v18, %v6234_v40  ;;  %3677 = vmatpush.bf16.msrb.mxu0 %v5979_v45  ;;  %v5884_v39 = vld [vmem:[#allocation6 + $0x7a8] sm:$0xf0]  ;;  %v5087_v40 = vor.u32 %v7257_v26, %v5084_v27  ;;  %v5343_v18 = vor.u32 %v7321_v28, %v5340_v34  ;;  %v3446_v28 = vpop.f32.mrf.mxu2 }
 0x14f   :  { %v7621_v42 = vld [vmem:[#allocation6 + $0xca4] sm:$0xf0]  ;;  %v5244_v15 = vld [vmem:[#allocation6 + $0x2a8] sm:$0xf0] }
 0x150   :  { %v6778_v43 = vld [vmem:[#allocation6 + $0xe88] sm:$0xf]  ;;  %v6523_v52 = vor.u32 %v7621_v42, %v6522_v41  ;;  %3690 = vmatpush.bf16.msrb.mxu1 %v6235_v46  ;;  %v3420_v41 = vpop.f32.mrf.mxu0  ;;  %v3433_v42 = vpop.f32.mrf.mxu1  ;;  %v5631_v46 = vor.u32 %v7393_v36, %v5628_v37  ;;  %v7369_v16 = vld [vmem:[#allocation6 + $0x4cc] sm:$0xf] }
 0x151   :  { %v7685_v44 = vld [vmem:[#allocation6 + $0xea4] sm:$0xf0]  ;;  %v3421_v45 = vadd.f32 %v3420_v41, %v835_v35  ;;  %v5532_v17 = vld [vmem:[#allocation6 + $0x4e8] sm:$0xf0] }
 0x152   :  { %v5946_v47 = vld [vmem:[#allocation6 + $0x808] sm:$0xf]  ;;  %v6779_v53 = vor.u32 %v7685_v44, %v6778_v43  ;;  %3702 = vmatpush.bf16.msrb.mxu2 %v6523_v52  ;;  %v7249_v43 = vld [vmem:[#allocation6 + $0x10c] sm:$0xf] }
 0x153   :  { %v7477_v48 = vld [vmem:[#allocation6 + $0x824] sm:$0xf0]  ;;  %v5052_v44 = vld [vmem:[#allocation6 + $0x128] sm:$0xf0]  ;;  %v3434_v56 = vadd.f32 %v3433_v42, %v3421_v45 }
 0x154   :  { %v6202_v51 = vld [vmem:[#allocation6 + $0xa08] sm:$0xf]  ;;  %v5947_v1 = vor.u32 %v7477_v48, %v5946_v47  ;;  %3715 = vmatpush.bf16.msrb.mxu3 %v6779_v53  ;;  %v5887_v47 = vor.u32 %v7457_v38, %v5884_v39  ;;  %v7313_v48 = vld [vmem:[#allocation6 + $0x30c] sm:$0xf]  ;;  %v5055_v57 = vor.u32 %v7249_v43, %v5052_v44 }
 0x155   :  { %v7541_v54 = vld [vmem:[#allocation6 + $0xa24] sm:$0xf0]  ;;  %v7385_v52 = vld [vmem:[#allocation6 + $0x54c] sm:$0xf]  ;;  %v3447_v38 = vadd.f32 %v3446_v28, %v3434_v56 }
 0x156   :  { %v6490_v59 = vld [vmem:[#allocation6 + $0xc48] sm:$0xf]  ;;  %v6203_v30 = vor.u32 %v7541_v54, %v6202_v51  ;;  %3678 = vmatpush.bf16.msrb.mxu0 %v5947_v1  ;;  %v5308_v51 = vld [vmem:[#allocation6 + $0x328] sm:$0xf0] }
 0x157   :  { %v7613_v62 = vld [vmem:[#allocation6 + $0xc64] sm:$0xf0]  ;;  %v5596_v53 = vld [vmem:[#allocation6 + $0x568] sm:$0xf0]  ;;  %v5311_v58 = vor.u32 %v7313_v48, %v5308_v51 }
 0x158   :  { %v6746_v63 = vld [vmem:[#allocation6 + $0xe48] sm:$0xf]  ;;  %v6491_v8 = vor.u32 %v7613_v62, %v6490_v59  ;;  %3691 = vmatpush.bf16.msrb.mxu1 %v6203_v30  ;;  %v7449_v54 = vld [vmem:[#allocation6 + $0x74c] sm:$0xf] }
 0x159   :  { %v7677_v0 = vld [vmem:[#allocation6 + $0xe64] sm:$0xf0]  ;;  %3679 = vmatmul.bf16.vlgmr.msrb.gmra.mxu0 %v8076_v60  ;;  %v7241_v59 = vld [vmem:[#allocation6 + $0xcc] sm:$0xf] }
 0x15a   :  { %v6747_v9 = vor.u32 %v7677_v0, %v6746_v63  ;;  %v6458_v10 = vld [vmem:[#allocation6 + $0xc08] sm:$0xf]  ;;  %3723 = vmatpush.bf16.msra.mxu0 %v5151_v3  ;;  %3703 = vmatpush.bf16.msrb.mxu2 %v6491_v8  ;;  %v5020_v62 = vld [vmem:[#allocation6 + $0xe8] sm:$0xf0]  ;;  %v5599_v63 = vor.u32 %v7385_v52, %v5596_v53  ;;  %v5855_v0 = vor.u32 %v7449_v54, %v5852_v55  ;;  %v3422_v8 = vpop.f32.mrf.mxu0 }
 0x15b   :  { %v7605_v11 = vld [vmem:[#allocation6 + $0xc24] sm:$0xf0]  ;;  %3692 = vmatmul.bf16.vlgmr.msrb.gmra.mxu1 %v8078_v61  ;;  %v7305_v1 = vld [vmem:[#allocation6 + $0x2cc] sm:$0xf]  ;;  %v5023_v6 = vor.u32 %v7241_v59, %v5020_v62 }
 0x15c   :  { %v6714_v12 = vld [vmem:[#allocation6 + $0xe08] sm:$0xf]  ;;  %3736 = vmatpush.bf16.msra.mxu1 %v5407_v4  ;;  %3716 = vmatpush.bf16.msrb.mxu3 %v6747_v9  ;;  %v6459_v24 = vor.u32 %v7605_v11, %v6458_v10  ;;  %v5276_v30 = vld [vmem:[#allocation6 + $0x2e8] sm:$0xf0]  ;;  %v3435_v9 = vpop.f32.mrf.mxu1 }
 0x15d   :  { %v7669_v13 = vld [vmem:[#allocation6 + $0xe24] sm:$0xf0]  ;;  %v5564_v3 = vld [vmem:[#allocation6 + $0x528] sm:$0xf0]  ;;  %v5279_v7 = vor.u32 %v7305_v1, %v5276_v30 }
 0x15e   :  { %v6715_v25 = vor.u32 %v7669_v13, %v6714_v12  ;;  %3724 = vmatpush.bf16.msra.mxu0 %v5119_v22  ;;  %3704 = vmatpush.bf16.msrb.mxu2 %v6459_v24  ;;  %v7441_v4 = vld [vmem:[#allocation6 + $0x70c] sm:$0xf]  ;;  %v5567_v12 = vor.u32 %v7377_v2, %v5564_v3  ;;  %v3448_v3 = vpop.f32.mrf.mxu2 }
 0x15f   :  { %v7233_v10 = vld [vmem:[#allocation6 + $0x8c] sm:$0xf]  ;;  %v5823_v13 = vor.u32 %v7441_v4, %v5820_v5 }
 0x160   :  { %3737 = vmatpush.bf16.msra.mxu1 %v5375_v23  ;;  %3717 = vmatpush.bf16.msrb.mxu3 %v6715_v25  ;;  %v4988_v11 = vld [vmem:[#allocation6 + $0xa8] sm:$0xf0]  ;;  %v5247_v25 = vor.u32 %v7297_v14, %v5244_v15 }
 0x161   :  { %3705 = vmatmul.bf16.vlgmr.msrb.gmra.mxu2 %v8082_v31  ;;  %v7433_v22 = vld [vmem:[#allocation6 + $0x6cc] sm:$0xf]  ;;  %v4991_v24 = vor.u32 %v7233_v10, %v4988_v11 }
 0x162   :  { %3749 = vmatpush.bf16.msra.mxu2 %v5663_v29  ;;  %3725 = vmatpush.bf16.msra.mxu0 %v5087_v40  ;;  %v5788_v23 = vld [vmem:[#allocation6 + $0x6e8] sm:$0xf0]  ;;  %v3459_v29 = vpop.f32.mrf.mxu3 }
 0x163   :  { %3718 = vmatmul.bf16.vlgmr.msrb.gmra.mxu3 %v8084_v32  ;;  %v7225_v26 = vld [vmem:[#allocation6 + $0x4c] sm:$0xf]  ;;  %v5791_v34 = vor.u32 %v7433_v22, %v5788_v23  ;;  %v3460_v41 = vadd.f32 %v3459_v29, %v3447_v38 }
 0x164   :  { %3762 = vmatpush.bf16.msra.mxu3 %v5919_v33  ;;  %3738 = vmatpush.bf16.msra.mxu1 %v5343_v18  ;;  %v4956_v27 = vld [vmem:[#allocation6 + $0x68] sm:$0xf0]  ;;  %v5535_v33 = vor.u32 %v7369_v16, %v5532_v17  ;;  %v3485_v48 = vpop.f32.mrf.mxu1 }
 0x165   :  { %v7289_v35 = vld [vmem:[#allocation6 + $0x24c] sm:$0xf]  ;;  %v4959_v42 = vor.u32 %v7225_v26, %v4956_v27 }
 0x166   :  { %3750 = vmatpush.bf16.msra.mxu2 %v5631_v46  ;;  %3726 = vmatpush.bf16.msra.mxu0 %v5055_v57  ;;  %v5212_v36 = vld [vmem:[#allocation6 + $0x268] sm:$0xf0] }
 0x167   :  { %v7361_v37 = vld [vmem:[#allocation6 + $0x48c] sm:$0xf]  ;;  %v5215_v43 = vor.u32 %v7289_v35, %v5212_v36 }
 0x168   :  { %3763 = vmatpush.bf16.msra.mxu3 %v5887_v47  ;;  %3739 = vmatpush.bf16.msra.mxu1 %v5311_v58  ;;  %v5500_v39 = vld [vmem:[#allocation6 + $0x4a8] sm:$0xf0]  ;;  %v3472_v47 = vpop.f32.mrf.mxu0 }
 0x169   :  { %v7425_v40 = vld [vmem:[#allocation6 + $0x68c] sm:$0xf]  ;;  %v5503_v51 = vor.u32 %v7361_v37, %v5500_v39  ;;  %v3473_v56 = vadd.f32 %v3472_v47, %v3460_v41 }
 0x16a   :  { %3751 = vmatpush.bf16.msra.mxu2 %v5599_v63  ;;  %3727 = vmatpush.bf16.msra.mxu0 %v5023_v6  ;;  %v5756_v18 = vld [vmem:[#allocation6 + $0x6a8] sm:$0xf0]  ;;  %v3461_v4 = vpop.f32.mrf.mxu3 }
 0x16b   :  { %v7217_v44 = vld [vmem:[#allocation6 + $0xc] sm:$0xf]  ;;  %v5759_v52 = vor.u32 %v7425_v40, %v5756_v18  ;;  %v3486_v1 = vadd.f32 %v3485_v48, %v3473_v56  ;;  %v836_v48 = vperm.slane %v8100_v21, 1 }
 0x16c   :  { %3764 = vmatpush.bf16.msra.mxu3 %v5855_v0  ;;  %3740 = vmatpush.bf16.msra.mxu1 %v5279_v7  ;;  %v4924_v45 = vld [vmem:[#allocation6 + $0x28] sm:$0xf0]  ;;  %v3487_v26 = vpop.f32.mrf.mxu1 }
 0x16d   :  { %v7281_v46 = vld [vmem:[#allocation6 + $0x20c] sm:$0xf]  ;;  %v4927_v30 = vor.u32 %v7217_v44, %v4924_v45 }
 0x16e   :  { %3752 = vmatpush.bf16.msra.mxu2 %v5567_v12  ;;  %3728 = vmatpush.bf16.msra.mxu0 %v4991_v24  ;;  %v5180_v53 = vld [vmem:[#allocation6 + $0x228] sm:$0xf0] }
 0x16f   :  { %v7529_v54 = vld [vmem:[#allocation6 + $0x9cc] sm:$0xf]  ;;  %v5183_v2 = vor.u32 %v7281_v46, %v5180_v53 }
 0x170   :  { %3765 = vmatpush.bf16.msra.mxu3 %v5823_v13  ;;  %3741 = vmatpush.bf16.msra.mxu1 %v5247_v25  ;;  %v6172_v55 = vld [vmem:[#allocation6 + $0x9e8] sm:$0xf0]  ;;  %v3474_v25 = vpop.f32.mrf.mxu0 }
 0x171   :  { %v7593_v57 = vld [vmem:[#allocation6 + $0xbcc] sm:$0xf]  ;;  %v6175_v5 = vor.u32 %v7529_v54, %v6172_v55 }
 0x172   :  { %3753 = vmatpush.bf16.msra.mxu2 %v5535_v33  ;;  %v6428_v58 = vld [vmem:[#allocation6 + $0xbe8] sm:$0xf0]  ;;  %3729 = vmatpush.bf16.msra.mxu0 %v4959_v42  ;;  %v3511_v44 = vpop.f32.mrf.mxu3 }
 0x173   :  { %v7353_v59 = vld [vmem:[#allocation6 + $0x44c] sm:$0xf]  ;;  %v6431_v6 = vor.u32 %v7593_v57, %v6428_v58 }
 0x174   :  { %3766 = vmatpush.bf16.msra.mxu3 %v5791_v34  ;;  %v5468_v62 = vld [vmem:[#allocation6 + $0x468] sm:$0xf0]  ;;  %3742 = vmatpush.bf16.msra.mxu1 %v5215_v43  ;;  %v3498_v43 = vpop.f32.mrf.mxu2 }
 0x175   :  { %v7417_v63 = vld [vmem:[#allocation6 + $0x64c] sm:$0xf]  ;;  %v5471_v10 = vor.u32 %v7353_v59, %v5468_v62  ;;  %v3499_v45 = vadd.f32 %v3498_v43, %v3486_v1  ;;  %v3537_v1 = vpop.f32.mrf.mxu1 }
 0x176   :  { %v5724_v0 = vld [vmem:[#allocation6 + $0x668] sm:$0xf0]  ;;  %3754 = vmatpush.bf16.msra.mxu2 %v5503_v51  ;;  %3730 = vmatpush.bf16.msra.mxu0 %v4927_v30 }
 0x177   :  { %v7521_v7 = vld [vmem:[#allocation6 + $0x98c] sm:$0xf]  ;;  %v5727_v11 = vor.u32 %v7417_v63, %v5724_v0  ;;  %v8110_v58 = vadd.f32 %v3511_v44, %v3499_v45 }
 0x178   :  { %3767 = vmatpush.bf16.msra.mxu3 %v5759_v52  ;;  %v6140_v8 = vld [vmem:[#allocation6 + $0x9a8] sm:$0xf0]  ;;  %3743 = vmatpush.bf16.msra.mxu1 %v5183_v2  ;;  %v3524_v0 = vpop.f32.mrf.mxu0 }
 0x179   :  { %v7585_v9 = vld [vmem:[#allocation6 + $0xb8c] sm:$0xf]  ;;  %v6143_v27 = vor.u32 %v7521_v7, %v6140_v8  ;;  %3731 = vmatmul.bf16.vlgmr.msra.gmra.mxu0 %v8060_v49  ;;  %v3525_v30 = vadd.f32 %v3524_v0, %v836_v48  ;;  %vm4243_vm10 = vcmp.gt.f32.partialorder %v8110_v58, 0.0 }
 0x17a   :  { %v6396_v12 = vld [vmem:[#allocation6 + $0xba8] sm:$0xf0]  ;;  %3775 = vmatpush.bf16.msrb.mxu0 %v6175_v5  ;;  %3755 = vmatpush.bf16.msra.mxu2 %v5471_v10 }
 0x17b   :  { %v7345_v13 = vld [vmem:[#allocation6 + $0x40c] sm:$0xf]  ;;  %v6399_v28 = vor.u32 %v7585_v9, %v6396_v12  ;;  %3744 = vmatmul.bf16.vlgmr.msra.gmra.mxu1 %v8062_v50 }
 0x17c   :  { %v5436_v14 = vld [vmem:[#allocation6 + $0x428] sm:$0xf0]  ;;  %3788 = vmatpush.bf16.msrb.mxu1 %v6431_v6  ;;  %3768 = vmatpush.bf16.msra.mxu3 %v5727_v11  ;;  %v3538_v11 = vadd.f32 %v3537_v1, %v3525_v30  ;;  %v5154_v1 = vld [vmem:[#allocation6 + $0x1d0] sm:$0xf] }
 0x17d   :  { %v7409_v15 = vld [vmem:[#allocation6 + $0x60c] sm:$0xf]  ;;  %v5439_v29 = vor.u32 %v7345_v13, %v5436_v14  ;;  %v7278_v30 = vld [vmem:[#allocation6 + $0x1ec] sm:$0xf0] }
 0x17e   :  { %v5692_v16 = vld [vmem:[#allocation6 + $0x628] sm:$0xf0]  ;;  %3776 = vmatpush.bf16.msrb.mxu0 %v6143_v27 }
 0x17f   :  { %v7657_v17 = vld [vmem:[#allocation6 + $0xdcc] sm:$0xf]  ;;  %v5695_v33 = vor.u32 %v7409_v15, %v5692_v16  ;;  %3756 = vmatpush.bf16.msra.mxu2 %v5439_v29  ;;  %v3500_v15 = vpop.f32.mrf.mxu2  ;;  %v3513_v16 = vpop.f32.mrf.mxu3 }
 0x180   :  { %v6684_v22 = vld [vmem:[#allocation6 + $0xde8] sm:$0xf0]  ;;  %3789 = vmatpush.bf16.msrb.mxu1 %v6399_v28  ;;  %v5378_v15 = vld [vmem:[#allocation6 + $0x390] sm:$0xf] }
 0x181   :  { %v7721_v23 = vld [vmem:[#allocation6 + $0xfcc] sm:$0xf]  ;;  %v6687_v36 = vor.u32 %v7657_v17, %v6684_v22  ;;  %3769 = vmatpush.bf16.msra.mxu3 %v5695_v33 }
 0x182   :  { %v6940_v24 = vld [vmem:[#allocation6 + $0xfe8] sm:$0xf0]  ;;  %3757 = vmatmul.bf16.vlgmr.msra.gmra.mxu2 %v8068_v19 }
 0x183   :  { %v7513_v34 = vld [vmem:[#allocation6 + $0x94c] sm:$0xf]  ;;  %v6943_v37 = vor.u32 %v7721_v23, %v6940_v24  ;;  %3801 = vmatpush.bf16.msrb.mxu2 %v6687_v36  ;;  %v3526_v36 = vpop.f32.mrf.mxu0 }
 0x184   :  { %v6108_v35 = vld [vmem:[#allocation6 + $0x968] sm:$0xf0]  ;;  %3770 = vmatmul.bf16.vlgmr.msra.gmra.mxu3 %v8070_v20 }
 0x185   :  { %v7577_v38 = vld [vmem:[#allocation6 + $0xb4c] sm:$0xf]  ;;  %v6111_v46 = vor.u32 %v7513_v34, %v6108_v35  ;;  %3814 = vmatpush.bf16.msrb.mxu3 %v6943_v37  ;;  %v3539_v37 = vpop.f32.mrf.mxu1 }
 0x186   :  { %v6364_v39 = vld [vmem:[#allocation6 + $0xb68] sm:$0xf0] }
 0x187   :  { %v7649_v40 = vld [vmem:[#allocation6 + $0xd8c] sm:$0xf]  ;;  %v6367_v47 = vor.u32 %v7577_v38, %v6364_v39  ;;  %3777 = vmatpush.bf16.msrb.mxu0 %v6111_v46 }
 0x188   :  { %v6652_v18 = vld [vmem:[#allocation6 + $0xda8] sm:$0xf0] }
 0x189   :  { %v7713_v41 = vld [vmem:[#allocation6 + $0xf8c] sm:$0xf]  ;;  %v6655_v53 = vor.u32 %v7649_v40, %v6652_v18  ;;  %3790 = vmatpush.bf16.msrb.mxu1 %v6367_v47 }
 0x18a   :  { %v6908_v42 = vld [vmem:[#allocation6 + $0xfa8] sm:$0xf0] }
 0x18b   :  { %v7505_v51 = vld [vmem:[#allocation6 + $0x90c] sm:$0xf]  ;;  %v6911_v54 = vor.u32 %v7713_v41, %v6908_v42  ;;  %3802 = vmatpush.bf16.msrb.mxu2 %v6655_v53 }
 0x18c   :  { %v6076_v52 = vld [vmem:[#allocation6 + $0x928] sm:$0xf0] }
 0x18d   :  { %v7569_v55 = vld [vmem:[#allocation6 + $0xb0c] sm:$0xf]  ;;  %v6079_v2 = vor.u32 %v7505_v51, %v6076_v52  ;;  %3815 = vmatpush.bf16.msrb.mxu3 %v6911_v54  ;;  %v3550_v51 = vpop.f32.mrf.mxu2  ;;  %v3563_v52 = vpop.f32.mrf.mxu3 }
 0x18e   :  { %v6332_v56 = vld [vmem:[#allocation6 + $0xb28] sm:$0xf0] }
 0x18f   :  { %v7641_v57 = vld [vmem:[#allocation6 + $0xd4c] sm:$0xf]  ;;  %v6335_v3 = vor.u32 %v7569_v55, %v6332_v56  ;;  %3778 = vmatpush.bf16.msrb.mxu0 %v6079_v2  ;;  %v5410_v2 = vld [vmem:[#allocation6 + $0x3d0] sm:$0xf] }
 0x190   :  { %v6620_v59 = vld [vmem:[#allocation6 + $0xd68] sm:$0xf0] }
 0x191   :  { %v7705_v62 = vld [vmem:[#allocation6 + $0xf4c] sm:$0xf]  ;;  %v6623_v6 = vor.u32 %v7641_v57, %v6620_v59  ;;  %3791 = vmatpush.bf16.msrb.mxu1 %v6335_v3  ;;  %v3551_v59 = vadd.f32 %v3550_v51, %v3538_v11  ;;  %v7342_v3 = vld [vmem:[#allocation6 + $0x3ec] sm:$0xf0]  ;;  %v5155_v11 = vor.u32 %v7278_v30, %v5154_v1 }
 0x192   :  { %v6876_v63 = vld [vmem:[#allocation6 + $0xf68] sm:$0xf0]  ;;  %v7390_v1 = vld [vmem:[#allocation6 + $0x56c] sm:$0xf0] }
 0x193   :  { %v7497_v4 = vld [vmem:[#allocation6 + $0x8cc] sm:$0xf]  ;;  %v6879_v7 = vor.u32 %v7705_v62, %v6876_v63  ;;  %3803 = vmatpush.bf16.msrb.mxu2 %v6623_v6  ;;  %v5858_v30 = vld [vmem:[#allocation6 + $0x750] sm:$0xf] }
 0x194   :  { %v6044_v5 = vld [vmem:[#allocation6 + $0x8e8] sm:$0xf0] }
 0x195   :  { %v7561_v8 = vld [vmem:[#allocation6 + $0xacc] sm:$0xf]  ;;  %v6047_v17 = vor.u32 %v7497_v4, %v6044_v5  ;;  %3816 = vmatpush.bf16.msrb.mxu3 %v6879_v7  ;;  %v8114_v5 = vadd.f32 %v3563_v52, %v3551_v59  ;;  %v7318_v59 = vld [vmem:[#allocation6 + $0x32c] sm:$0xf0] }
 0x196   :  { %v6300_v9 = vld [vmem:[#allocation6 + $0xae8] sm:$0xf0] }
 0x197   :  { %v7633_v10 = vld [vmem:[#allocation6 + $0xd0c] sm:$0xf]  ;;  %v6303_v22 = vor.u32 %v7561_v8, %v6300_v9  ;;  %3779 = vmatpush.bf16.msrb.mxu0 %v6047_v17 }
 0x198   :  { %v6588_v12 = vld [vmem:[#allocation6 + $0xd28] sm:$0xf0] }
 0x199   :  { %v7697_v13 = vld [vmem:[#allocation6 + $0xf0c] sm:$0xf]  ;;  %v6591_v25 = vor.u32 %v7633_v10, %v6588_v12  ;;  %3792 = vmatpush.bf16.msrb.mxu1 %v6303_v22  ;;  %v5411_v12 = vor.u32 %v7342_v3, %v5410_v2  ;;  %v7334_v22 = vld [vmem:[#allocation6 + $0x3ac] sm:$0xf0] }
 0x19a   :  { %v6844_v14 = vld [vmem:[#allocation6 + $0xf28] sm:$0xf0]  ;;  %v5379_v37 = vor.u32 %v7334_v22, %v5378_v15  ;;  %v7454_v2 = vld [vmem:[#allocation6 + $0x76c] sm:$0xf0] }
 0x19b   :  { %v7489_v23 = vld [vmem:[#allocation6 + $0x88c] sm:$0xf]  ;;  %v6847_v26 = vor.u32 %v7697_v13, %v6844_v14  ;;  %3804 = vmatpush.bf16.msrb.mxu2 %v6591_v25  ;;  %v5122_v13 = vld [vmem:[#allocation6 + $0x190] sm:$0xf] }
 0x19c   :  { %v6012_v24 = vld [vmem:[#allocation6 + $0x8a8] sm:$0xf0]  ;;  %v7270_v14 = vld [vmem:[#allocation6 + $0x1ac] sm:$0xf0] }
 0x19d   :  { %v7553_v27 = vld [vmem:[#allocation6 + $0xa8c] sm:$0xf]  ;;  %v6015_v38 = vor.u32 %v7489_v23, %v6012_v24  ;;  %3817 = vmatpush.bf16.msrb.mxu3 %v6847_v26  ;;  %v5123_v36 = vor.u32 %v7270_v14, %v5122_v13  ;;  %v7310_v13 = vld [vmem:[#allocation6 + $0x2ec] sm:$0xf0] }
 0x19e   :  { %v6268_v28 = vld [vmem:[#allocation6 + $0xaa8] sm:$0xf0]  ;;  %v5570_v14 = vld [vmem:[#allocation6 + $0x510] sm:$0xf] }
 0x19f   :  { %v7625_v29 = vld [vmem:[#allocation6 + $0xccc] sm:$0xf]  ;;  %v6271_v39 = vor.u32 %v7553_v27, %v6268_v28  ;;  %3780 = vmatpush.bf16.msrb.mxu0 %v6015_v38  ;;  %v5666_v27 = vld [vmem:[#allocation6 + $0x5d0] sm:$0xf]  ;;  %v3552_v28 = vpop.f32.mrf.mxu2 }
 0x1a0   :  { %v6556_v33 = vld [vmem:[#allocation6 + $0xce8] sm:$0xf0]  ;;  %v7382_v15 = vld [vmem:[#allocation6 + $0x52c] sm:$0xf0] }
 0x1a1   :  { %v7689_v34 = vld [vmem:[#allocation6 + $0xecc] sm:$0xf]  ;;  %v6559_v41 = vor.u32 %v7625_v29, %v6556_v33  ;;  %3793 = vmatpush.bf16.msrb.mxu1 %v6271_v39  ;;  %v3565_v29 = vpop.f32.mrf.mxu3  ;;  %v7406_v33 = vld [vmem:[#allocation6 + $0x5ec] sm:$0xf0] }
 0x1a2   :  { %v6812_v35 = vld [vmem:[#allocation6 + $0xee8] sm:$0xf0]  ;;  %v7302_v28 = vld [vmem:[#allocation6 + $0x2ac] sm:$0xf0] }
 0x1a3   :  { %v7481_v40 = vld [vmem:[#allocation6 + $0x84c] sm:$0xf]  ;;  %v6815_v42 = vor.u32 %v7689_v34, %v6812_v35  ;;  %3805 = vmatpush.bf16.msrb.mxu2 %v6559_v41  ;;  %v5922_v34 = vld [vmem:[#allocation6 + $0x7d0] sm:$0xf]  ;;  %v5667_v41 = vor.u32 %v7406_v33, %v5666_v27 }
 0x1a4   :  { %v5980_v18 = vld [vmem:[#allocation6 + $0x868] sm:$0xf0]  ;;  %v7470_v35 = vld [vmem:[#allocation6 + $0x7ec] sm:$0xf0] }
 0x1a5   :  { %v7545_v43 = vld [vmem:[#allocation6 + $0xa4c] sm:$0xf]  ;;  %v5983_v53 = vor.u32 %v7481_v40, %v5980_v18  ;;  %3818 = vmatpush.bf16.msrb.mxu3 %v6815_v42  ;;  %v5090_v40 = vld [vmem:[#allocation6 + $0x150] sm:$0xf]  ;;  %v5923_v42 = vor.u32 %v7470_v35, %v5922_v34 }
 0x1a6   :  { %v6236_v44 = vld [vmem:[#allocation6 + $0xa68] sm:$0xf0]  ;;  %v7262_v18 = vld [vmem:[#allocation6 + $0x16c] sm:$0xf0] }
 0x1a7   :  { %v7617_v45 = vld [vmem:[#allocation6 + $0xc8c] sm:$0xf]  ;;  %v6239_v54 = vor.u32 %v7545_v43, %v6236_v44  ;;  %3781 = vmatpush.bf16.msrb.mxu0 %v5983_v53  ;;  %v5346_v43 = vld [vmem:[#allocation6 + $0x350] sm:$0xf]  ;;  %v5091_v51 = vor.u32 %v7262_v18, %v5090_v40 }
 0x1a8   :  { %v6524_v46 = vld [vmem:[#allocation6 + $0xca8] sm:$0xf0]  ;;  %v7326_v44 = vld [vmem:[#allocation6 + $0x36c] sm:$0xf0] }
 0x1a9   :  { %v7681_v47 = vld [vmem:[#allocation6 + $0xe8c] sm:$0xf]  ;;  %v6527_v62 = vor.u32 %v7617_v45, %v6524_v46  ;;  %3794 = vmatpush.bf16.msrb.mxu1 %v6239_v54  ;;  %v5634_v45 = vld [vmem:[#allocation6 + $0x590] sm:$0xf]  ;;  %v5347_v52 = vor.u32 %v7326_v44, %v5346_v43 }
 0x1aa   :  { %v6780_v48 = vld [vmem:[#allocation6 + $0xea8] sm:$0xf0]  ;;  %v7398_v46 = vld [vmem:[#allocation6 + $0x5ac] sm:$0xf0] }
 0x1ab   :  { %v7473_v55 = vld [vmem:[#allocation6 + $0x80c] sm:$0xf]  ;;  %v6783_v63 = vor.u32 %v7681_v47, %v6780_v48  ;;  %3806 = vmatpush.bf16.msrb.mxu2 %v6527_v62  ;;  %v5890_v47 = vld [vmem:[#allocation6 + $0x790] sm:$0xf] }
 0x1ac   :  { %v5948_v56 = vld [vmem:[#allocation6 + $0x828] sm:$0xf0]  ;;  %v7462_v48 = vld [vmem:[#allocation6 + $0x7ac] sm:$0xf0] }
 0x1ad   :  { %v7537_v57 = vld [vmem:[#allocation6 + $0xa0c] sm:$0xf]  ;;  %v5951_v9 = vor.u32 %v7473_v55, %v5948_v56  ;;  %3819 = vmatpush.bf16.msrb.mxu3 %v6783_v63  ;;  %v5058_v53 = vld [vmem:[#allocation6 + $0x110] sm:$0xf]  ;;  %v5635_v55 = vor.u32 %v7398_v46, %v5634_v45  ;;  %v5891_v56 = vor.u32 %v7462_v48, %v5890_v47  ;;  %v3576_v63 = vpop.f32.mrf.mxu0  ;;  %v3602_v46 = vpop.f32.mrf.mxu2 }
 0x1ae   :  { %v6204_v0 = vld [vmem:[#allocation6 + $0xa28] sm:$0xf0]  ;;  %v7254_v54 = vld [vmem:[#allocation6 + $0x12c] sm:$0xf0]  ;;  %v3577_v3 = vadd.f32 %v3576_v63, %v8114_v5  ;;  %v3615_v47 = vpop.f32.mrf.mxu3 }
 0x1af   :  { %v7609_v4 = vld [vmem:[#allocation6 + $0xc4c] sm:$0xf]  ;;  %v6207_v10 = vor.u32 %v7537_v57, %v6204_v0  ;;  %3782 = vmatpush.bf16.msrb.mxu0 %v5951_v9  ;;  %v5314_v57 = vld [vmem:[#allocation6 + $0x310] sm:$0xf]  ;;  %v3589_v0 = vpop.f32.mrf.mxu1 }
 0x1b0   :  { %v6492_v6 = vld [vmem:[#allocation6 + $0xc68] sm:$0xf0]  ;;  %v5602_v62 = vld [vmem:[#allocation6 + $0x550] sm:$0xf]  ;;  %v3590_v9 = vadd.f32 %v3589_v0, %v3577_v3 }
 0x1b1   :  { %v7673_v7 = vld [vmem:[#allocation6 + $0xe4c] sm:$0xf]  ;;  %v6495_v16 = vor.u32 %v7609_v4, %v6492_v6  ;;  %3795 = vmatpush.bf16.msrb.mxu1 %v6207_v10  ;;  %v5059_v4 = vor.u32 %v7254_v54, %v5058_v53  ;;  %v5315_v6 = vor.u32 %v7318_v59, %v5314_v57  ;;  %v5603_v10 = vor.u32 %v7390_v1, %v5602_v62  ;;  %v5250_v27 = vld [vmem:[#allocation6 + $0x290] sm:$0xf] }
 0x1b2   :  { %v6748_v8 = vld [vmem:[#allocation6 + $0xe68] sm:$0xf0]  ;;  %3783 = vmatmul.bf16.vlgmr.msrb.gmra.mxu0 %v8076_v60  ;;  %v5538_v29 = vld [vmem:[#allocation6 + $0x4d0] sm:$0xf]  ;;  %v3603_v53 = vadd.f32 %v3602_v46, %v3590_v9 }
 0x1b3   :  { %v6751_v17 = vor.u32 %v7673_v7, %v6748_v8  ;;  %v7601_v23 = vld [vmem:[#allocation6 + $0xc0c] sm:$0xf]  ;;  %3827 = vmatpush.bf16.msra.mxu0 %v5155_v11  ;;  %3807 = vmatpush.bf16.msrb.mxu2 %v6495_v16  ;;  %v5026_v7 = vld [vmem:[#allocation6 + $0xd0] sm:$0xf]  ;;  %v5859_v11 = vor.u32 %v7454_v2, %v5858_v30 }
 0x1b4   :  { %v6460_v24 = vld [vmem:[#allocation6 + $0xc28] sm:$0xf0]  ;;  %3796 = vmatmul.bf16.vlgmr.msrb.gmra.mxu1 %v8078_v61  ;;  %v7246_v8 = vld [vmem:[#allocation6 + $0xec] sm:$0xf0]  ;;  %v8121_v62 = vadd.f32 %v3615_v47, %v3603_v53 }
 0x1b5   :  { %v7665_v25 = vld [vmem:[#allocation6 + $0xe0c] sm:$0xf]  ;;  %3840 = vmatpush.bf16.msra.mxu1 %v5411_v12  ;;  %3820 = vmatpush.bf16.msrb.mxu3 %v6751_v17  ;;  %v6463_v38 = vor.u32 %v7601_v23, %v6460_v24  ;;  %v5282_v12 = vld [vmem:[#allocation6 + $0x2d0] sm:$0xf]  ;;  %v5027_v5 = vor.u32 %v7246_v8, %v5026_v7  ;;  %v3578_v33 = vpop.f32.mrf.mxu0 }
 0x1b6   :  { %v6716_v26 = vld [vmem:[#allocation6 + $0xe28] sm:$0xf0]  ;;  %v5826_v16 = vld [vmem:[#allocation6 + $0x710] sm:$0xf]  ;;  %v5283_v22 = vor.u32 %v7310_v13, %v5282_v12  ;;  %vm4244_vm11 = vcmp.gt.f32.partialorder %v8121_v62, 0.0 }
 0x1b7   :  { %v6719_v39 = vor.u32 %v7665_v25, %v6716_v26  ;;  %3828 = vmatpush.bf16.msra.mxu0 %v5123_v36  ;;  %3808 = vmatpush.bf16.msrb.mxu2 %v6463_v38  ;;  %v7446_v17 = vld [vmem:[#allocation6 + $0x72c] sm:$0xf0]  ;;  %v5571_v25 = vor.u32 %v7382_v15, %v5570_v14  ;;  %v3591_v34 = vpop.f32.mrf.mxu1 }
 0x1b8   :  { %v4994_v23 = vld [vmem:[#allocation6 + $0x90] sm:$0xf]  ;;  %v5827_v26 = vor.u32 %v7446_v17, %v5826_v16 }
 0x1b9   :  { %3841 = vmatpush.bf16.msra.mxu1 %v5379_v37  ;;  %3821 = vmatpush.bf16.msrb.mxu3 %v6719_v39  ;;  %v7238_v24 = vld [vmem:[#allocation6 + $0xac] sm:$0xf0]  ;;  %v5251_v39 = vor.u32 %v7302_v28, %v5250_v27 }
 0x1ba   :  { %3809 = vmatmul.bf16.vlgmr.msrb.gmra.mxu2 %v8082_v31  ;;  %v7374_v35 = vld [vmem:[#allocation6 + $0x4ec] sm:$0xf0]  ;;  %v4995_v38 = vor.u32 %v7238_v24, %v4994_v23  ;;  %v3617_v23 = vpop.f32.mrf.mxu3 }
 0x1bb   :  { %3853 = vmatpush.bf16.msra.mxu2 %v5667_v41  ;;  %3829 = vmatpush.bf16.msra.mxu0 %v5091_v51  ;;  %v5794_v36 = vld [vmem:[#allocation6 + $0x6d0] sm:$0xf]  ;;  %v5539_v41 = vor.u32 %v7374_v35, %v5538_v29 }
 0x1bc   :  { %3822 = vmatmul.bf16.vlgmr.msrb.gmra.mxu3 %v8084_v32  ;;  %v7438_v37 = vld [vmem:[#allocation6 + $0x6ec] sm:$0xf0] }
 0x1bd   :  { %3866 = vmatpush.bf16.msra.mxu3 %v5923_v42  ;;  %3842 = vmatpush.bf16.msra.mxu1 %v5347_v52  ;;  %v4962_v40 = vld [vmem:[#allocation6 + $0x50] sm:$0xf]  ;;  %v5795_v42 = vor.u32 %v7438_v37, %v5794_v36 }
 0x1be   :  { %v7230_v18 = vld [vmem:[#allocation6 + $0x6c] sm:$0xf0] }
 0x1bf   :  { %3854 = vmatpush.bf16.msra.mxu2 %v5635_v55  ;;  %3830 = vmatpush.bf16.msra.mxu0 %v5059_v4  ;;  %v5218_v43 = vld [vmem:[#allocation6 + $0x250] sm:$0xf]  ;;  %v4963_v54 = vor.u32 %v7230_v18, %v4962_v40 }
 0x1c0   :  { %v7294_v44 = vld [vmem:[#allocation6 + $0x26c] sm:$0xf0] }
 0x1c1   :  { %3867 = vmatpush.bf16.msra.mxu3 %v5891_v56  ;;  %3843 = vmatpush.bf16.msra.mxu1 %v5315_v6  ;;  %v5506_v45 = vld [vmem:[#allocation6 + $0x490] sm:$0xf]  ;;  %v5219_v55 = vor.u32 %v7294_v44, %v5218_v43 }
 0x1c2   :  { %v7366_v48 = vld [vmem:[#allocation6 + $0x4ac] sm:$0xf0] }
 0x1c3   :  { %3855 = vmatpush.bf16.msra.mxu2 %v5603_v10  ;;  %3831 = vmatpush.bf16.msra.mxu0 %v5027_v5  ;;  %v5762_v51 = vld [vmem:[#allocation6 + $0x690] sm:$0xf]  ;;  %v5507_v63 = vor.u32 %v7366_v48, %v5506_v45 }
 0x1c4   :  { %v7430_v52 = vld [vmem:[#allocation6 + $0x6ac] sm:$0xf0] }
 0x1c5   :  { %3868 = vmatpush.bf16.msra.mxu3 %v5859_v11  ;;  %3844 = vmatpush.bf16.msra.mxu1 %v5283_v22  ;;  %v4930_v56 = vld [vmem:[#allocation6 + $0x10] sm:$0xf]  ;;  %v5763_v0 = vor.u32 %v7430_v52, %v5762_v51  ;;  %v3604_v22 = vpop.f32.mrf.mxu2  ;;  %v837_v51 = vperm.slane %v8100_v21, 2 }
 0x1c6   :  { %v7222_v57 = vld [vmem:[#allocation6 + $0x2c] sm:$0xf0] }
 0x1c7   :  { %3856 = vmatpush.bf16.msra.mxu2 %v5571_v25  ;;  %3832 = vmatpush.bf16.msra.mxu0 %v4995_v38  ;;  %v5186_v59 = vld [vmem:[#allocation6 + $0x210] sm:$0xf]  ;;  %v4931_v10 = vor.u32 %v7222_v57, %v4930_v56 }
 0x1c8   :  { %v7286_v1 = vld [vmem:[#allocation6 + $0x22c] sm:$0xf0] }
 0x1c9   :  { %3869 = vmatpush.bf16.msra.mxu3 %v5827_v26  ;;  %3845 = vmatpush.bf16.msra.mxu1 %v5251_v39  ;;  %v6178_v30 = vld [vmem:[#allocation6 + $0x9d0] sm:$0xf]  ;;  %v5187_v11 = vor.u32 %v7286_v1, %v5186_v59  ;;  %v3628_v1 = vpop.f32.mrf.mxu0 }
 0x1ca   :  { %v7534_v2 = vld [vmem:[#allocation6 + $0x9ec] sm:$0xf0]  ;;  %v3629_v21 = vadd.f32 %v3628_v1, %v837_v51 }
 0x1cb   :  { %3857 = vmatpush.bf16.msra.mxu2 %v5539_v41  ;;  %v6434_v3 = vld [vmem:[#allocation6 + $0xbd0] sm:$0xf]  ;;  %3833 = vmatpush.bf16.msra.mxu0 %v4963_v54  ;;  %v6179_v12 = vor.u32 %v7534_v2, %v6178_v30  ;;  %v3641_v30 = vpop.f32.mrf.mxu1 }
 0x1cc   :  { %v7598_v4 = vld [vmem:[#allocation6 + $0xbec] sm:$0xf0] }
 0x1cd   :  { %3870 = vmatpush.bf16.msra.mxu3 %v5795_v42  ;;  %v5474_v6 = vld [vmem:[#allocation6 + $0x450] sm:$0xf]  ;;  %3846 = vmatpush.bf16.msra.mxu1 %v5219_v55  ;;  %v6435_v13 = vor.u32 %v7598_v4, %v6434_v3 }
 0x1ce   :  { %v7358_v7 = vld [vmem:[#allocation6 + $0x46c] sm:$0xf0] }
 0x1cf   :  { %v5730_v8 = vld [vmem:[#allocation6 + $0x650] sm:$0xf]  ;;  %3858 = vmatpush.bf16.msra.mxu2 %v5507_v63  ;;  %v5475_v17 = vor.u32 %v7358_v7, %v5474_v6  ;;  %3834 = vmatpush.bf16.msra.mxu0 %v4931_v10  ;;  %v3642_v10 = vadd.f32 %v3641_v30, %v3629_v21  ;;  %v7338_v21 = vld [vmem:[#allocation6 + $0x3d4] sm:$0xf] }
 0x1d0   :  { %v7422_v9 = vld [vmem:[#allocation6 + $0x66c] sm:$0xf0] }
 0x1d1   :  { %3871 = vmatpush.bf16.msra.mxu3 %v5763_v0  ;;  %v6146_v14 = vld [vmem:[#allocation6 + $0x990] sm:$0xf]  ;;  %v5731_v5 = vor.u32 %v7422_v9, %v5730_v8  ;;  %3847 = vmatpush.bf16.msra.mxu1 %v5187_v11 }
 0x1d2   :  { %v7526_v15 = vld [vmem:[#allocation6 + $0x9ac] sm:$0xf0]  ;;  %3835 = vmatmul.bf16.vlgmr.msra.gmra.mxu0 %v8060_v49 }
 0x1d3   :  { %v6402_v16 = vld [vmem:[#allocation6 + $0xb90] sm:$0xf]  ;;  %3879 = vmatpush.bf16.msrb.mxu0 %v6179_v12  ;;  %v6147_v36 = vor.u32 %v7526_v15, %v6146_v14  ;;  %3859 = vmatpush.bf16.msra.mxu2 %v5475_v17 }
 0x1d4   :  { %v7590_v24 = vld [vmem:[#allocation6 + $0xbac] sm:$0xf0]  ;;  %3848 = vmatmul.bf16.vlgmr.msra.gmra.mxu1 %v8062_v50 }
 0x1d5   :  { %v5442_v25 = vld [vmem:[#allocation6 + $0x410] sm:$0xf]  ;;  %3892 = vmatpush.bf16.msrb.mxu1 %v6435_v13  ;;  %v6403_v37 = vor.u32 %v7590_v24, %v6402_v16  ;;  %3872 = vmatpush.bf16.msra.mxu3 %v5731_v5 }
 0x1d6   :  { %v7350_v26 = vld [vmem:[#allocation6 + $0x42c] sm:$0xf0] }
 0x1d7   :  { %v5698_v27 = vld [vmem:[#allocation6 + $0x610] sm:$0xf]  ;;  %v5443_v38 = vor.u32 %v7350_v26, %v5442_v25  ;;  %3880 = vmatpush.bf16.msrb.mxu0 %v6147_v36 }
 0x1d8   :  { %v7414_v28 = vld [vmem:[#allocation6 + $0x62c] sm:$0xf0] }
 0x1d9   :  { %v6690_v29 = vld [vmem:[#allocation6 + $0xdd0] sm:$0xf]  ;;  %v5699_v39 = vor.u32 %v7414_v28, %v5698_v27  ;;  %3893 = vmatpush.bf16.msrb.mxu1 %v6403_v37  ;;  %3860 = vmatpush.bf16.msra.mxu2 %v5443_v38 }
 0x1da   :  { %v7662_v33 = vld [vmem:[#allocation6 + $0xdec] sm:$0xf0] }
 0x1db   :  { %v6946_v34 = vld [vmem:[#allocation6 + $0xfd0] sm:$0xf]  ;;  %v6691_v41 = vor.u32 %v7662_v33, %v6690_v29  ;;  %3873 = vmatpush.bf16.msra.mxu3 %v5699_v39 }
 0x1dc   :  { %v7726_v35 = vld [vmem:[#allocation6 + $0xfec] sm:$0xf0]  ;;  %3861 = vmatmul.bf16.vlgmr.msra.gmra.mxu2 %v8068_v19 }
 0x1dd   :  { %v6114_v40 = vld [vmem:[#allocation6 + $0x950] sm:$0xf]  ;;  %v6947_v42 = vor.u32 %v7726_v35, %v6946_v34  ;;  %3905 = vmatpush.bf16.msrb.mxu2 %v6691_v41  ;;  %v3630_v34 = vpop.f32.mrf.mxu0  ;;  %v3643_v35 = vpop.f32.mrf.mxu1 }
 0x1de   :  { %v7518_v18 = vld [vmem:[#allocation6 + $0x96c] sm:$0xf0]  ;;  %3874 = vmatmul.bf16.vlgmr.msra.gmra.mxu3 %v8070_v20  ;;  %v5668_v34 = vld [vmem:[#allocation6 + $0x5f0] sm:$0xf0] }
 0x1df   :  { %v6370_v43 = vld [vmem:[#allocation6 + $0xb50] sm:$0xf]  ;;  %v6115_v52 = vor.u32 %v7518_v18, %v6114_v40  ;;  %3918 = vmatpush.bf16.msrb.mxu3 %v6947_v42  ;;  %v7466_v35 = vld [vmem:[#allocation6 + $0x7d4] sm:$0xf] }
 0x1e0   :  { %v7582_v44 = vld [vmem:[#allocation6 + $0xb6c] sm:$0xf0] }
 0x1e1   :  { %v6658_v45 = vld [vmem:[#allocation6 + $0xd90] sm:$0xf]  ;;  %v6371_v53 = vor.u32 %v7582_v44, %v6370_v43  ;;  %3881 = vmatpush.bf16.msrb.mxu0 %v6115_v52 }
 0x1e2   :  { %v7654_v46 = vld [vmem:[#allocation6 + $0xdac] sm:$0xf0] }
 0x1e3   :  { %v6914_v47 = vld [vmem:[#allocation6 + $0xf90] sm:$0xf]  ;;  %v6659_v56 = vor.u32 %v7654_v46, %v6658_v45  ;;  %3894 = vmatpush.bf16.msrb.mxu1 %v6371_v53 }
 0x1e4   :  { %v7718_v48 = vld [vmem:[#allocation6 + $0xfac] sm:$0xf0] }
 0x1e5   :  { %v6082_v54 = vld [vmem:[#allocation6 + $0x910] sm:$0xf]  ;;  %v6915_v57 = vor.u32 %v7718_v48, %v6914_v47  ;;  %3906 = vmatpush.bf16.msrb.mxu2 %v6659_v56  ;;  %v3654_v47 = vpop.f32.mrf.mxu2  ;;  %v3667_v48 = vpop.f32.mrf.mxu3 }
 0x1e6   :  { %v7510_v55 = vld [vmem:[#allocation6 + $0x92c] sm:$0xf0] }
 0x1e7   :  { %v6338_v59 = vld [vmem:[#allocation6 + $0xb10] sm:$0xf]  ;;  %v6083_v6 = vor.u32 %v7510_v55, %v6082_v54  ;;  %3919 = vmatpush.bf16.msrb.mxu3 %v6915_v57  ;;  %v3655_v54 = vadd.f32 %v3654_v47, %v3642_v10  ;;  %v5636_v47 = vld [vmem:[#allocation6 + $0x5b0] sm:$0xf0] }
 0x1e8   :  { %v7574_v63 = vld [vmem:[#allocation6 + $0xb2c] sm:$0xf0] }
 0x1e9   :  { %v6626_v0 = vld [vmem:[#allocation6 + $0xd50] sm:$0xf]  ;;  %v6339_v7 = vor.u32 %v7574_v63, %v6338_v59  ;;  %3882 = vmatpush.bf16.msrb.mxu0 %v6083_v6  ;;  %v5412_v6 = vld [vmem:[#allocation6 + $0x3f0] sm:$0xf0] }
 0x1ea   :  { %v7646_v2 = vld [vmem:[#allocation6 + $0xd6c] sm:$0xf0] }
 0x1eb   :  { %v6882_v3 = vld [vmem:[#allocation6 + $0xf50] sm:$0xf]  ;;  %v6627_v11 = vor.u32 %v7646_v2, %v6626_v0  ;;  %3895 = vmatpush.bf16.msrb.mxu1 %v6339_v7  ;;  %v8128_v0 = vadd.f32 %v3667_v48, %v3655_v54  ;;  %v7458_v48 = vld [vmem:[#allocation6 + $0x794] sm:$0xf] }
 0x1ec   :  { %v7710_v4 = vld [vmem:[#allocation6 + $0xf6c] sm:$0xf0]  ;;  %v7250_v54 = vld [vmem:[#allocation6 + $0x114] sm:$0xf] }
 0x1ed   :  { %v6050_v8 = vld [vmem:[#allocation6 + $0x8d0] sm:$0xf]  ;;  %v6883_v12 = vor.u32 %v7710_v4, %v6882_v3  ;;  %3907 = vmatpush.bf16.msrb.mxu2 %v6627_v11  ;;  %v7274_v3 = vld [vmem:[#allocation6 + $0x1d4] sm:$0xf] }
 0x1ee   :  { %v7502_v9 = vld [vmem:[#allocation6 + $0x8ec] sm:$0xf0]  ;;  %v5156_v4 = vld [vmem:[#allocation6 + $0x1f0] sm:$0xf0] }
 0x1ef   :  { %v6306_v13 = vld [vmem:[#allocation6 + $0xad0] sm:$0xf]  ;;  %v6051_v22 = vor.u32 %v7502_v9, %v6050_v8  ;;  %3920 = vmatpush.bf16.msrb.mxu3 %v6883_v12 }
 0x1f0   :  { %v7566_v14 = vld [vmem:[#allocation6 + $0xaec] sm:$0xf0] }
 0x1f1   :  { %v6594_v15 = vld [vmem:[#allocation6 + $0xd10] sm:$0xf]  ;;  %v6307_v23 = vor.u32 %v7566_v14, %v6306_v13  ;;  %3883 = vmatpush.bf16.msrb.mxu0 %v6051_v22  ;;  %v5159_v13 = vor.u32 %v7274_v3, %v5156_v4  ;;  %v5415_v14 = vor.u32 %v7338_v21, %v5412_v6  ;;  %v5604_v3 = vld [vmem:[#allocation6 + $0x570] sm:$0xf0] }
 0x1f2   :  { %v7638_v16 = vld [vmem:[#allocation6 + $0xd2c] sm:$0xf0]  ;;  %v7450_v4 = vld [vmem:[#allocation6 + $0x754] sm:$0xf] }
 0x1f3   :  { %v6850_v17 = vld [vmem:[#allocation6 + $0xf10] sm:$0xf]  ;;  %v6595_v26 = vor.u32 %v7638_v16, %v6594_v15  ;;  %3896 = vmatpush.bf16.msrb.mxu1 %v6307_v23  ;;  %v7266_v15 = vld [vmem:[#allocation6 + $0x194] sm:$0xf]  ;;  %v3656_v23 = vpop.f32.mrf.mxu2 }
 0x1f4   :  { %v7702_v5 = vld [vmem:[#allocation6 + $0xf2c] sm:$0xf0]  ;;  %v5124_v16 = vld [vmem:[#allocation6 + $0x1b0] sm:$0xf0] }
 0x1f5   :  { %v6018_v24 = vld [vmem:[#allocation6 + $0x890] sm:$0xf]  ;;  %v6851_v27 = vor.u32 %v7702_v5, %v6850_v17  ;;  %3908 = vmatpush.bf16.msrb.mxu2 %v6595_v26  ;;  %v7330_v17 = vld [vmem:[#allocation6 + $0x394] sm:$0xf] }
 0x1f6   :  { %v7494_v25 = vld [vmem:[#allocation6 + $0x8ac] sm:$0xf0]  ;;  %v5860_v21 = vld [vmem:[#allocation6 + $0x770] sm:$0xf0] }
 0x1f7   :  { %v6274_v28 = vld [vmem:[#allocation6 + $0xa90] sm:$0xf]  ;;  %v6019_v39 = vor.u32 %v7494_v25, %v6018_v24  ;;  %3921 = vmatpush.bf16.msrb.mxu3 %v6851_v27  ;;  %v3669_v24 = vpop.f32.mrf.mxu3  ;;  %v5380_v25 = vld [vmem:[#allocation6 + $0x3b0] sm:$0xf0] }
 0x1f8   :  { %v7558_v29 = vld [vmem:[#allocation6 + $0xaac] sm:$0xf0]  ;;  %v7234_v24 = vld [vmem:[#allocation6 + $0x94] sm:$0xf] }
 0x1f9   :  { %v6562_v33 = vld [vmem:[#allocation6 + $0xcd0] sm:$0xf]  ;;  %v6275_v40 = vor.u32 %v7558_v29, %v6274_v28  ;;  %3884 = vmatpush.bf16.msrb.mxu0 %v6019_v39 }
 0x1fa   :  { %v7630_v36 = vld [vmem:[#allocation6 + $0xcec] sm:$0xf0] }
 0x1fb   :  { %v6818_v37 = vld [vmem:[#allocation6 + $0xed0] sm:$0xf]  ;;  %v6563_v42 = vor.u32 %v7630_v36, %v6562_v33  ;;  %3897 = vmatpush.bf16.msrb.mxu1 %v6275_v40  ;;  %v7402_v33 = vld [vmem:[#allocation6 + $0x5d4] sm:$0xf] }
 0x1fc   :  { %v7694_v38 = vld [vmem:[#allocation6 + $0xeec] sm:$0xf0]  ;;  %v5924_v36 = vld [vmem:[#allocation6 + $0x7f0] sm:$0xf0] }
 0x1fd   :  { %v5986_v18 = vld [vmem:[#allocation6 + $0x850] sm:$0xf]  ;;  %v6819_v43 = vor.u32 %v7694_v38, %v6818_v37  ;;  %3909 = vmatpush.bf16.msrb.mxu2 %v6563_v42  ;;  %v5127_v37 = vor.u32 %v7266_v15, %v5124_v16  ;;  %v5383_v38 = vor.u32 %v7330_v17, %v5380_v25  ;;  %v5671_v42 = vor.u32 %v7402_v33, %v5668_v34  ;;  %v5284_v15 = vld [vmem:[#allocation6 + $0x2f0] sm:$0xf0] }
 0x1fe   :  { %v7486_v41 = vld [vmem:[#allocation6 + $0x86c] sm:$0xf0]  ;;  %v7378_v16 = vld [vmem:[#allocation6 + $0x514] sm:$0xf] }
 0x1ff   :  { %v6242_v44 = vld [vmem:[#allocation6 + $0xa50] sm:$0xf]  ;;  %v5987_v55 = vor.u32 %v7486_v41, %v5986_v18  ;;  %3922 = vmatpush.bf16.msrb.mxu3 %v6819_v43  ;;  %v7258_v18 = vld [vmem:[#allocation6 + $0x154] sm:$0xf]  ;;  %v5927_v43 = vor.u32 %v7466_v35, %v5924_v36 }
 0x200   :  { %v7550_v45 = vld [vmem:[#allocation6 + $0xa6c] sm:$0xf0]  ;;  %v5092_v41 = vld [vmem:[#allocation6 + $0x170] sm:$0xf0] }
 0x201   :  { %v6530_v46 = vld [vmem:[#allocation6 + $0xc90] sm:$0xf]  ;;  %v6243_v56 = vor.u32 %v7550_v45, %v6242_v44  ;;  %3885 = vmatpush.bf16.msrb.mxu0 %v5987_v55  ;;  %v7322_v44 = vld [vmem:[#allocation6 + $0x354] sm:$0xf] }
 0x202   :  { %v7622_v51 = vld [vmem:[#allocation6 + $0xcac] sm:$0xf0]  ;;  %v5348_v45 = vld [vmem:[#allocation6 + $0x370] sm:$0xf0] }
 0x203   :  { %v6786_v52 = vld [vmem:[#allocation6 + $0xe90] sm:$0xf]  ;;  %v6531_v1 = vor.u32 %v7622_v51, %v6530_v46  ;;  %3898 = vmatpush.bf16.msrb.mxu1 %v6243_v56  ;;  %v7394_v46 = vld [vmem:[#allocation6 + $0x594] sm:$0xf] }
 0x204   :  { %v7686_v53 = vld [vmem:[#allocation6 + $0xeac] sm:$0xf0]  ;;  %v5892_v51 = vld [vmem:[#allocation6 + $0x7b0] sm:$0xf0]  ;;  %v5639_v56 = vor.u32 %v7394_v46, %v5636_v47  ;;  %v3706_v47 = vpop.f32.mrf.mxu2 }
 0x205   :  { %v5954_v57 = vld [vmem:[#allocation6 + $0x810] sm:$0xf]  ;;  %v6787_v30 = vor.u32 %v7686_v53, %v6786_v52  ;;  %3910 = vmatpush.bf16.msrb.mxu2 %v6531_v1  ;;  %v5095_v52 = vor.u32 %v7258_v18, %v5092_v41  ;;  %v5351_v53 = vor.u32 %v7322_v44, %v5348_v45  ;;  %v5060_v55 = vld [vmem:[#allocation6 + $0x130] sm:$0xf0] }
 0x206   :  { %v7478_v59 = vld [vmem:[#allocation6 + $0x82c] sm:$0xf0]  ;;  %v7386_v1 = vld [vmem:[#allocation6 + $0x554] sm:$0xf] }
 0x207   :  { %v6210_v63 = vld [vmem:[#allocation6 + $0xa10] sm:$0xf]  ;;  %v5955_v11 = vor.u32 %v7478_v59, %v5954_v57  ;;  %3923 = vmatpush.bf16.msrb.mxu3 %v6787_v30  ;;  %v5895_v57 = vor.u32 %v7458_v48, %v5892_v51  ;;  %v7314_v59 = vld [vmem:[#allocation6 + $0x314] sm:$0xf]  ;;  %v3680_v30 = vpop.f32.mrf.mxu0  ;;  %v3719_v48 = vpop.f32.mrf.mxu3 }
 0x208   :  { %v7542_v2 = vld [vmem:[#allocation6 + $0xa2c] sm:$0xf0]  ;;  %v3681_v6 = vadd.f32 %v3680_v30, %v8128_v0  ;;  %v5572_v17 = vld [vmem:[#allocation6 + $0x530] sm:$0xf0] }
 0x209   :  { %v6498_v7 = vld [vmem:[#allocation6 + $0xc50] sm:$0xf]  ;;  %v6211_v12 = vor.u32 %v7542_v2, %v6210_v63  ;;  %3886 = vmatpush.bf16.msrb.mxu0 %v5955_v11  ;;  %v5316_v63 = vld [vmem:[#allocation6 + $0x330] sm:$0xf0]  ;;  %v3693_v2 = vpop.f32.mrf.mxu1 }
 0x20a   :  { %v7614_v8 = vld [vmem:[#allocation6 + $0xc6c] sm:$0xf0]  ;;  %v3694_v11 = vadd.f32 %v3693_v2, %v3681_v6  ;;  %v4996_v25 = vld [vmem:[#allocation6 + $0xb0] sm:$0xf0] }
 0x20b   :  { %v6754_v9 = vld [vmem:[#allocation6 + $0xe50] sm:$0xf]  ;;  %v6499_v5 = vor.u32 %v7614_v8, %v6498_v7  ;;  %3899 = vmatpush.bf16.msrb.mxu1 %v6211_v12  ;;  %v5063_v7 = vor.u32 %v7250_v54, %v5060_v55  ;;  %v5319_v8 = vor.u32 %v7314_v59, %v5316_v63  ;;  %v5607_v12 = vor.u32 %v7386_v1, %v5604_v3  ;;  %v7370_v33 = vld [vmem:[#allocation6 + $0x4d4] sm:$0xf] }
 0x20c   :  { %v7678_v10 = vld [vmem:[#allocation6 + $0xe6c] sm:$0xf0]  ;;  %3887 = vmatmul.bf16.vlgmr.msrb.gmra.mxu0 %v8076_v60  ;;  %v5540_v36 = vld [vmem:[#allocation6 + $0x4f0] sm:$0xf0]  ;;  %v3707_v54 = vadd.f32 %v3706_v47, %v3694_v11 }
 0x20d   :  { %v6755_v22 = vor.u32 %v7678_v10, %v6754_v9  ;;  %v6466_v26 = vld [vmem:[#allocation6 + $0xc10] sm:$0xf]  ;;  %3931 = vmatpush.bf16.msra.mxu0 %v5159_v13  ;;  %3911 = vmatpush.bf16.msrb.mxu2 %v6499_v5  ;;  %v7242_v9 = vld [vmem:[#allocation6 + $0xd4] sm:$0xf]  ;;  %v5863_v13 = vor.u32 %v7450_v4, %v5860_v21 }
 0x20e   :  { %v7606_v27 = vld [vmem:[#allocation6 + $0xc2c] sm:$0xf0]  ;;  %3900 = vmatmul.bf16.vlgmr.msrb.gmra.mxu1 %v8078_v61  ;;  %v5028_v10 = vld [vmem:[#allocation6 + $0xf0] sm:$0xf0]  ;;  %v8135_v1 = vadd.f32 %v3719_v48, %v3707_v54 }
 0x20f   :  { %v6722_v28 = vld [vmem:[#allocation6 + $0xe10] sm:$0xf]  ;;  %3944 = vmatpush.bf16.msra.mxu1 %v5415_v14  ;;  %3924 = vmatpush.bf16.msrb.mxu3 %v6755_v22  ;;  %v6467_v39 = vor.u32 %v7606_v27, %v6466_v26  ;;  %v7306_v14 = vld [vmem:[#allocation6 + $0x2d4] sm:$0xf]  ;;  %v5031_v0 = vor.u32 %v7242_v9, %v5028_v10  ;;  %v5575_v26 = vor.u32 %v7378_v16, %v5572_v17  ;;  %v3682_v34 = vpop.f32.mrf.mxu0 }
 0x210   :  { %v7670_v29 = vld [vmem:[#allocation6 + $0xe2c] sm:$0xf0]  ;;  %v7442_v5 = vld [vmem:[#allocation6 + $0x714] sm:$0xf]  ;;  %v5287_v23 = vor.u32 %v7306_v14, %v5284_v15  ;;  %vm4245_vm12 = vcmp.gt.f32.partialorder %v8135_v1, 0.0 }
 0x211   :  { %v6723_v40 = vor.u32 %v7670_v29, %v6722_v28  ;;  %3932 = vmatpush.bf16.msra.mxu0 %v5127_v37  ;;  %3912 = vmatpush.bf16.msrb.mxu2 %v6467_v39  ;;  %v5828_v22 = vld [vmem:[#allocation6 + $0x730] sm:$0xf0]  ;;  %v3695_v35 = vpop.f32.mrf.mxu1  ;;  %v4999_v39 = vor.u32 %v7234_v24, %v4996_v25  ;;  %v3721_v24 = vpop.f32.mrf.mxu3 }
 0x212   :  { %v5831_v27 = vor.u32 %v7442_v5, %v5828_v22  ;;  %v7298_v28 = vld [vmem:[#allocation6 + $0x294] sm:$0xf] }
 0x213   :  { %3945 = vmatpush.bf16.msra.mxu1 %v5383_v38  ;;  %3925 = vmatpush.bf16.msrb.mxu3 %v6723_v40  ;;  %v5252_v29 = vld [vmem:[#allocation6 + $0x2b0] sm:$0xf0] }
 0x214   :  { %3913 = vmatmul.bf16.vlgmr.msrb.gmra.mxu2 %v8082_v31  ;;  %v7434_v37 = vld [vmem:[#allocation6 + $0x6d4] sm:$0xf]  ;;  %v5255_v40 = vor.u32 %v7298_v28, %v5252_v29 }
 0x215   :  { %3957 = vmatpush.bf16.msra.mxu2 %v5671_v42  ;;  %3933 = vmatpush.bf16.msra.mxu0 %v5095_v52  ;;  %v5796_v38 = vld [vmem:[#allocation6 + $0x6f0] sm:$0xf0]  ;;  %v5543_v42 = vor.u32 %v7370_v33, %v5540_v36 }
 0x216   :  { %3926 = vmatmul.bf16.vlgmr.msrb.gmra.mxu3 %v8084_v32  ;;  %v7226_v18 = vld [vmem:[#allocation6 + $0x54] sm:$0xf] }
 0x217   :  { %3970 = vmatpush.bf16.msra.mxu3 %v5927_v43  ;;  %3946 = vmatpush.bf16.msra.mxu1 %v5351_v53  ;;  %v4964_v41 = vld [vmem:[#allocation6 + $0x70] sm:$0xf0]  ;;  %v5799_v43 = vor.u32 %v7434_v37, %v5796_v38 }
 0x218   :  { %v7290_v44 = vld [vmem:[#allocation6 + $0x254] sm:$0xf]  ;;  %v4967_v55 = vor.u32 %v7226_v18, %v4964_v41 }
 0x219   :  { %3958 = vmatpush.bf16.msra.mxu2 %v5639_v56  ;;  %3934 = vmatpush.bf16.msra.mxu0 %v5063_v7  ;;  %v5220_v45 = vld [vmem:[#allocation6 + $0x270] sm:$0xf0] }
 0x21a   :  { %v7362_v46 = vld [vmem:[#allocation6 + $0x494] sm:$0xf]  ;;  %v5223_v56 = vor.u32 %v7290_v44, %v5220_v45 }
 0x21b   :  { %3971 = vmatpush.bf16.msra.mxu3 %v5895_v57  ;;  %3947 = vmatpush.bf16.msra.mxu1 %v5319_v8  ;;  %v5508_v51 = vld [vmem:[#allocation6 + $0x4b0] sm:$0xf0] }
 0x21c   :  { %v7426_v52 = vld [vmem:[#allocation6 + $0x694] sm:$0xf]  ;;  %v5511_v30 = vor.u32 %v7362_v46, %v5508_v51 }
 0x21d   :  { %3959 = vmatpush.bf16.msra.mxu2 %v5607_v12  ;;  %3935 = vmatpush.bf16.msra.mxu0 %v5031_v0  ;;  %v5764_v53 = vld [vmem:[#allocation6 + $0x6b0] sm:$0xf0] }
 0x21e   :  { %v7218_v57 = vld [vmem:[#allocation6 + $0x14] sm:$0xf]  ;;  %v5767_v2 = vor.u32 %v7426_v52, %v5764_v53  ;;  %v8139_v52 = vld [vmem:[#allocation7] sm:$0xff] }
 0x21f   :  { %3972 = vmatpush.bf16.msra.mxu3 %v5863_v13  ;;  %3948 = vmatpush.bf16.msra.mxu1 %v5287_v23  ;;  %v4932_v59 = vld [vmem:[#allocation6 + $0x30] sm:$0xf0]  ;;  %v3708_v23 = vpop.f32.mrf.mxu2  ;;  %v838_v53 = vperm.slane %v8139_v52, 3 }
 0x220   :  { %v7282_v63 = vld [vmem:[#allocation6 + $0x214] sm:$0xf]  ;;  %v4935_v12 = vor.u32 %v7218_v57, %v4932_v59 }
 0x221   :  { %3960 = vmatpush.bf16.msra.mxu2 %v5575_v26  ;;  %3936 = vmatpush.bf16.msra.mxu0 %v4999_v39  ;;  %v5188_v3 = vld [vmem:[#allocation6 + $0x230] sm:$0xf0] }
 0x222   :  { %v7530_v4 = vld [vmem:[#allocation6 + $0x9d4] sm:$0xf]  ;;  %v5191_v13 = vor.u32 %v7282_v63, %v5188_v3 }
 0x223   :  { %3973 = vmatpush.bf16.msra.mxu3 %v5831_v27  ;;  %3949 = vmatpush.bf16.msra.mxu1 %v5255_v40  ;;  %v6180_v21 = vld [vmem:[#allocation6 + $0x9f0] sm:$0xf0] }
 0x224   :  { %v7594_v6 = vld [vmem:[#allocation6 + $0xbd4] sm:$0xf]  ;;  %v6183_v14 = vor.u32 %v7530_v4, %v6180_v21  ;;  %v3732_v4 = vpop.f32.mrf.mxu0  ;;  %v3745_v21 = vpop.f32.mrf.mxu1 }
 0x225   :  { %3961 = vmatpush.bf16.msra.mxu2 %v5543_v42  ;;  %v6436_v7 = vld [vmem:[#allocation6 + $0xbf0] sm:$0xf0]  ;;  %3937 = vmatpush.bf16.msra.mxu0 %v4967_v55 }
 0x226   :  { %v7354_v8 = vld [vmem:[#allocation6 + $0x454] sm:$0xf]  ;;  %v6439_v15 = vor.u32 %v7594_v6, %v6436_v7 }
 0x227   :  { %3974 = vmatpush.bf16.msra.mxu3 %v5799_v43  ;;  %v5476_v9 = vld [vmem:[#allocation6 + $0x470] sm:$0xf0]  ;;  %3950 = vmatpush.bf16.msra.mxu1 %v5223_v56 }
 0x228   :  { %v7418_v10 = vld [vmem:[#allocation6 + $0x654] sm:$0xf]  ;;  %v5479_v22 = vor.u32 %v7354_v8, %v5476_v9  ;;  %v3733_v9 = vadd.f32 %v3732_v4, %v838_v53  ;;  %v3758_v53 = vpop.f32.mrf.mxu2 }
 0x229   :  { %v5732_v11 = vld [vmem:[#allocation6 + $0x670] sm:$0xf0]  ;;  %3962 = vmatpush.bf16.msra.mxu2 %v5511_v30  ;;  %3938 = vmatpush.bf16.msra.mxu0 %v4935_v12 }
 0x22a   :  { %v7522_v16 = vld [vmem:[#allocation6 + $0x994] sm:$0xf]  ;;  %v5735_v0 = vor.u32 %v7418_v10, %v5732_v11 }
 0x22b   :  { %3975 = vmatpush.bf16.msra.mxu3 %v5767_v2  ;;  %v6148_v17 = vld [vmem:[#allocation6 + $0x9b0] sm:$0xf0]  ;;  %3951 = vmatpush.bf16.msra.mxu1 %v5191_v13 }
 0x22c   :  { %v7586_v5 = vld [vmem:[#allocation6 + $0xb94] sm:$0xf]  ;;  %v6151_v37 = vor.u32 %v7522_v16, %v6148_v17  ;;  %3939 = vmatmul.bf16.vlgmr.msra.gmra.mxu0 %v8060_v49 }
 0x22d   :  { %v6404_v25 = vld [vmem:[#allocation6 + $0xbb0] sm:$0xf0]  ;;  %3983 = vmatpush.bf16.msrb.mxu0 %v6183_v14  ;;  %3963 = vmatpush.bf16.msra.mxu2 %v5479_v22  ;;  %v3746_v14 = vadd.f32 %v3745_v21, %v3733_v9  ;;  %v5162_v9 = vld [vmem:[#allocation6 + $0x1d8] sm:$0xf] }
 0x22e   :  { %v7346_v26 = vld [vmem:[#allocation6 + $0x414] sm:$0xf]  ;;  %v6407_v38 = vor.u32 %v7586_v5, %v6404_v25  ;;  %3952 = vmatmul.bf16.vlgmr.msra.gmra.mxu1 %v8062_v50 }
 0x22f   :  { %v5444_v27 = vld [vmem:[#allocation6 + $0x430] sm:$0xf0]  ;;  %3996 = vmatpush.bf16.msrb.mxu1 %v6439_v15  ;;  %3976 = vmatpush.bf16.msra.mxu3 %v5735_v0 }
 0x230   :  { %v7410_v28 = vld [vmem:[#allocation6 + $0x614] sm:$0xf]  ;;  %v5447_v39 = vor.u32 %v7346_v26, %v5444_v27 }
 0x231   :  { %v5700_v29 = vld [vmem:[#allocation6 + $0x630] sm:$0xf0]  ;;  %3984 = vmatpush.bf16.msrb.mxu0 %v6151_v37  ;;  %v3734_v37 = vpop.f32.mrf.mxu0 }
 0x232   :  { %v7658_v33 = vld [vmem:[#allocation6 + $0xdd4] sm:$0xf]  ;;  %v5703_v40 = vor.u32 %v7410_v28, %v5700_v29  ;;  %3964 = vmatpush.bf16.msra.mxu2 %v5447_v39 }
 0x233   :  { %v6692_v34 = vld [vmem:[#allocation6 + $0xdf0] sm:$0xf0]  ;;  %3997 = vmatpush.bf16.msrb.mxu1 %v6407_v38  ;;  %v3747_v38 = vpop.f32.mrf.mxu1 }
 0x234   :  { %v7722_v35 = vld [vmem:[#allocation6 + $0xfd4] sm:$0xf]  ;;  %v6695_v42 = vor.u32 %v7658_v33, %v6692_v34  ;;  %3977 = vmatpush.bf16.msra.mxu3 %v5703_v40  ;;  %v5674_v38 = vld [vmem:[#allocation6 + $0x5d8] sm:$0xf] }
 0x235   :  { %v6948_v36 = vld [vmem:[#allocation6 + $0xff0] sm:$0xf0]  ;;  %3965 = vmatmul.bf16.vlgmr.msra.gmra.mxu2 %v8068_v19 }
 0x236   :  { %v7514_v18 = vld [vmem:[#allocation6 + $0x954] sm:$0xf]  ;;  %v6951_v43 = vor.u32 %v7722_v35, %v6948_v36  ;;  %4009 = vmatpush.bf16.msrb.mxu2 %v6695_v42 }
 0x237   :  { %v6116_v41 = vld [vmem:[#allocation6 + $0x970] sm:$0xf0]  ;;  %3978 = vmatmul.bf16.vlgmr.msra.gmra.mxu3 %v8070_v20 }
 0x238   :  { %v7578_v44 = vld [vmem:[#allocation6 + $0xb54] sm:$0xf]  ;;  %v6119_v54 = vor.u32 %v7514_v18, %v6116_v41  ;;  %4022 = vmatpush.bf16.msrb.mxu3 %v6951_v43 }
 0x239   :  { %v6372_v45 = vld [vmem:[#allocation6 + $0xb70] sm:$0xf0] }
 0x23a   :  { %v7650_v46 = vld [vmem:[#allocation6 + $0xd94] sm:$0xf]  ;;  %v6375_v55 = vor.u32 %v7578_v44, %v6372_v45  ;;  %3985 = vmatpush.bf16.msrb.mxu0 %v6119_v54  ;;  %v3771_v54 = vpop.f32.mrf.mxu3 }
 0x23b   :  { %v6660_v47 = vld [vmem:[#allocation6 + $0xdb0] sm:$0xf0] }
 0x23c   :  { %v7714_v48 = vld [vmem:[#allocation6 + $0xf94] sm:$0xf]  ;;  %v6663_v59 = vor.u32 %v7650_v46, %v6660_v47  ;;  %3998 = vmatpush.bf16.msrb.mxu1 %v6375_v55 }
 0x23d   :  { %v6916_v51 = vld [vmem:[#allocation6 + $0xfb0] sm:$0xf0] }
 0x23e   :  { %v7506_v56 = vld [vmem:[#allocation6 + $0x914] sm:$0xf]  ;;  %v6919_v63 = vor.u32 %v7714_v48, %v6916_v51  ;;  %4010 = vmatpush.bf16.msrb.mxu2 %v6663_v59  ;;  %v3759_v59 = vadd.f32 %v3758_v53, %v3746_v14  ;;  %v7327_v53 = vld [vmem:[#allocation6 + $0x374] sm:$0xf0] }
 0x23f   :  { %v6084_v57 = vld [vmem:[#allocation6 + $0x930] sm:$0xf0] }
 0x240   :  { %v7570_v30 = vld [vmem:[#allocation6 + $0xb14] sm:$0xf]  ;;  %v6087_v10 = vor.u32 %v7506_v56, %v6084_v57  ;;  %4023 = vmatpush.bf16.msrb.mxu3 %v6919_v63  ;;  %v8144_v21 = vadd.f32 %v3771_v54, %v3759_v59  ;;  %v5642_v54 = vld [vmem:[#allocation6 + $0x598] sm:$0xf] }
 0x241   :  { %v6340_v2 = vld [vmem:[#allocation6 + $0xb30] sm:$0xf0] }
 0x242   :  { %v7642_v3 = vld [vmem:[#allocation6 + $0xd54] sm:$0xf]  ;;  %v6343_v11 = vor.u32 %v7570_v30, %v6340_v2  ;;  %3986 = vmatpush.bf16.msrb.mxu0 %v6087_v10  ;;  %v7279_v10 = vld [vmem:[#allocation6 + $0x1f4] sm:$0xf0] }
 0x243   :  { %v6628_v6 = vld [vmem:[#allocation6 + $0xd70] sm:$0xf0] }
 0x244   :  { %v7706_v7 = vld [vmem:[#allocation6 + $0xf54] sm:$0xf]  ;;  %v6631_v15 = vor.u32 %v7642_v3, %v6628_v6  ;;  %3999 = vmatpush.bf16.msrb.mxu1 %v6343_v11  ;;  %v5418_v11 = vld [vmem:[#allocation6 + $0x3d8] sm:$0xf] }
 0x245   :  { %v6884_v8 = vld [vmem:[#allocation6 + $0xf70] sm:$0xf0] }
 0x246   :  { %v7498_v12 = vld [vmem:[#allocation6 + $0x8d4] sm:$0xf]  ;;  %v6887_v16 = vor.u32 %v7706_v7, %v6884_v8  ;;  %4011 = vmatpush.bf16.msrb.mxu2 %v6631_v15 }
 0x247   :  { %v6052_v13 = vld [vmem:[#allocation6 + $0x8f0] sm:$0xf0] }
 0x248   :  { %v7562_v17 = vld [vmem:[#allocation6 + $0xad4] sm:$0xf]  ;;  %v6055_v25 = vor.u32 %v7498_v12, %v6052_v13  ;;  %4024 = vmatpush.bf16.msrb.mxu3 %v6887_v16  ;;  %v7343_v12 = vld [vmem:[#allocation6 + $0x3f4] sm:$0xf0] }
 0x249   :  { %v6308_v5 = vld [vmem:[#allocation6 + $0xaf0] sm:$0xf0] }
 0x24a   :  { %v7634_v22 = vld [vmem:[#allocation6 + $0xd14] sm:$0xf]  ;;  %v6311_v26 = vor.u32 %v7562_v17, %v6308_v5  ;;  %3987 = vmatpush.bf16.msrb.mxu0 %v6055_v25  ;;  %v5386_v25 = vld [vmem:[#allocation6 + $0x398] sm:$0xf] }
 0x24b   :  { %v6596_v0 = vld [vmem:[#allocation6 + $0xd30] sm:$0xf0] }
 0x24c   :  { %v7698_v23 = vld [vmem:[#allocation6 + $0xf14] sm:$0xf]  ;;  %v6599_v29 = vor.u32 %v7634_v22, %v6596_v0  ;;  %4000 = vmatpush.bf16.msrb.mxu1 %v6311_v26  ;;  %v5163_v22 = vor.u32 %v7279_v10, %v5162_v9  ;;  %v5419_v0 = vor.u32 %v7343_v12, %v5418_v11  ;;  %v3784_v9 = vpop.f32.mrf.mxu0  ;;  %v3797_v10 = vpop.f32.mrf.mxu1  ;;  %v7391_v11 = vld [vmem:[#allocation6 + $0x574] sm:$0xf0] }
 0x24d   :  { %v6852_v24 = vld [vmem:[#allocation6 + $0xf30] sm:$0xf0]  ;;  %v5866_v12 = vld [vmem:[#allocation6 + $0x758] sm:$0xf] }
 0x24e   :  { %v7490_v27 = vld [vmem:[#allocation6 + $0x894] sm:$0xf]  ;;  %v6855_v33 = vor.u32 %v7698_v23, %v6852_v24  ;;  %4012 = vmatpush.bf16.msrb.mxu2 %v6599_v29  ;;  %v5130_v23 = vld [vmem:[#allocation6 + $0x198] sm:$0xf]  ;;  %v3773_v29 = vpop.f32.mrf.mxu3 }
 0x24f   :  { %v6020_v28 = vld [vmem:[#allocation6 + $0x8b0] sm:$0xf0]  ;;  %v7271_v24 = vld [vmem:[#allocation6 + $0x1b4] sm:$0xf0] }
 0x250   :  { %v7554_v34 = vld [vmem:[#allocation6 + $0xa94] sm:$0xf]  ;;  %v6023_v41 = vor.u32 %v7490_v27, %v6020_v28  ;;  %4025 = vmatpush.bf16.msrb.mxu3 %v6855_v33  ;;  %v3760_v28 = vpop.f32.mrf.mxu2  ;;  %v7335_v33 = vld [vmem:[#allocation6 + $0x3b4] sm:$0xf0] }
 0x251   :  { %v6276_v35 = vld [vmem:[#allocation6 + $0xab0] sm:$0xf0]  ;;  %v5834_v28 = vld [vmem:[#allocation6 + $0x718] sm:$0xf] }
 0x252   :  { %v7626_v36 = vld [vmem:[#allocation6 + $0xcd4] sm:$0xf]  ;;  %v6279_v42 = vor.u32 %v7554_v34, %v6276_v35  ;;  %3988 = vmatpush.bf16.msrb.mxu0 %v6023_v41  ;;  %v5131_v41 = vor.u32 %v7271_v24, %v5130_v23  ;;  %v5290_v24 = vld [vmem:[#allocation6 + $0x2d8] sm:$0xf] }
 0x253   :  { %v6564_v39 = vld [vmem:[#allocation6 + $0xcf0] sm:$0xf0]  ;;  %v7447_v29 = vld [vmem:[#allocation6 + $0x734] sm:$0xf0] }
 0x254   :  { %v7690_v40 = vld [vmem:[#allocation6 + $0xed4] sm:$0xf]  ;;  %v6567_v45 = vor.u32 %v7626_v36, %v6564_v39  ;;  %4001 = vmatpush.bf16.msrb.mxu1 %v6279_v42  ;;  %v7407_v39 = vld [vmem:[#allocation6 + $0x5f4] sm:$0xf0]  ;;  %v5387_v42 = vor.u32 %v7335_v33, %v5386_v25 }
 0x255   :  { %v6820_v18 = vld [vmem:[#allocation6 + $0xef0] sm:$0xf0]  ;;  %v7311_v25 = vld [vmem:[#allocation6 + $0x2f4] sm:$0xf0] }
 0x256   :  { %v7482_v43 = vld [vmem:[#allocation6 + $0x854] sm:$0xf]  ;;  %v6823_v46 = vor.u32 %v7690_v40, %v6820_v18  ;;  %4013 = vmatpush.bf16.msrb.mxu2 %v6567_v45  ;;  %v5930_v40 = vld [vmem:[#allocation6 + $0x7d8] sm:$0xf]  ;;  %v5291_v33 = vor.u32 %v7311_v25, %v5290_v24 }
 0x257   :  { %v5988_v44 = vld [vmem:[#allocation6 + $0x870] sm:$0xf0]  ;;  %v7471_v18 = vld [vmem:[#allocation6 + $0x7f4] sm:$0xf0] }
 0x258   :  { %v7546_v47 = vld [vmem:[#allocation6 + $0xa54] sm:$0xf]  ;;  %v5991_v63 = vor.u32 %v7482_v43, %v5988_v44  ;;  %4026 = vmatpush.bf16.msrb.mxu3 %v6823_v46  ;;  %v5098_v45 = vld [vmem:[#allocation6 + $0x158] sm:$0xf] }
 0x259   :  { %v6244_v48 = vld [vmem:[#allocation6 + $0xa70] sm:$0xf0]  ;;  %v7263_v46 = vld [vmem:[#allocation6 + $0x174] sm:$0xf0] }
 0x25a   :  { %v7618_v51 = vld [vmem:[#allocation6 + $0xc94] sm:$0xf]  ;;  %v6247_v30 = vor.u32 %v7546_v47, %v6244_v48  ;;  %3989 = vmatpush.bf16.msrb.mxu0 %v5991_v63  ;;  %v5675_v47 = vor.u32 %v7407_v39, %v5674_v38  ;;  %v5931_v48 = vor.u32 %v7471_v18, %v5930_v40  ;;  %v5099_v59 = vor.u32 %v7263_v46, %v5098_v45  ;;  %v5258_v38 = vld [vmem:[#allocation6 + $0x298] sm:$0xf]  ;;  %v3786_v18 = vpop.f32.mrf.mxu0 }
 0x25b   :  { %v6532_v55 = vld [vmem:[#allocation6 + $0xcb0] sm:$0xf0]  ;;  %v7303_v39 = vld [vmem:[#allocation6 + $0x2b4] sm:$0xf0] }
 0x25c   :  { %v7682_v56 = vld [vmem:[#allocation6 + $0xe94] sm:$0xf]  ;;  %v6535_v6 = vor.u32 %v7618_v51, %v6532_v55  ;;  %4002 = vmatpush.bf16.msrb.mxu1 %v6247_v30  ;;  %v5354_v51 = vld [vmem:[#allocation6 + $0x358] sm:$0xf]  ;;  %v5259_v46 = vor.u32 %v7303_v39, %v5258_v38 }
 0x25d   :  { %v6788_v57 = vld [vmem:[#allocation6 + $0xeb0] sm:$0xf0]  ;;  %v7399_v55 = vld [vmem:[#allocation6 + $0x5b4] sm:$0xf0]  ;;  %v5355_v63 = vor.u32 %v7327_v53, %v5354_v51 }
 0x25e   :  { %v7474_v2 = vld [vmem:[#allocation6 + $0x814] sm:$0xf]  ;;  %v6791_v7 = vor.u32 %v7682_v56, %v6788_v57  ;;  %4014 = vmatpush.bf16.msrb.mxu2 %v6535_v6  ;;  %v5898_v56 = vld [vmem:[#allocation6 + $0x798] sm:$0xf] }
 0x25f   :  { %v5956_v3 = vld [vmem:[#allocation6 + $0x830] sm:$0xf0]  ;;  %v7463_v57 = vld [vmem:[#allocation6 + $0x7b4] sm:$0xf0] }
 0x260   :  { %v7538_v4 = vld [vmem:[#allocation6 + $0xa14] sm:$0xf]  ;;  %v5959_v17 = vor.u32 %v7474_v2, %v5956_v3  ;;  %4027 = vmatpush.bf16.msrb.mxu3 %v6791_v7  ;;  %v5066_v30 = vld [vmem:[#allocation6 + $0x118] sm:$0xf]  ;;  %v5643_v3 = vor.u32 %v7399_v55, %v5642_v54 }
 0x261   :  { %v6212_v8 = vld [vmem:[#allocation6 + $0xa30] sm:$0xf0]  ;;  %v7255_v2 = vld [vmem:[#allocation6 + $0x134] sm:$0xf0] }
 0x262   :  { %v7610_v13 = vld [vmem:[#allocation6 + $0xc54] sm:$0xf]  ;;  %v6215_v5 = vor.u32 %v7538_v4, %v6212_v8  ;;  %3990 = vmatpush.bf16.msrb.mxu0 %v5959_v17  ;;  %v5899_v4 = vor.u32 %v7463_v57, %v5898_v56  ;;  %v5322_v6 = vld [vmem:[#allocation6 + $0x318] sm:$0xf]  ;;  %v3810_v57 = vpop.f32.mrf.mxu2 }
 0x263   :  { %v6500_v14 = vld [vmem:[#allocation6 + $0xc70] sm:$0xf0]  ;;  %v7319_v7 = vld [vmem:[#allocation6 + $0x334] sm:$0xf0] }
 0x264   :  { %v7674_v15 = vld [vmem:[#allocation6 + $0xe54] sm:$0xf]  ;;  %v6503_v26 = vor.u32 %v7610_v13, %v6500_v14  ;;  %4003 = vmatpush.bf16.msrb.mxu1 %v6215_v5  ;;  %v5610_v8 = vld [vmem:[#allocation6 + $0x558] sm:$0xf]  ;;  %v3785_v14 = vadd.f32 %v3784_v9, %v8144_v21 }
 0x265   :  { %v6756_v16 = vld [vmem:[#allocation6 + $0xe70] sm:$0xf0]  ;;  %3991 = vmatmul.bf16.vlgmr.msrb.gmra.mxu0 %v8076_v60  ;;  %v7455_v13 = vld [vmem:[#allocation6 + $0x774] sm:$0xf0] }
 0x266   :  { %v6759_v27 = vor.u32 %v7674_v15, %v6756_v16  ;;  %v7602_v34 = vld [vmem:[#allocation6 + $0xc14] sm:$0xf]  ;;  %4035 = vmatpush.bf16.msra.mxu0 %v5163_v22  ;;  %4015 = vmatpush.bf16.msrb.mxu2 %v6503_v26  ;;  %v5067_v15 = vor.u32 %v7255_v2, %v5066_v30  ;;  %v5323_v16 = vor.u32 %v7319_v7, %v5322_v6  ;;  %v5034_v17 = vld [vmem:[#allocation6 + $0xd8] sm:$0xf] }
 0x267   :  { %v6468_v35 = vld [vmem:[#allocation6 + $0xc30] sm:$0xf0]  ;;  %4004 = vmatmul.bf16.vlgmr.msrb.gmra.mxu1 %v8078_v61  ;;  %v7247_v5 = vld [vmem:[#allocation6 + $0xf4] sm:$0xf0]  ;;  %v3798_v22 = vadd.f32 %v3797_v10, %v3785_v14  ;;  %v5867_v23 = vor.u32 %v7455_v13, %v5866_v12 }
 0x268   :  { %v7666_v36 = vld [vmem:[#allocation6 + $0xe14] sm:$0xf]  ;;  %4048 = vmatpush.bf16.msra.mxu1 %v5419_v0  ;;  %4028 = vmatpush.bf16.msrb.mxu3 %v6759_v27  ;;  %v6471_v43 = vor.u32 %v7602_v34, %v6468_v35  ;;  %v5611_v0 = vor.u32 %v7391_v11, %v5610_v8  ;;  %v5578_v26 = vld [vmem:[#allocation6 + $0x518] sm:$0xf]  ;;  %v5035_v21 = vor.u32 %v7247_v5, %v5034_v17 }
 0x269   :  { %v6724_v37 = vld [vmem:[#allocation6 + $0xe30] sm:$0xf0]  ;;  %v7383_v27 = vld [vmem:[#allocation6 + $0x534] sm:$0xf0] }
 0x26a   :  { %v6727_v44 = vor.u32 %v7666_v36, %v6724_v37  ;;  %4036 = vmatpush.bf16.msra.mxu0 %v5131_v41  ;;  %4016 = vmatpush.bf16.msrb.mxu2 %v6471_v43  ;;  %v5002_v34 = vld [vmem:[#allocation6 + $0x98] sm:$0xf]  ;;  %v5579_v36 = vor.u32 %v7383_v27, %v5578_v26  ;;  %v5835_v37 = vor.u32 %v7447_v29, %v5834_v28  ;;  %v3799_v41 = vpop.f32.mrf.mxu1 }
 0x26b   :  { %v7239_v35 = vld [vmem:[#allocation6 + $0xb4] sm:$0xf0] }
 0x26c   :  { %4049 = vmatpush.bf16.msra.mxu1 %v5387_v42  ;;  %4029 = vmatpush.bf16.msrb.mxu3 %v6727_v44  ;;  %v5546_v40 = vld [vmem:[#allocation6 + $0x4d8] sm:$0xf]  ;;  %v5003_v45 = vor.u32 %v7239_v35, %v5002_v34  ;;  %v3812_v35 = vpop.f32.mrf.mxu2 }
 0x26d   :  { %4017 = vmatmul.bf16.vlgmr.msrb.gmra.mxu2 %v8082_v31  ;;  %v7375_v42 = vld [vmem:[#allocation6 + $0x4f4] sm:$0xf0] }
 0x26e   :  { %4061 = vmatpush.bf16.msra.mxu2 %v5675_v47  ;;  %4037 = vmatpush.bf16.msra.mxu0 %v5099_v59  ;;  %v5802_v43 = vld [vmem:[#allocation6 + $0x6d8] sm:$0xf]  ;;  %v5547_v51 = vor.u32 %v7375_v42, %v5546_v40  ;;  %v3823_v59 = vpop.f32.mrf.mxu3 }
 0x26f   :  { %4030 = vmatmul.bf16.vlgmr.msrb.gmra.mxu3 %v8084_v32  ;;  %v7439_v44 = vld [vmem:[#allocation6 + $0x6f4] sm:$0xf0] }
 0x270   :  { %4074 = vmatpush.bf16.msra.mxu3 %v5931_v48  ;;  %4050 = vmatpush.bf16.msra.mxu1 %v5355_v63  ;;  %v4970_v47 = vld [vmem:[#allocation6 + $0x58] sm:$0xf]  ;;  %v5803_v53 = vor.u32 %v7439_v44, %v5802_v43 }
 0x271   :  { %v7231_v48 = vld [vmem:[#allocation6 + $0x74] sm:$0xf0] }
 0x272   :  { %4062 = vmatpush.bf16.msra.mxu2 %v5643_v3  ;;  %4038 = vmatpush.bf16.msra.mxu0 %v5067_v15  ;;  %v5226_v54 = vld [vmem:[#allocation6 + $0x258] sm:$0xf]  ;;  %v3811_v3 = vadd.f32 %v3810_v57, %v3798_v22 }
 0x273   :  { %v7295_v55 = vld [vmem:[#allocation6 + $0x274] sm:$0xf0] }
 0x274   :  { %4075 = vmatpush.bf16.msra.mxu3 %v5899_v4  ;;  %4051 = vmatpush.bf16.msra.mxu1 %v5323_v16  ;;  %v5514_v56 = vld [vmem:[#allocation6 + $0x498] sm:$0xf]  ;;  %v4971_v4 = vor.u32 %v7231_v48, %v4970_v47  ;;  %v5227_v6 = vor.u32 %v7295_v55, %v5226_v54  ;;  %v8151_v10 = vadd.f32 %v3823_v59, %v3811_v3  ;;  %v839_v3 = vperm.slane %v8139_v52, 4 }
 0x275   :  { %v7367_v63 = vld [vmem:[#allocation6 + $0x4b4] sm:$0xf0] }
 0x276   :  { %4063 = vmatpush.bf16.msra.mxu2 %v5611_v0  ;;  %4039 = vmatpush.bf16.msra.mxu0 %v5035_v21  ;;  %v5770_v30 = vld [vmem:[#allocation6 + $0x698] sm:$0xf]  ;;  %v5515_v11 = vor.u32 %v7367_v63, %v5514_v56  ;;  %vm4246_vm13 = vcmp.gt.f32.partialorder %v8151_v10, 0.0 }
 0x277   :  { %v7431_v2 = vld [vmem:[#allocation6 + $0x6b4] sm:$0xf0] }
 0x278   :  { %4076 = vmatpush.bf16.msra.mxu3 %v5867_v23  ;;  %4052 = vmatpush.bf16.msra.mxu1 %v5291_v33  ;;  %v4938_v7 = vld [vmem:[#allocation6 + $0x18] sm:$0xf]  ;;  %v5771_v12 = vor.u32 %v7431_v2, %v5770_v30 }
 0x279   :  { %v7223_v8 = vld [vmem:[#allocation6 + $0x34] sm:$0xf0] }
 0x27a   :  { %4064 = vmatpush.bf16.msra.mxu2 %v5579_v36  ;;  %4040 = vmatpush.bf16.msra.mxu0 %v5003_v45  ;;  %v5194_v9 = vld [vmem:[#allocation6 + $0x218] sm:$0xf]  ;;  %v4939_v24 = vor.u32 %v7223_v8, %v4938_v7  ;;  %v3825_v36 = vpop.f32.mrf.mxu3 }
 0x27b   :  { %v7287_v13 = vld [vmem:[#allocation6 + $0x234] sm:$0xf0] }
 0x27c   :  { %4077 = vmatpush.bf16.msra.mxu3 %v5835_v37  ;;  %4053 = vmatpush.bf16.msra.mxu1 %v5259_v46  ;;  %v6186_v14 = vld [vmem:[#allocation6 + $0x9d8] sm:$0xf]  ;;  %v5195_v25 = vor.u32 %v7287_v13, %v5194_v9 }
 0x27d   :  { %v7535_v15 = vld [vmem:[#allocation6 + $0x9f4] sm:$0xf0] }
 0x27e   :  { %4065 = vmatpush.bf16.msra.mxu2 %v5547_v51  ;;  %v6442_v16 = vld [vmem:[#allocation6 + $0xbd8] sm:$0xf]  ;;  %4041 = vmatpush.bf16.msra.mxu0 %v4971_v4  ;;  %v6187_v26 = vor.u32 %v7535_v15, %v6186_v14  ;;  %v3836_v15 = vpop.f32.mrf.mxu0 }
 0x27f   :  { %v7599_v17 = vld [vmem:[#allocation6 + $0xbf4] sm:$0xf0]  ;;  %v3837_v52 = vadd.f32 %v3836_v15, %v839_v3  ;;  %v3862_v3 = vpop.f32.mrf.mxu2 }
 0x280   :  { %4078 = vmatpush.bf16.msra.mxu3 %v5803_v53  ;;  %v5482_v5 = vld [vmem:[#allocation6 + $0x458] sm:$0xf]  ;;  %4054 = vmatpush.bf16.msra.mxu1 %v5227_v6  ;;  %v6443_v27 = vor.u32 %v7599_v17, %v6442_v16  ;;  %v3849_v16 = vpop.f32.mrf.mxu1 }
 0x281   :  { %v7359_v22 = vld [vmem:[#allocation6 + $0x474] sm:$0xf0] }
 0x282   :  { %v5738_v0 = vld [vmem:[#allocation6 + $0x658] sm:$0xf]  ;;  %4066 = vmatpush.bf16.msra.mxu2 %v5515_v11  ;;  %v5483_v33 = vor.u32 %v7359_v22, %v5482_v5  ;;  %4042 = vmatpush.bf16.msra.mxu0 %v4939_v24 }
 0x283   :  { %v7423_v23 = vld [vmem:[#allocation6 + $0x674] sm:$0xf0] }
 0x284   :  { %4079 = vmatpush.bf16.msra.mxu3 %v5771_v12  ;;  %v6154_v28 = vld [vmem:[#allocation6 + $0x998] sm:$0xf]  ;;  %v5739_v34 = vor.u32 %v7423_v23, %v5738_v0  ;;  %4055 = vmatpush.bf16.msra.mxu1 %v5195_v25 }
 0x285   :  { %v7527_v29 = vld [vmem:[#allocation6 + $0x9b4] sm:$0xf0]  ;;  %4043 = vmatmul.bf16.vlgmr.msra.gmra.mxu0 %v8060_v49 }
 0x286   :  { %v6410_v21 = vld [vmem:[#allocation6 + $0xb98] sm:$0xf]  ;;  %4087 = vmatpush.bf16.msrb.mxu0 %v6187_v26  ;;  %v6155_v45 = vor.u32 %v7527_v29, %v6154_v28  ;;  %4067 = vmatpush.bf16.msra.mxu2 %v5483_v33  ;;  %v3850_v26 = vadd.f32 %v3849_v16, %v3837_v52  ;;  %v7275_v52 = vld [vmem:[#allocation6 + $0x1dc] sm:$0xf] }
 0x287   :  { %v7591_v37 = vld [vmem:[#allocation6 + $0xbb4] sm:$0xf0]  ;;  %4056 = vmatmul.bf16.vlgmr.msra.gmra.mxu1 %v8062_v50 }
 0x288   :  { %v5450_v38 = vld [vmem:[#allocation6 + $0x418] sm:$0xf]  ;;  %4100 = vmatpush.bf16.msrb.mxu1 %v6443_v27  ;;  %v6411_v46 = vor.u32 %v7591_v37, %v6410_v21  ;;  %4080 = vmatpush.bf16.msra.mxu3 %v5739_v34 }
 0x289   :  { %v7351_v39 = vld [vmem:[#allocation6 + $0x434] sm:$0xf0] }
 0x28a   :  { %v5706_v40 = vld [vmem:[#allocation6 + $0x618] sm:$0xf]  ;;  %v5451_v47 = vor.u32 %v7351_v39, %v5450_v38  ;;  %4088 = vmatpush.bf16.msrb.mxu0 %v6155_v45  ;;  %v3838_v45 = vpop.f32.mrf.mxu0 }
 0x28b   :  { %v7415_v18 = vld [vmem:[#allocation6 + $0x634] sm:$0xf0] }
 0x28c   :  { %v6698_v41 = vld [vmem:[#allocation6 + $0xdd8] sm:$0xf]  ;;  %v5707_v48 = vor.u32 %v7415_v18, %v5706_v40  ;;  %4101 = vmatpush.bf16.msrb.mxu1 %v6411_v46  ;;  %4068 = vmatpush.bf16.msra.mxu2 %v5451_v47  ;;  %v3851_v46 = vpop.f32.mrf.mxu1 }
 0x28d   :  { %v7663_v42 = vld [vmem:[#allocation6 + $0xdf4] sm:$0xf0]  ;;  %v7403_v46 = vld [vmem:[#allocation6 + $0x5dc] sm:$0xf] }
 0x28e   :  { %v6954_v43 = vld [vmem:[#allocation6 + $0xfd8] sm:$0xf]  ;;  %v6699_v54 = vor.u32 %v7663_v42, %v6698_v41  ;;  %4081 = vmatpush.bf16.msra.mxu3 %v5707_v48 }
 0x28f   :  { %v7727_v44 = vld [vmem:[#allocation6 + $0xff4] sm:$0xf0]  ;;  %4069 = vmatmul.bf16.vlgmr.msra.gmra.mxu2 %v8068_v19 }
 0x290   :  { %v6122_v51 = vld [vmem:[#allocation6 + $0x958] sm:$0xf]  ;;  %v6955_v55 = vor.u32 %v7727_v44, %v6954_v43  ;;  %4113 = vmatpush.bf16.msrb.mxu2 %v6699_v54 }
 0x291   :  { %v7519_v53 = vld [vmem:[#allocation6 + $0x974] sm:$0xf0]  ;;  %4082 = vmatmul.bf16.vlgmr.msra.gmra.mxu3 %v8070_v20 }
 0x292   :  { %v6378_v56 = vld [vmem:[#allocation6 + $0xb58] sm:$0xf]  ;;  %v6123_v4 = vor.u32 %v7519_v53, %v6122_v51  ;;  %4126 = vmatpush.bf16.msrb.mxu3 %v6955_v55 }
 0x293   :  { %v7583_v57 = vld [vmem:[#allocation6 + $0xb74] sm:$0xf0] }
 0x294   :  { %v6666_v59 = vld [vmem:[#allocation6 + $0xd98] sm:$0xf]  ;;  %v6379_v6 = vor.u32 %v7583_v57, %v6378_v56  ;;  %4089 = vmatpush.bf16.msrb.mxu0 %v6123_v4  ;;  %v3875_v4 = vpop.f32.mrf.mxu3 }
 0x295   :  { %v7655_v63 = vld [vmem:[#allocation6 + $0xdb4] sm:$0xf0] }
 0x296   :  { %v6922_v30 = vld [vmem:[#allocation6 + $0xf98] sm:$0xf]  ;;  %v6667_v9 = vor.u32 %v7655_v63, %v6666_v59  ;;  %4102 = vmatpush.bf16.msrb.mxu1 %v6379_v6 }
 0x297   :  { %v7719_v2 = vld [vmem:[#allocation6 + $0xfb4] sm:$0xf0] }
 0x298   :  { %v6090_v7 = vld [vmem:[#allocation6 + $0x918] sm:$0xf]  ;;  %v6923_v11 = vor.u32 %v7719_v2, %v6922_v30  ;;  %4114 = vmatpush.bf16.msrb.mxu2 %v6667_v9  ;;  %v3863_v9 = vadd.f32 %v3862_v3, %v3850_v26  ;;  %v5356_v3 = vld [vmem:[#allocation6 + $0x378] sm:$0xf0] }
 0x299   :  { %v7511_v8 = vld [vmem:[#allocation6 + $0x934] sm:$0xf0] }
 0x29a   :  { %v6346_v12 = vld [vmem:[#allocation6 + $0xb18] sm:$0xf]  ;;  %v6091_v0 = vor.u32 %v7511_v8, %v6090_v7  ;;  %4127 = vmatpush.bf16.msrb.mxu3 %v6923_v11  ;;  %v8158_v16 = vadd.f32 %v3875_v4, %v3863_v9  ;;  %v7395_v4 = vld [vmem:[#allocation6 + $0x59c] sm:$0xf] }
 0x29b   :  { %v7575_v13 = vld [vmem:[#allocation6 + $0xb34] sm:$0xf0] }
 0x29c   :  { %v6634_v14 = vld [vmem:[#allocation6 + $0xd58] sm:$0xf]  ;;  %v6347_v23 = vor.u32 %v7575_v13, %v6346_v12  ;;  %4090 = vmatpush.bf16.msrb.mxu0 %v6091_v0  ;;  %v5164_v0 = vld [vmem:[#allocation6 + $0x1f8] sm:$0xf0] }
 0x29d   :  { %v7647_v17 = vld [vmem:[#allocation6 + $0xd74] sm:$0xf0] }
 0x29e   :  { %v6890_v5 = vld [vmem:[#allocation6 + $0xf58] sm:$0xf]  ;;  %v6635_v27 = vor.u32 %v7647_v17, %v6634_v14  ;;  %4103 = vmatpush.bf16.msrb.mxu1 %v6347_v23  ;;  %v7339_v23 = vld [vmem:[#allocation6 + $0x3dc] sm:$0xf] }
 0x29f   :  { %v7711_v22 = vld [vmem:[#allocation6 + $0xf74] sm:$0xf0] }
 0x2a0   :  { %v6058_v24 = vld [vmem:[#allocation6 + $0x8d8] sm:$0xf]  ;;  %v6891_v28 = vor.u32 %v7711_v22, %v6890_v5  ;;  %4115 = vmatpush.bf16.msrb.mxu2 %v6635_v27 }
 0x2a1   :  { %v7503_v25 = vld [vmem:[#allocation6 + $0x8f4] sm:$0xf0] }
 0x2a2   :  { %v6314_v29 = vld [vmem:[#allocation6 + $0xad8] sm:$0xf]  ;;  %v6059_v37 = vor.u32 %v7503_v25, %v6058_v24  ;;  %4128 = vmatpush.bf16.msrb.mxu3 %v6891_v28  ;;  %v5420_v24 = vld [vmem:[#allocation6 + $0x3f8] sm:$0xf0] }
 0x2a3   :  { %v7567_v21 = vld [vmem:[#allocation6 + $0xaf4] sm:$0xf0] }
 0x2a4   :  { %v6602_v33 = vld [vmem:[#allocation6 + $0xd18] sm:$0xf]  ;;  %v6315_v38 = vor.u32 %v7567_v21, %v6314_v29  ;;  %4091 = vmatpush.bf16.msrb.mxu0 %v6059_v37  ;;  %v7331_v37 = vld [vmem:[#allocation6 + $0x39c] sm:$0xf] }
 0x2a5   :  { %v7639_v34 = vld [vmem:[#allocation6 + $0xd34] sm:$0xf0] }
 0x2a6   :  { %v6858_v35 = vld [vmem:[#allocation6 + $0xf18] sm:$0xf]  ;;  %v6603_v18 = vor.u32 %v7639_v34, %v6602_v33  ;;  %4104 = vmatpush.bf16.msrb.mxu1 %v6315_v38  ;;  %v5167_v33 = vor.u32 %v7275_v52, %v5164_v0  ;;  %v5423_v34 = vor.u32 %v7339_v23, %v5420_v24  ;;  %v3888_v52 = vpop.f32.mrf.mxu0  ;;  %v3901_v0 = vpop.f32.mrf.mxu1  ;;  %v5612_v23 = vld [vmem:[#allocation6 + $0x578] sm:$0xf0] }
 0x2a7   :  { %v7703_v36 = vld [vmem:[#allocation6 + $0xf34] sm:$0xf0]  ;;  %v7451_v24 = vld [vmem:[#allocation6 + $0x75c] sm:$0xf] }
 0x2a8   :  { %v6026_v39 = vld [vmem:[#allocation6 + $0x898] sm:$0xf]  ;;  %v6859_v41 = vor.u32 %v7703_v36, %v6858_v35  ;;  %4116 = vmatpush.bf16.msrb.mxu2 %v6603_v18  ;;  %v7267_v35 = vld [vmem:[#allocation6 + $0x19c] sm:$0xf]  ;;  %v3877_v18 = vpop.f32.mrf.mxu3 }
 0x2a9   :  { %v7495_v40 = vld [vmem:[#allocation6 + $0x8b4] sm:$0xf0]  ;;  %v5132_v36 = vld [vmem:[#allocation6 + $0x1b8] sm:$0xf0] }
 0x2aa   :  { %v6282_v42 = vld [vmem:[#allocation6 + $0xa98] sm:$0xf]  ;;  %v6027_v53 = vor.u32 %v7495_v40, %v6026_v39  ;;  %4129 = vmatpush.bf16.msrb.mxu3 %v6859_v41  ;;  %v3864_v40 = vpop.f32.mrf.mxu2  ;;  %v5388_v41 = vld [vmem:[#allocation6 + $0x3b8] sm:$0xf0] }
 0x2ab   :  { %v7559_v43 = vld [vmem:[#allocation6 + $0xab4] sm:$0xf0]  ;;  %v7443_v40 = vld [vmem:[#allocation6 + $0x71c] sm:$0xf] }
 0x2ac   :  { %v6570_v44 = vld [vmem:[#allocation6 + $0xcd8] sm:$0xf]  ;;  %v6283_v54 = vor.u32 %v7559_v43, %v6282_v42  ;;  %4092 = vmatpush.bf16.msrb.mxu0 %v6027_v53  ;;  %v5135_v53 = vor.u32 %v7267_v35, %v5132_v36  ;;  %v7307_v36 = vld [vmem:[#allocation6 + $0x2dc] sm:$0xf] }
 0x2ad   :  { %v7631_v47 = vld [vmem:[#allocation6 + $0xcf4] sm:$0xf0]  ;;  %v5836_v18 = vld [vmem:[#allocation6 + $0x738] sm:$0xf0] }
 0x2ae   :  { %v6826_v48 = vld [vmem:[#allocation6 + $0xed8] sm:$0xf]  ;;  %v6571_v57 = vor.u32 %v7631_v47, %v6570_v44  ;;  %4105 = vmatpush.bf16.msrb.mxu1 %v6283_v54  ;;  %v5676_v47 = vld [vmem:[#allocation6 + $0x5f8] sm:$0xf0]  ;;  %v5391_v54 = vor.u32 %v7331_v37, %v5388_v41 }
 0x2af   :  { %v7695_v51 = vld [vmem:[#allocation6 + $0xef4] sm:$0xf0]  ;;  %v5292_v37 = vld [vmem:[#allocation6 + $0x2f8] sm:$0xf0] }
 0x2b0   :  { %v5994_v55 = vld [vmem:[#allocation6 + $0x858] sm:$0xf]  ;;  %v6827_v59 = vor.u32 %v7695_v51, %v6826_v48  ;;  %4117 = vmatpush.bf16.msrb.mxu2 %v6571_v57  ;;  %v7467_v48 = vld [vmem:[#allocation6 + $0x7dc] sm:$0xf]  ;;  %v5295_v41 = vor.u32 %v7307_v36, %v5292_v37 }
 0x2b1   :  { %v7487_v56 = vld [vmem:[#allocation6 + $0x874] sm:$0xf0]  ;;  %v5932_v51 = vld [vmem:[#allocation6 + $0x7f8] sm:$0xf0] }
 0x2b2   :  { %v6250_v63 = vld [vmem:[#allocation6 + $0xa58] sm:$0xf]  ;;  %v5995_v11 = vor.u32 %v7487_v56, %v5994_v55  ;;  %4130 = vmatpush.bf16.msrb.mxu3 %v6827_v59  ;;  %v7259_v57 = vld [vmem:[#allocation6 + $0x15c] sm:$0xf] }
 0x2b3   :  { %v7551_v30 = vld [vmem:[#allocation6 + $0xa74] sm:$0xf0]  ;;  %v5100_v59 = vld [vmem:[#allocation6 + $0x178] sm:$0xf0] }
 0x2b4   :  { %v6538_v2 = vld [vmem:[#allocation6 + $0xc98] sm:$0xf]  ;;  %v6251_v12 = vor.u32 %v7551_v30, %v6250_v63  ;;  %4093 = vmatpush.bf16.msrb.mxu0 %v5995_v11  ;;  %v5679_v63 = vor.u32 %v7403_v46, %v5676_v47  ;;  %v5935_v30 = vor.u32 %v7467_v48, %v5932_v51  ;;  %v5103_v9 = vor.u32 %v7259_v57, %v5100_v59  ;;  %v7299_v46 = vld [vmem:[#allocation6 + $0x29c] sm:$0xf]  ;;  %v3890_v51 = vpop.f32.mrf.mxu0 }
 0x2b5   :  { %v7623_v6 = vld [vmem:[#allocation6 + $0xcb4] sm:$0xf0]  ;;  %v5260_v47 = vld [vmem:[#allocation6 + $0x2b8] sm:$0xf0] }
 0x2b6   :  { %v6794_v7 = vld [vmem:[#allocation6 + $0xe98] sm:$0xf]  ;;  %v6539_v17 = vor.u32 %v7623_v6, %v6538_v2  ;;  %4106 = vmatpush.bf16.msrb.mxu1 %v6251_v12  ;;  %v7323_v2 = vld [vmem:[#allocation6 + $0x35c] sm:$0xf]  ;;  %v5263_v59 = vor.u32 %v7299_v46, %v5260_v47 }
 0x2b7   :  { %v7687_v8 = vld [vmem:[#allocation6 + $0xeb4] sm:$0xf0]  ;;  %v5644_v6 = vld [vmem:[#allocation6 + $0x5b8] sm:$0xf0]  ;;  %v5359_v11 = vor.u32 %v7323_v2, %v5356_v3 }
 0x2b8   :  { %v5962_v13 = vld [vmem:[#allocation6 + $0x818] sm:$0xf]  ;;  %v6795_v5 = vor.u32 %v7687_v8, %v6794_v7  ;;  %4118 = vmatpush.bf16.msrb.mxu2 %v6539_v17  ;;  %v7459_v7 = vld [vmem:[#allocation6 + $0x79c] sm:$0xf] }
 0x2b9   :  { %v7479_v14 = vld [vmem:[#allocation6 + $0x834] sm:$0xf0]  ;;  %v5900_v8 = vld [vmem:[#allocation6 + $0x7b8] sm:$0xf0] }
 0x2ba   :  { %v6218_v15 = vld [vmem:[#allocation6 + $0xa18] sm:$0xf]  ;;  %v5963_v29 = vor.u32 %v7479_v14, %v5962_v13  ;;  %4131 = vmatpush.bf16.msrb.mxu3 %v6795_v5  ;;  %v7251_v12 = vld [vmem:[#allocation6 + $0x11c] sm:$0xf]  ;;  %v5647_v14 = vor.u32 %v7395_v4, %v5644_v6 }
 0x2bb   :  { %v7543_v22 = vld [vmem:[#allocation6 + $0xa34] sm:$0xf0]  ;;  %v5068_v13 = vld [vmem:[#allocation6 + $0x138] sm:$0xf0] }
 0x2bc   :  { %v6506_v25 = vld [vmem:[#allocation6 + $0xc58] sm:$0xf]  ;;  %v6219_v21 = vor.u32 %v7543_v22, %v6218_v15  ;;  %4094 = vmatpush.bf16.msrb.mxu0 %v5963_v29  ;;  %v5903_v15 = vor.u32 %v7459_v7, %v5900_v8  ;;  %v7315_v17 = vld [vmem:[#allocation6 + $0x31c] sm:$0xf]  ;;  %v3914_v8 = vpop.f32.mrf.mxu2 }
 0x2bd   :  { %v7615_v26 = vld [vmem:[#allocation6 + $0xc74] sm:$0xf0]  ;;  %v5324_v5 = vld [vmem:[#allocation6 + $0x338] sm:$0xf0] }
 0x2be   :  { %v6762_v27 = vld [vmem:[#allocation6 + $0xe58] sm:$0xf]  ;;  %v6507_v38 = vor.u32 %v7615_v26, %v6506_v25  ;;  %4107 = vmatpush.bf16.msrb.mxu1 %v6219_v21  ;;  %v7387_v22 = vld [vmem:[#allocation6 + $0x55c] sm:$0xf]  ;;  %v3889_v26 = vadd.f32 %v3888_v52, %v8158_v16 }
 0x2bf   :  { %v7679_v28 = vld [vmem:[#allocation6 + $0xe74] sm:$0xf0]  ;;  %4095 = vmatmul.bf16.vlgmr.msrb.gmra.mxu0 %v8076_v60  ;;  %v5868_v25 = vld [vmem:[#allocation6 + $0x778] sm:$0xf0] }
 0x2c0   :  { %v6763_v39 = vor.u32 %v7679_v28, %v6762_v27  ;;  %v6474_v42 = vld [vmem:[#allocation6 + $0xc18] sm:$0xf]  ;;  %4139 = vmatpush.bf16.msra.mxu0 %v5167_v33  ;;  %4119 = vmatpush.bf16.msrb.mxu2 %v6507_v38  ;;  %v5071_v27 = vor.u32 %v7251_v12, %v5068_v13  ;;  %v5327_v28 = vor.u32 %v7315_v17, %v5324_v5  ;;  %v7243_v29 = vld [vmem:[#allocation6 + $0xdc] sm:$0xf] }
 0x2c1   :  { %v7607_v43 = vld [vmem:[#allocation6 + $0xc34] sm:$0xf0]  ;;  %4108 = vmatmul.bf16.vlgmr.msrb.gmra.mxu1 %v8078_v61  ;;  %v5036_v21 = vld [vmem:[#allocation6 + $0xf8] sm:$0xf0]  ;;  %v3902_v33 = vadd.f32 %v3901_v0, %v3889_v26  ;;  %v5871_v35 = vor.u32 %v7451_v24, %v5868_v25 }
 0x2c2   :  { %v6730_v44 = vld [vmem:[#allocation6 + $0xe18] sm:$0xf]  ;;  %4152 = vmatpush.bf16.msra.mxu1 %v5423_v34  ;;  %4132 = vmatpush.bf16.msrb.mxu3 %v6763_v39  ;;  %v6475_v55 = vor.u32 %v7607_v43, %v6474_v42  ;;  %v5615_v34 = vor.u32 %v7387_v22, %v5612_v23  ;;  %v7379_v38 = vld [vmem:[#allocation6 + $0x51c] sm:$0xf]  ;;  %v5039_v16 = vor.u32 %v7243_v29, %v5036_v21 }
 0x2c3   :  { %v7671_v45 = vld [vmem:[#allocation6 + $0xe34] sm:$0xf0]  ;;  %v5580_v39 = vld [vmem:[#allocation6 + $0x538] sm:$0xf0] }
 0x2c4   :  { %v6731_v56 = vor.u32 %v7671_v45, %v6730_v44  ;;  %4140 = vmatpush.bf16.msra.mxu0 %v5135_v53  ;;  %4120 = vmatpush.bf16.msrb.mxu2 %v6475_v55  ;;  %v7235_v42 = vld [vmem:[#allocation6 + $0x9c] sm:$0xf]  ;;  %v5583_v44 = vor.u32 %v7379_v38, %v5580_v39  ;;  %v5839_v45 = vor.u32 %v7443_v40, %v5836_v18  ;;  %v3903_v53 = vpop.f32.mrf.mxu1 }
 0x2c5   :  { %v5004_v43 = vld [vmem:[#allocation6 + $0xb8] sm:$0xf0] }
 0x2c6   :  { %4153 = vmatpush.bf16.msra.mxu1 %v5391_v54  ;;  %4133 = vmatpush.bf16.msrb.mxu3 %v6731_v56  ;;  %v7371_v48 = vld [vmem:[#allocation6 + $0x4dc] sm:$0xf]  ;;  %v5007_v57 = vor.u32 %v7235_v42, %v5004_v43  ;;  %v3916_v43 = vpop.f32.mrf.mxu2 }
 0x2c7   :  { %4121 = vmatmul.bf16.vlgmr.msrb.gmra.mxu2 %v8082_v31  ;;  %v5548_v54 = vld [vmem:[#allocation6 + $0x4f8] sm:$0xf0] }
 0x2c8   :  { %4165 = vmatpush.bf16.msra.mxu2 %v5679_v63  ;;  %4141 = vmatpush.bf16.msra.mxu0 %v5103_v9  ;;  %v7435_v55 = vld [vmem:[#allocation6 + $0x6dc] sm:$0xf]  ;;  %v5551_v2 = vor.u32 %v7371_v48, %v5548_v54  ;;  %v3927_v9 = vpop.f32.mrf.mxu3 }
 0x2c9   :  { %4134 = vmatmul.bf16.vlgmr.msrb.gmra.mxu3 %v8084_v32  ;;  %v5804_v56 = vld [vmem:[#allocation6 + $0x6f8] sm:$0xf0] }
 0x2ca   :  { %4178 = vmatpush.bf16.msra.mxu3 %v5935_v30  ;;  %4154 = vmatpush.bf16.msra.mxu1 %v5359_v11  ;;  %v7227_v63 = vld [vmem:[#allocation6 + $0x5c] sm:$0xf]  ;;  %v5807_v3 = vor.u32 %v7435_v55, %v5804_v56 }
 0x2cb   :  { %v4972_v30 = vld [vmem:[#allocation6 + $0x78] sm:$0xf0] }
 0x2cc   :  { %4166 = vmatpush.bf16.msra.mxu2 %v5647_v14  ;;  %4142 = vmatpush.bf16.msra.mxu0 %v5071_v27  ;;  %v7291_v4 = vld [vmem:[#allocation6 + $0x25c] sm:$0xf]  ;;  %v3915_v14 = vadd.f32 %v3914_v8, %v3902_v33 }
 0x2cd   :  { %v5228_v6 = vld [vmem:[#allocation6 + $0x278] sm:$0xf0] }
 0x2ce   :  { %4179 = vmatpush.bf16.msra.mxu3 %v5903_v15  ;;  %4155 = vmatpush.bf16.msra.mxu1 %v5327_v28  ;;  %v7363_v7 = vld [vmem:[#allocation6 + $0x49c] sm:$0xf]  ;;  %v4975_v15 = vor.u32 %v7227_v63, %v4972_v30  ;;  %v5231_v17 = vor.u32 %v7291_v4, %v5228_v6  ;;  %v8165_v0 = vadd.f32 %v3927_v9, %v3915_v14 }
 0x2cf   :  { %v5516_v11 = vld [vmem:[#allocation6 + $0x4b8] sm:$0xf0] }
 0x2d0   :  { %4167 = vmatpush.bf16.msra.mxu2 %v5615_v34  ;;  %4143 = vmatpush.bf16.msra.mxu0 %v5039_v16  ;;  %v7427_v12 = vld [vmem:[#allocation6 + $0x69c] sm:$0xf]  ;;  %v5519_v23 = vor.u32 %v7363_v7, %v5516_v11  ;;  %vm4247_vm14 = vcmp.gt.f32.partialorder %v8165_v0, 0.0 }
 0x2d1   :  { %v5772_v13 = vld [vmem:[#allocation6 + $0x6b8] sm:$0xf0] }
 0x2d2   :  { %4180 = vmatpush.bf16.msra.mxu3 %v5871_v35  ;;  %4156 = vmatpush.bf16.msra.mxu1 %v5295_v41  ;;  %v7219_v5 = vld [vmem:[#allocation6 + $0x1c] sm:$0xf]  ;;  %v5775_v24 = vor.u32 %v7427_v12, %v5772_v13 }
 0x2d3   :  { %v4940_v22 = vld [vmem:[#allocation6 + $0x38] sm:$0xf0] }
 0x2d4   :  { %4168 = vmatpush.bf16.msra.mxu2 %v5583_v44  ;;  %4144 = vmatpush.bf16.msra.mxu0 %v5007_v57  ;;  %v7283_v52 = vld [vmem:[#allocation6 + $0x21c] sm:$0xf]  ;;  %v4943_v36 = vor.u32 %v7219_v5, %v4940_v22  ;;  %v3929_v44 = vpop.f32.mrf.mxu3 }
 0x2d5   :  { %v5196_v25 = vld [vmem:[#allocation6 + $0x238] sm:$0xf0] }
 0x2d6   :  { %4181 = vmatpush.bf16.msra.mxu3 %v5839_v45  ;;  %4157 = vmatpush.bf16.msra.mxu1 %v5263_v59  ;;  %v7531_v26 = vld [vmem:[#allocation6 + $0x9dc] sm:$0xf]  ;;  %v5199_v37 = vor.u32 %v7283_v52, %v5196_v25  ;;  %v8171_v25 = vpop.f32.mrf.mxu1 }
 0x2d7   :  { %v6188_v27 = vld [vmem:[#allocation6 + $0x9f8] sm:$0xf0] }
 0x2d8   :  { %4169 = vmatpush.bf16.msra.mxu2 %v5551_v2  ;;  %v7595_v28 = vld [vmem:[#allocation6 + $0xbdc] sm:$0xf]  ;;  %4145 = vmatpush.bf16.msra.mxu0 %v4975_v15  ;;  %v6191_v38 = vor.u32 %v7531_v26, %v6188_v27 }
 0x2d9   :  { %v6444_v29 = vld [vmem:[#allocation6 + $0xbf8] sm:$0xf0] }
 0x2da   :  { %4182 = vmatpush.bf16.msra.mxu3 %v5807_v3  ;;  %v7355_v21 = vld [vmem:[#allocation6 + $0x45c] sm:$0xf]  ;;  %4158 = vmatpush.bf16.msra.mxu1 %v5231_v17  ;;  %v6447_v39 = vor.u32 %v7595_v28, %v6444_v29 }
 0x2db   :  { %v5484_v33 = vld [vmem:[#allocation6 + $0x478] sm:$0xf0] }
 0x2dc   :  { %v7419_v34 = vld [vmem:[#allocation6 + $0x65c] sm:$0xf]  ;;  %4170 = vmatpush.bf16.msra.mxu2 %v5519_v23  ;;  %v5487_v41 = vor.u32 %v7355_v21, %v5484_v33  ;;  %4146 = vmatpush.bf16.msra.mxu0 %v4943_v36 }
 0x2dd   :  { %v5740_v35 = vld [vmem:[#allocation6 + $0x678] sm:$0xf0] }
 0x2de   :  { %4183 = vmatpush.bf16.msra.mxu3 %v5775_v24  ;;  %v7523_v40 = vld [vmem:[#allocation6 + $0x99c] sm:$0xf]  ;;  %v5743_v42 = vor.u32 %v7419_v34, %v5740_v35  ;;  %4159 = vmatpush.bf16.msra.mxu1 %v5199_v37  ;;  %v8169_v24 = vpop.f32.mrf.mxu0 }
 0x2df   :  { %v6156_v18 = vld [vmem:[#allocation6 + $0x9b8] sm:$0xf0]  ;;  %4147 = vmatmul.bf16.vlgmr.msra.gmra.mxu0 %v8060_v49 }
 0x2e0   :  { %v7587_v16 = vld [vmem:[#allocation6 + $0xb9c] sm:$0xf]  ;;  %4191 = vmatpush.bf16.msrb.mxu0 %v6191_v38  ;;  %v6159_v57 = vor.u32 %v7523_v40, %v6156_v18  ;;  %4171 = vmatpush.bf16.msra.mxu2 %v5487_v41 }
 0x2e1   :  { %v6412_v45 = vld [vmem:[#allocation6 + $0xbb8] sm:$0xf0]  ;;  %4160 = vmatmul.bf16.vlgmr.msra.gmra.mxu1 %v8062_v50 }
 0x2e2   :  { %v7347_v46 = vld [vmem:[#allocation6 + $0x41c] sm:$0xf]  ;;  %4204 = vmatpush.bf16.msrb.mxu1 %v6447_v39  ;;  %v6415_v59 = vor.u32 %v7587_v16, %v6412_v45  ;;  %4184 = vmatpush.bf16.msra.mxu3 %v5743_v42 }
 0x2e3   :  { %v5452_v47 = vld [vmem:[#allocation6 + $0x438] sm:$0xf0] }
 0x2e4   :  { %v7411_v48 = vld [vmem:[#allocation6 + $0x61c] sm:$0xf]  ;;  %v5455_v63 = vor.u32 %v7347_v46, %v5452_v47  ;;  %4192 = vmatpush.bf16.msrb.mxu0 %v6159_v57 }
 0x2e5   :  { %v5708_v51 = vld [vmem:[#allocation6 + $0x638] sm:$0xf0] }
 0x2e6   :  { %v7659_v53 = vld [vmem:[#allocation6 + $0xddc] sm:$0xf]  ;;  %v5711_v30 = vor.u32 %v7411_v48, %v5708_v51  ;;  %4205 = vmatpush.bf16.msrb.mxu1 %v6415_v59  ;;  %4172 = vmatpush.bf16.msra.mxu2 %v5455_v63  ;;  %v3942_v48 = vpop.f32.mrf.mxu0  ;;  %v3955_v51 = vpop.f32.mrf.mxu1 }
 0x2e7   :  { %v6700_v54 = vld [vmem:[#allocation6 + $0xdf8] sm:$0xf0] }
 0x2e8   :  { %v7723_v55 = vld [vmem:[#allocation6 + $0xfdc] sm:$0xf]  ;;  %v6703_v4 = vor.u32 %v7659_v53, %v6700_v54  ;;  %4185 = vmatpush.bf16.msra.mxu3 %v5711_v30 }
 0x2e9   :  { %v6956_v56 = vld [vmem:[#allocation6 + $0xff8] sm:$0xf0]  ;;  %4173 = vmatmul.bf16.vlgmr.msra.gmra.mxu2 %v8068_v19 }
 0x2ea   :  { %v7515_v2 = vld [vmem:[#allocation6 + $0x95c] sm:$0xf]  ;;  %v6959_v6 = vor.u32 %v7723_v55, %v6956_v56  ;;  %4217 = vmatpush.bf16.msrb.mxu2 %v6703_v4 }
 0x2eb   :  { %v6124_v3 = vld [vmem:[#allocation6 + $0x978] sm:$0xf0]  ;;  %4186 = vmatmul.bf16.vlgmr.msra.gmra.mxu3 %v8070_v20 }
 0x2ec   :  { %v7579_v7 = vld [vmem:[#allocation6 + $0xb5c] sm:$0xf]  ;;  %v6127_v14 = vor.u32 %v7515_v2, %v6124_v3  ;;  %4230 = vmatpush.bf16.msrb.mxu3 %v6959_v6 }
 0x2ed   :  { %v6380_v8 = vld [vmem:[#allocation6 + $0xb78] sm:$0xf0] }
 0x2ee   :  { %v7651_v9 = vld [vmem:[#allocation6 + $0xd9c] sm:$0xf]  ;;  %v6383_v15 = vor.u32 %v7579_v7, %v6380_v8  ;;  %4193 = vmatpush.bf16.msrb.mxu0 %v6127_v14  ;;  %v8175_v7 = vpop.f32.mrf.mxu2  ;;  %v8177_v8 = vpop.f32.mrf.mxu3 }
 0x2ef   :  { %v6668_v11 = vld [vmem:[#allocation6 + $0xdb8] sm:$0xf0]  ;;  %v8181_v48 = vpop.f32.mrf.mxu0  ;;  %v8183_v51 = vpop.f32.mrf.mxu1 }
 0x2f0   :  { %v7715_v12 = vld [vmem:[#allocation6 + $0xf9c] sm:$0xf]  ;;  %v6671_v49 = vor.u32 %v7651_v9, %v6668_v11  ;;  %4206 = vmatpush.bf16.msrb.mxu1 %v6383_v15 }
 0x2f1   :  { %v6924_v13 = vld [vmem:[#allocation6 + $0xfb8] sm:$0xf0] }
 0x2f2   :  { %v7507_v17 = vld [vmem:[#allocation6 + $0x91c] sm:$0xf]  ;;  %v6927_v50 = vor.u32 %v7715_v12, %v6924_v13  ;;  %4218 = vmatpush.bf16.msrb.mxu2 %v6671_v49 }
 0x2f3   :  { %v6092_v5 = vld [vmem:[#allocation6 + $0x938] sm:$0xf0] }
 0x2f4   :  { %v7571_v22 = vld [vmem:[#allocation6 + $0xb1c] sm:$0xf]  ;;  %v6095_v29 = vor.u32 %v7507_v17, %v6092_v5  ;;  %4231 = vmatpush.bf16.msrb.mxu3 %v6927_v50 }
 0x2f5   :  { %v6348_v52 = vld [vmem:[#allocation6 + $0xb38] sm:$0xf0] }
 0x2f6   :  { %v7643_v23 = vld [vmem:[#allocation6 + $0xd5c] sm:$0xf]  ;;  %v6351_v21 = vor.u32 %v7571_v22, %v6348_v52  ;;  %4194 = vmatpush.bf16.msrb.mxu0 %v6095_v29 }
 0x2f7   :  { %v6636_v26 = vld [vmem:[#allocation6 + $0xd78] sm:$0xf0] }
 0x2f8   :  { %v7707_v27 = vld [vmem:[#allocation6 + $0xf5c] sm:$0xf]  ;;  %v6639_v35 = vor.u32 %v7643_v23, %v6636_v26  ;;  %4207 = vmatpush.bf16.msrb.mxu1 %v6351_v21  ;;  %v7735_v21 = vld [vmem:[#allocation9 + $0x38] sm:$0xff] }
 0x2f9   :  { %v6892_v28 = vld [vmem:[#allocation6 + $0xf78] sm:$0xf0] }
 0x2fa   :  { %v7499_v33 = vld [vmem:[#allocation6 + $0x8dc] sm:$0xf]  ;;  %v6895_v36 = vor.u32 %v7707_v27, %v6892_v28  ;;  %4219 = vmatpush.bf16.msrb.mxu2 %v6639_v35 }
 0x2fb   :  { %v6060_v34 = vld [vmem:[#allocation6 + $0x8f8] sm:$0xf0] }
 0x2fc   :  { %v7563_v37 = vld [vmem:[#allocation6 + $0xadc] sm:$0xf]  ;;  %v6063_v19 = vor.u32 %v7499_v33, %v6060_v34  ;;  %4232 = vmatpush.bf16.msrb.mxu3 %v6895_v36  ;;  %v7743_v33 = vld [vmem:[#allocation9 + $0x78] sm:$0xff]  ;;  %v3968_v36 = vpop.f32.mrf.mxu2 }
 0x2fd   :  { %v6316_v38 = vld [vmem:[#allocation6 + $0xaf8] sm:$0xf0] }
 0x2fe   :  { %v7635_v39 = vld [vmem:[#allocation6 + $0xd1c] sm:$0xf]  ;;  %v6319_v20 = vor.u32 %v7563_v37, %v6316_v38  ;;  %4195 = vmatpush.bf16.msrb.mxu0 %v6063_v19  ;;  %v3981_v37 = vpop.f32.mrf.mxu3 }
 0x2ff   :  { %v6604_v40 = vld [vmem:[#allocation6 + $0xd38] sm:$0xf0] }
 0x300   :  { %v7699_v18 = vld [vmem:[#allocation6 + $0xf1c] sm:$0xf]  ;;  %v6607_v43 = vor.u32 %v7635_v39, %v6604_v40  ;;  %4208 = vmatpush.bf16.msrb.mxu1 %v6319_v20 }
 0x301   :  { %v6860_v16 = vld [vmem:[#allocation6 + $0xf38] sm:$0xf0] }
 0x302   :  { %v7491_v41 = vld [vmem:[#allocation6 + $0x89c] sm:$0xf]  ;;  %v6863_v44 = vor.u32 %v7699_v18, %v6860_v16  ;;  %4220 = vmatpush.bf16.msrb.mxu2 %v6607_v43  ;;  %v7759_v43 = vld [vmem:[#allocation9 + $0xf8] sm:$0xff] }
 0x303   :  { %v6028_v42 = vld [vmem:[#allocation6 + $0x8b8] sm:$0xf0] }
 0x304   :  { %v7555_v45 = vld [vmem:[#allocation6 + $0xa9c] sm:$0xf]  ;;  %v6031_v56 = vor.u32 %v7491_v41, %v6028_v42  ;;  %4233 = vmatpush.bf16.msrb.mxu3 %v6863_v44  ;;  %v7751_v42 = vld [vmem:[#allocation9 + $0xb8] sm:$0xff]  ;;  %v7733_v44 = vld [vmem:[#allocation9 + $0x28] sm:$0xff] }
 0x305   :  { %v6284_v46 = vld [vmem:[#allocation6 + $0xab8] sm:$0xf0] }
 0x306   :  { %v7627_v47 = vld [vmem:[#allocation6 + $0xcdc] sm:$0xf]  ;;  %v6287_v57 = vor.u32 %v7555_v45, %v6284_v46  ;;  %4196 = vmatpush.bf16.msrb.mxu0 %v6031_v56  ;;  %v7741_v45 = vld [vmem:[#allocation9 + $0x68] sm:$0xff]  ;;  %v7739_v56 = vld [vmem:[#allocation9 + $0x58] sm:$0xff] }
 0x307   :  { %v6572_v53 = vld [vmem:[#allocation6 + $0xcf8] sm:$0xf0] }
 0x308   :  { %v7691_v54 = vld [vmem:[#allocation6 + $0xedc] sm:$0xf]  ;;  %v6575_v30 = vor.u32 %v7627_v47, %v6572_v53  ;;  %4209 = vmatpush.bf16.msrb.mxu1 %v6287_v57  ;;  %v7749_v53 = vld [vmem:[#allocation9 + $0xa8] sm:$0xff]  ;;  %v7748_v57 = vld [vmem:[#allocation9 + $0xa0] sm:$0xff] }
 0x309   :  { %v6828_v55 = vld [vmem:[#allocation6 + $0xef8] sm:$0xf0] }
 0x30a   :  { %v7483_v59 = vld [vmem:[#allocation6 + $0x85c] sm:$0xf]  ;;  %v6831_v2 = vor.u32 %v7691_v54, %v6828_v55  ;;  %4221 = vmatpush.bf16.msrb.mxu2 %v6575_v30  ;;  %v7757_v54 = vld [vmem:[#allocation9 + $0xe8] sm:$0xff]  ;;  %v7731_v55 = vld [vmem:[#allocation9 + $0x18] sm:$0xff] }
 0x30b   :  { %v5996_v63 = vld [vmem:[#allocation6 + $0x878] sm:$0xf0] }
 0x30c   :  { %v7547_v3 = vld [vmem:[#allocation6 + $0xa5c] sm:$0xf]  ;;  %v5999_v13 = vor.u32 %v7483_v59, %v5996_v63  ;;  %4234 = vmatpush.bf16.msrb.mxu3 %v6831_v2  ;;  %v7756_v59 = vld [vmem:[#allocation9 + $0xe0] sm:$0xff]  ;;  %v3994_v63 = vpop.f32.mrf.mxu0  ;;  %v7747_v2 = vld [vmem:[#allocation9 + $0x98] sm:$0xff] }
 0x30d   :  { %v6252_v4 = vld [vmem:[#allocation6 + $0xa78] sm:$0xf0] }
 0x30e   :  { %v7619_v6 = vld [vmem:[#allocation6 + $0xc9c] sm:$0xf]  ;;  %v6255_v14 = vor.u32 %v7547_v3, %v6252_v4  ;;  %4197 = vmatpush.bf16.msrb.mxu0 %v5999_v13  ;;  %v7755_v3 = vld [vmem:[#allocation9 + $0xd8] sm:$0xff]  ;;  %v8187_v4 = vpop.f32.mrf.mxu2 }
 0x30f   :  { %v6540_v9 = vld [vmem:[#allocation6 + $0xcb8] sm:$0xf0] }
 0x310   :  { %v7683_v11 = vld [vmem:[#allocation6 + $0xe9c] sm:$0xf]  ;;  %v6543_v17 = vor.u32 %v7619_v6, %v6540_v9  ;;  %4210 = vmatpush.bf16.msrb.mxu1 %v6255_v14  ;;  %v8189_v6 = vpop.f32.mrf.mxu3  ;;  %v7729_v9 = vld [vmem:[#allocation9 + $0x8] sm:$0xff]  ;;  %v4251_v14 = vmul.f32 0.01, %v8110_v58 }
 0x311   :  { %v6796_v12 = vld [vmem:[#allocation6 + $0xeb8] sm:$0xf0] }
 0x312   :  { %v7475_v15 = vld [vmem:[#allocation6 + $0x81c] sm:$0xf]  ;;  %v6799_v5 = vor.u32 %v7683_v11, %v6796_v12  ;;  %4222 = vmatpush.bf16.msrb.mxu2 %v6543_v17  ;;  %v7737_v11 = vld [vmem:[#allocation9 + $0x48] sm:$0xff]  ;;  %v8193_v17 = vld [vmem:[#allocation7] sm:$0xff] }
 0x313   :  { %v5964_v49 = vld [vmem:[#allocation6 + $0x838] sm:$0xf0] }
 0x314   :  { %v7539_v50 = vld [vmem:[#allocation6 + $0xa1c] sm:$0xf]  ;;  %v5967_v28 = vor.u32 %v7475_v15, %v5964_v49  ;;  %4235 = vmatpush.bf16.msrb.mxu3 %v6799_v5  ;;  %v4252_v15 = vmul.f32 0.01, %v8121_v62  ;;  %v840_v5 = vperm.slane %v8193_v17, 5  ;;  %v7728_v49 = vld [vmem:[#allocation9] sm:$0xff] }
 0x315   :  { %v6220_v22 = vld [vmem:[#allocation6 + $0xa38] sm:$0xf0] }
 0x316   :  { %v7611_v52 = vld [vmem:[#allocation6 + $0xc5c] sm:$0xf]  ;;  %v6223_v29 = vor.u32 %v7539_v50, %v6220_v22  ;;  %4198 = vmatpush.bf16.msrb.mxu0 %v5967_v28  ;;  %v7736_v50 = vld [vmem:[#allocation9 + $0x40] sm:$0xff]  ;;  %v7767_v22 = vld [vmem:[#allocation9 + $0x138] sm:$0xff] }
 0x317   :  { %v6508_v23 = vld [vmem:[#allocation6 + $0xc78] sm:$0xf0]  ;;  %v7745_v28 = vld [vmem:[#allocation9 + $0x88] sm:$0xff] }
 0x318   :  { %v7675_v26 = vld [vmem:[#allocation6 + $0xe5c] sm:$0xf]  ;;  %v6511_v34 = vor.u32 %v7611_v52, %v6508_v23  ;;  %4211 = vmatpush.bf16.msrb.mxu1 %v6223_v29  ;;  %v7775_v52 = vld [vmem:[#allocation9 + $0x178] sm:$0xff]  ;;  %v4259_v23 = vsel %vm4243_vm10, %v8110_v58, %v4251_v14  ;;  %v7753_v29 = vld [vmem:[#allocation9 + $0xc8] sm:$0xff] }
 0x319   :  { %v6764_v27 = vld [vmem:[#allocation6 + $0xe78] sm:$0xf0]  ;;  %4199 = vmatmul.bf16.vlgmr.msrb.gmra.mxu0 %v8076_v60  ;;  %v7732_v60 = vld [vmem:[#allocation9 + $0x20] sm:$0xff]  ;;  %v4267_v36 = vpack.c.bf16 %v4259_v23, %v4259_v23 }
 0x31a   :  { %v6767_v35 = vor.u32 %v7675_v26, %v6764_v27  ;;  %v7603_v38 = vld [vmem:[#allocation6 + $0xc1c] sm:$0xf]  ;;  %4791 = vmatpush.bf16.msra.mxu0 %v7735_v21  ;;  %4223 = vmatpush.bf16.msrb.mxu2 %v6511_v34  ;;  %v4260_v26 = vsel %vm4244_vm11, %v8121_v62, %v4252_v15  ;;  %v3941_v27 = vadd.f32 %v8169_v24, %v840_v5  ;;  %v4020_v21 = vpop.f32.mrf.mxu2  ;;  %v4253_v34 = vmul.f32 0.01, %v8135_v1 }
 0x31b   :  { %v6476_v39 = vld [vmem:[#allocation6 + $0xc38] sm:$0xf0]  ;;  %4212 = vmatmul.bf16.vlgmr.msrb.gmra.mxu1 %v8078_v61  ;;  %v7740_v61 = vld [vmem:[#allocation9 + $0x60] sm:$0xff]  ;;  %v4268_v37 = vpack.c.bf16 %v4260_v26, %v4260_v26  ;;  %v841_v5 = vperm.slane %v8193_v17, 6 }
 0x31c   :  { %v7667_v40 = vld [vmem:[#allocation6 + $0xe1c] sm:$0xf]  ;;  %4804 = vmatpush.bf16.msra.mxu1 %v7743_v33  ;;  %4236 = vmatpush.bf16.msrb.mxu3 %v6767_v35  ;;  %v6479_v20 = vor.u32 %v7603_v38, %v6476_v39  ;;  %v4033_v33 = vpop.f32.mrf.mxu3  ;;  %v4254_v35 = vmul.f32 0.01, %v8151_v10  ;;  %v3954_v24 = vadd.f32 %v8171_v25, %v3941_v27  ;;  %v7744_v38 = vld [vmem:[#allocation9 + $0x80] sm:$0xff] }
 0x31d   :  { %v6732_v18 = vld [vmem:[#allocation6 + $0xe38] sm:$0xf0]  ;;  %v7752_v39 = vld [vmem:[#allocation9 + $0xc0] sm:$0xff] }
 0x31e   :  { %v7734_v16 = vld [vmem:[#allocation9 + $0x30] sm:$0xff]  ;;  %v6735_v41 = vor.u32 %v7667_v40, %v6732_v18  ;;  %4224 = vmatpush.bf16.msrb.mxu2 %v6479_v20  ;;  %v7783_v40 = vld [vmem:[#allocation9 + $0x1b8] sm:$0xff]  ;;  %v4261_v18 = vsel %vm4245_vm12, %v8135_v1, %v4253_v34  ;;  %v7765_v20 = vld [vmem:[#allocation9 + $0x128] sm:$0xff] }
 0x31f   :  { %v7742_v19 = vld [vmem:[#allocation9 + $0x70] sm:$0xff]  ;;  %4792 = vmatpush.bf16.msra.mxu0 %v7734_v16  ;;  %v4262_v16 = vsel %vm4246_vm13, %v8151_v10, %v4254_v35  ;;  %v4269_v25 = vpack.c.bf16 %v4261_v18, %v4261_v18  ;;  %v7764_v10 = vld [vmem:[#allocation9 + $0x120] sm:$0xff] }
 0x320   :  { %4805 = vmatpush.bf16.msra.mxu1 %v7742_v19  ;;  %4237 = vmatpush.bf16.msrb.mxu3 %v6735_v41  ;;  %v7750_v46 = vld [vmem:[#allocation9 + $0xb0] sm:$0xff]  ;;  %v3967_v19 = vadd.f32 %v8175_v7, %v3954_v24  ;;  %v7773_v41 = vld [vmem:[#allocation9 + $0x168] sm:$0xff]  ;;  %v7772_v7 = vld [vmem:[#allocation9 + $0x160] sm:$0xff] }
 0x321   :  { %v7758_v47 = vld [vmem:[#allocation9 + $0xf0] sm:$0xff]  ;;  %4225 = vmatmul.bf16.vlgmr.msrb.gmra.mxu2 %v8082_v31  ;;  %v4007_v31 = vpop.f32.mrf.mxu1  ;;  %v7791_v24 = vld [vmem:[#allocation9 + $0x1f8] sm:$0xff] }
 0x322   :  { %4817 = vmatpush.bf16.msra.mxu2 %v7751_v42  ;;  %v7738_v30 = vld [vmem:[#allocation9 + $0x50] sm:$0xff]  ;;  %v4270_v42 = vpack.c.bf16 %v4262_v16, %v4262_v16  ;;  %v4070_v31 = vpop.f32.mrf.mxu2 }
 0x323   :  { %4238 = vmatmul.bf16.vlgmr.msrb.gmra.mxu3 %v8084_v32  ;;  %4793 = vmatpush.bf16.msra.mxu0 %v7733_v44  ;;  %v7730_v32 = vld [vmem:[#allocation9 + $0x10] sm:$0xff]  ;;  %v3980_v44 = vadd.f32 %v8177_v8, %v3967_v19  ;;  %v7780_v8 = vld [vmem:[#allocation9 + $0x1a0] sm:$0xff]  ;;  %v7789_v19 = vld [vmem:[#allocation9 + $0x1e8] sm:$0xff] }
 0x324   :  { %4830 = vmatpush.bf16.msra.mxu3 %v7759_v43  ;;  %4806 = vmatpush.bf16.msra.mxu1 %v7741_v45  ;;  %v7746_v12 = vld [vmem:[#allocation9 + $0x90] sm:$0xff]  ;;  %v4044_v45 = vpop.f32.mrf.mxu0 }
 0x325   :  { %v7754_v13 = vld [vmem:[#allocation9 + $0xd0] sm:$0xff]  ;;  %v3993_v1 = vadd.f32 %v8181_v48, %v3980_v44 }
 0x326   :  { %4818 = vmatpush.bf16.msra.mxu2 %v7750_v46  ;;  %v7766_v58 = vld [vmem:[#allocation9 + $0x130] sm:$0xff] }
 0x327   :  { %4794 = vmatpush.bf16.msra.mxu0 %v7732_v60  ;;  %v7774_v62 = vld [vmem:[#allocation9 + $0x170] sm:$0xff]  ;;  %v4006_v60 = vadd.f32 %v8183_v51, %v3993_v1  ;;  %v4083_v51 = vpop.f32.mrf.mxu3 }
 0x328   :  { %4831 = vmatpush.bf16.msra.mxu3 %v7758_v47  ;;  %4807 = vmatpush.bf16.msra.mxu1 %v7740_v61  ;;  %v7782_v43 = vld [vmem:[#allocation9 + $0x1b0] sm:$0xff]  ;;  %v7781_v47 = vld [vmem:[#allocation9 + $0x1a8] sm:$0xff]  ;;  %v7763_v61 = vld [vmem:[#allocation9 + $0x118] sm:$0xff] }
 0x329   :  { %v4057_v46 = vpop.f32.mrf.mxu1  ;;  %v7762_v48 = vld [vmem:[#allocation9 + $0x110] sm:$0xff] }
 0x32a   :  { %4819 = vmatpush.bf16.msra.mxu2 %v7749_v53  ;;  %v7771_v53 = vld [vmem:[#allocation9 + $0x158] sm:$0xff]  ;;  %v4072_v14 = vpop.f32.mrf.mxu2  ;;  %v7790_v16 = vld [vmem:[#allocation9 + $0x1f0] sm:$0xff] }
 0x32b   :  { %4795 = vmatpush.bf16.msra.mxu0 %v7731_v55 }
 0x32c   :  { %4832 = vmatpush.bf16.msra.mxu3 %v7757_v54  ;;  %4808 = vmatpush.bf16.msra.mxu1 %v7739_v56  ;;  %v4019_v54 = vadd.f32 %v8187_v4, %v4006_v60  ;;  %v4046_v55 = vpop.f32.mrf.mxu0 }
 0x32e   :  { %4820 = vmatpush.bf16.msra.mxu2 %v7748_v57  ;;  %v7770_v57 = vld [vmem:[#allocation9 + $0x150] sm:$0xff]  ;;  %v4032_v63 = vadd.f32 %v8189_v6, %v4019_v54  ;;  %v7777_v6 = vld [vmem:[#allocation9 + $0x188] sm:$0xff] }
 0x32f   :  { %4796 = vmatpush.bf16.msra.mxu0 %v7730_v32  ;;  %v7761_v32 = vld [vmem:[#allocation9 + $0x108] sm:$0xff]  ;;  %v4085_v15 = vpop.f32.mrf.mxu3 }
 0x330   :  { %4833 = vmatpush.bf16.msra.mxu3 %v7756_v59  ;;  %4809 = vmatpush.bf16.msra.mxu1 %v7738_v30  ;;  %v7779_v59 = vld [vmem:[#allocation9 + $0x198] sm:$0xff]  ;;  %v7769_v30 = vld [vmem:[#allocation9 + $0x148] sm:$0xff]  ;;  %v4256_v4 = vmul.f32 0.01, %v4032_v63  ;;  %vm4248_vm15 = vcmp.gt.f32.partialorder %v4032_v63, 0.0 }
 0x331   :  { %v4059_v56 = vpop.f32.mrf.mxu1 }
 0x332   :  { %4821 = vmatpush.bf16.msra.mxu2 %v7747_v2  ;;  %v7778_v2 = vld [vmem:[#allocation9 + $0x190] sm:$0xff] }
 0x333   :  { %4797 = vmatpush.bf16.msra.mxu0 %v7729_v9  ;;  %v7760_v9 = vld [vmem:[#allocation9 + $0x100] sm:$0xff] }
 0x334   :  { %4834 = vmatpush.bf16.msra.mxu3 %v7755_v3  ;;  %4810 = vmatpush.bf16.msra.mxu1 %v7737_v11  ;;  %v4255_v3 = vmul.f32 0.01, %v8165_v0  ;;  %v7768_v11 = vld [vmem:[#allocation9 + $0x140] sm:$0xff] }
 0x336   :  { %4822 = vmatpush.bf16.msra.mxu2 %v7746_v12  ;;  %v4263_v12 = vsel %vm4247_vm14, %v8165_v0, %v4255_v3 }
 0x337   :  { %4798 = vmatpush.bf16.msra.mxu0 %v7728_v49  ;;  %v4271_v49 = vpack.c.bf16 %v4263_v12, %v4263_v12 }
 0x338   :  { %4835 = vmatpush.bf16.msra.mxu3 %v7754_v13  ;;  %4811 = vmatpush.bf16.msra.mxu1 %v7736_v50  ;;  %v4264_v13 = vsel %vm4248_vm15, %v4032_v63, %v4256_v4 }
 0x339   :  { %v4272_v50 = vpack.c.bf16 %v4264_v13, %v4264_v13 }
 0x33a   :  { %4823 = vmatpush.bf16.msra.mxu2 %v7745_v28  ;;  %4799 = vmatmul.bf16.vlgmr.msra.gmra.mxu0 %v4267_v36 }
 0x33b   :  { %4843 = vmatpush.bf16.msrb.mxu0 %v7767_v22  ;;  %4812 = vmatmul.bf16.vlgmr.msra.gmra.mxu1 %v4268_v37  ;;  %v7776_v22 = vld [vmem:[#allocation9 + $0x180] sm:$0xff] }
 0x33c   :  { %4856 = vmatpush.bf16.msrb.mxu1 %v7775_v52  ;;  %4836 = vmatpush.bf16.msra.mxu3 %v7753_v29  ;;  %v4045_v52 = vadd.f32 %v4044_v45, %v841_v5  ;;  %v4096_v26 = vpop.f32.mrf.mxu0 }
 0x33e   :  { %4824 = vmatpush.bf16.msra.mxu2 %v7744_v38  ;;  %v4058_v23 = vadd.f32 %v4057_v46, %v4045_v52  ;;  %v4109_v27 = vpop.f32.mrf.mxu1 }
 0x33f   :  { %4844 = vmatpush.bf16.msrb.mxu0 %v7766_v58 }
 0x340   :  { %4857 = vmatpush.bf16.msrb.mxu1 %v7774_v62  ;;  %4837 = vmatpush.bf16.msra.mxu3 %v7752_v39  ;;  %v4071_v28 = vadd.f32 %v4070_v31, %v4058_v23 }
 0x341   :  { %4825 = vmatmul.bf16.vlgmr.msra.gmra.mxu2 %v4269_v25  ;;  %v7788_v25 = vld [vmem:[#allocation9 + $0x1e0] sm:$0xff] }
 0x342   :  { %4869 = vmatpush.bf16.msrb.mxu2 %v7783_v40  ;;  %v4084_v0 = vadd.f32 %v4083_v51, %v4071_v28 }
 0x343   :  { %4838 = vmatmul.bf16.vlgmr.msra.gmra.mxu3 %v4270_v42  ;;  %4845 = vmatpush.bf16.msrb.mxu0 %v7765_v20  ;;  %v7787_v42 = vld [vmem:[#allocation9 + $0x1d8] sm:$0xff] }
 0x344   :  { %4858 = vmatpush.bf16.msrb.mxu1 %v7773_v41  ;;  %v4097_v29 = vadd.f32 %v4096_v26, %v4084_v0  ;;  %v4098_v21 = vpop.f32.mrf.mxu0  ;;  %4882 = vmatpush.bf16.msrb.mxu3 %v7791_v24 }
 0x346   :  { %4870 = vmatpush.bf16.msrb.mxu2 %v7782_v43  ;;  %v4111_v33 = vpop.f32.mrf.mxu1  ;;  %v4110_v34 = vadd.f32 %v4109_v27, %v4097_v29  ;;  %v7786_v43 = vld [vmem:[#allocation9 + $0x1d0] sm:$0xff] }
 0x347   :  { %4846 = vmatpush.bf16.msrb.mxu0 %v7764_v10  ;;  %v7785_v10 = vld [vmem:[#allocation9 + $0x1c8] sm:$0xff] }
 0x348   :  { %4859 = vmatpush.bf16.msrb.mxu1 %v7772_v7  ;;  %4883 = vmatpush.bf16.msrb.mxu3 %v7790_v16  ;;  %v7784_v7 = vld [vmem:[#allocation9 + $0x1c0] sm:$0xff] }
 0x34a   :  { %4871 = vmatpush.bf16.msrb.mxu2 %v7781_v47  ;;  %v4122_v35 = vpop.f32.mrf.mxu2 }
 0x34b   :  { %4847 = vmatpush.bf16.msrb.mxu0 %v7763_v61  ;;  %v4123_v37 = vadd.f32 %v4122_v35, %v4110_v34  ;;  %v842_v61 = vperm.slane %v8193_v17, 7 }
 0x34c   :  { %4860 = vmatpush.bf16.msrb.mxu1 %v7771_v53  ;;  %v4135_v36 = vpop.f32.mrf.mxu3  ;;  %4884 = vmatpush.bf16.msrb.mxu3 %v7789_v19 }
 0x34d   :  { %v4136_v58 = vadd.f32 %v4135_v36, %v4123_v37 }
 0x34e   :  { %4872 = vmatpush.bf16.msrb.mxu2 %v7780_v8 }
 0x34f   :  { %4848 = vmatpush.bf16.msrb.mxu0 %v7762_v48  ;;  %vm4249_vm0 = vcmp.gt.f32.partialorder %v4136_v58, 0.0  ;;  %v4257_v62 = vmul.f32 0.01, %v4136_v58 }
 0x350   :  { %4861 = vmatpush.bf16.msrb.mxu1 %v7770_v57  ;;  %4885 = vmatpush.bf16.msrb.mxu3 %v7788_v25 }
 0x351   :  { %v4265_v38 = vsel %vm4249_vm0, %v4136_v58, %v4257_v62 }
 0x352   :  { %4873 = vmatpush.bf16.msrb.mxu2 %v7779_v59  ;;  %v4273_v39 = vpack.c.bf16 %v4265_v38, %v4265_v38  ;;  %v4124_v40 = vpop.f32.mrf.mxu2 }
 0x353   :  { %4849 = vmatpush.bf16.msrb.mxu0 %v7761_v32 }
 0x354   :  { %4862 = vmatpush.bf16.msrb.mxu1 %v7769_v30  ;;  %v4137_v18 = vpop.f32.mrf.mxu3  ;;  %4886 = vmatpush.bf16.msrb.mxu3 %v7787_v42 }
 0x356   :  { %4874 = vmatpush.bf16.msrb.mxu2 %v7778_v2 }
 0x357   :  { %4850 = vmatpush.bf16.msrb.mxu0 %v7760_v9 }
 0x358   :  { %4863 = vmatpush.bf16.msrb.mxu1 %v7768_v11  ;;  %4887 = vmatpush.bf16.msrb.mxu3 %v7786_v43 }
 0x35a   :  { %4875 = vmatpush.bf16.msrb.mxu2 %v7777_v6  ;;  %4851 = vmatmul.bf16.vlgmr.msrb.gmra.mxu0 %v4271_v49  ;;  %v7802_v6 = vld [vmem:[#allocation10] ss:$0 sm:$0xff] }
 0x35b   :  { %4864 = vmatmul.bf16.vlgmr.msrb.gmra.mxu1 %v4272_v50 }
 0x35c   :  { %v4148_v20 = vpop.f32.mrf.mxu0  ;;  %4888 = vmatpush.bf16.msrb.mxu3 %v7785_v10 }
 0x35d   :  { %v4149_v53 = vadd.f32 %v4148_v20, %v842_v61 }
 0x35e   :  { %4876 = vmatpush.bf16.msrb.mxu2 %v7776_v22  ;;  %v4161_v41 = vpop.f32.mrf.mxu1 }
 0x35f   :  { %v4162_v8 = vadd.f32 %v4161_v41, %v4149_v53 }
 0x360   :  { %4889 = vmatpush.bf16.msrb.mxu3 %v7784_v7 }
 0x361   :  { %4877 = vmatmul.bf16.vlgmr.msrb.gmra.mxu2 %v4273_v39 }
 0x364   :  { %v4150_v44 = vpop.f32.mrf.mxu0 }
 0x366   :  { %v4163_v45 = vpop.f32.mrf.mxu1 }
 0x36c   :  { %v4174_v46 = vpop.f32.mrf.mxu2 }
 0x36d   :  { %v4175_v56 = vadd.f32 %v4174_v46, %v4162_v8 }
 0x36e   :  { %v4187_v1 = vpop.f32.mrf.mxu3 }
 0x36f   :  { %v4188_v48 = vadd.f32 %v4187_v1, %v4175_v56 }
 0x374   :  { %v4176_v47 = vpop.f32.mrf.mxu2 }
 0x376   :  { %v4189_v60 = vpop.f32.mrf.mxu3 }
 0x396   :  { %v4200_v54 = vpop.f32.mrf.mxu0 }
 0x397   :  { %v4201_v57 = vadd.f32 %v4200_v54, %v4188_v48 }
 0x398   :  { %v4213_v55 = vpop.f32.mrf.mxu1 }
 0x399   :  { %v4214_v31 = vadd.f32 %v4213_v55, %v4201_v57 }
 0x39e   :  { %v4202_v59 = vpop.f32.mrf.mxu0 }
 0x3a0   :  { %v4215_v63 = vpop.f32.mrf.mxu1 }
 0x3a4   :  { %v4226_v51 = vpop.f32.mrf.mxu2 }
 0x3a5   :  { %v4227_v30 = vadd.f32 %v4226_v51, %v4214_v31 }
 0x3a6   :  { %v4239_v32 = vpop.f32.mrf.mxu3 }
 0x3a7   :  { %v4240_v2 = vadd.f32 %v4239_v32, %v4227_v30 }
 0x3a9   :  { %vm4250_vm1 = vcmp.gt.f32.partialorder %v4240_v2, 0.0  ;;  %v4258_v3 = vmul.f32 0.01, %v4240_v2 }
 0x3ab   :  { %v4266_v4 = vsel %vm4250_vm1, %v4240_v2, %v4258_v3 }
 0x3ac   :  { %v4274_v9 = vpack.c.bf16 %v4266_v4, %v4266_v4  ;;  %v4228_v11 = vpop.f32.mrf.mxu2 }
 0x3ae   :  { %v4241_v17 = vpop.f32.mrf.mxu3  ;;  %4890 = vmatmul.bf16.vlgmr.msrb.gmra.mxu3 %v4274_v9 }
 0x3b7   :  { %v4800_v12 = vpop.f32.mrf.mxu0 }
 0x3b8   :  { %v4813_v13 = vpop.f32.mrf.mxu1  ;;  %v4801_v14 = vadd.f32 %v7802_v6, %v4800_v12 }
 0x3ba   :  { %v4814_v15 = vadd.f32 %v4813_v13, %v4801_v14 }
 0x3bf   :  { %v4802_v5 = vpop.f32.mrf.mxu0 }
 0x3c0   :  { %v4815_v49 = vpop.f32.mrf.mxu1 }
 0x3c4   :  { %v4826_v50 = vpop.f32.mrf.mxu2 }
 0x3c5   :  { %v4827_v52 = vadd.f32 %v4826_v50, %v4814_v15 }
 0x3c6   :  { %v4839_v22 = vpop.f32.mrf.mxu3 }
 0x3c7   :  { %v4840_v23 = vadd.f32 %v4839_v22, %v4827_v52 }
 0x3cc   :  { %v4828_v26 = vpop.f32.mrf.mxu2 }
 0x3ce   :  { %v4841_v27 = vpop.f32.mrf.mxu3 }
 0x3d7   :  { %v4852_v28 = vpop.f32.mrf.mxu0 }
 0x3d8   :  { %v4865_v0 = vpop.f32.mrf.mxu1  ;;  %v4853_v29 = vadd.f32 %v4852_v28, %v4840_v23 }
 0x3da   :  { %v4866_v21 = vadd.f32 %v4865_v0, %v4853_v29 }
 0x3df   :  { %v4854_v33 = vpop.f32.mrf.mxu0 }
 0x3e0   :  { %v4867_v34 = vpop.f32.mrf.mxu1 }
 0x3e4   :  { %v4878_v35 = vpop.f32.mrf.mxu2 }
 0x3e5   :  { %v4879_v37 = vadd.f32 %v4878_v35, %v4866_v21 }
 0x3ec   :  { %v4880_v36 = vpop.f32.mrf.mxu2 }
 0x431   :  { %v4891_v58 = vpop.f32.mrf.mxu3 }
 0x432   :  { %v4892_v62 = vadd.f32 %v4891_v58, %v4879_v37 }
 0x434   :  { %4895 = vst [vmem:[%s8229_s7] sm:$0xff] %v4892_v62 }
 0x439   :  { %v4893_v24 = vpop.f32.mrf.mxu3 }
 0x43a   :  { %4900 = vsyncpa [#allocation3], 1 }
 0x43b   :  { %4901 = vsyncpa [#allocation5], 1 }
 0x43c   :  { %4902 = vsyncpa [#allocation8], 1 }
 0x43d   :  { %4903 = vsyncpa [#allocation11], 1 }

</bundles_post_ra>
